<compile_context>
chip_gen: v6e
topology: v6e:2x2x1
jax: 0.10.0
libtpu: 0.0.40
codegen_flags: <defaults>
</compile_context>

<pallas_src>
import jax
import jax.numpy as jnp
from jax.experimental import pallas as pl
from jax.experimental.pallas import tpu as pltpu

# Small, module-consistent sizes.
B = 2          # batch
H = 32         # hid_dim (encoder.hid_dim == decoder.hid_dim, n_layers = 1)
E = 16         # emb_dim (encoder & decoder)
V = 16         # vocab size (decoder.output_dim == input vocab here)
SRC_LEN = 8
TRG_LEN = 8
G4 = 4 * H     # LSTM gate width (i, f, g, o)


# --------------------------- Fused seq2seq kernel --------------------------- #
def seq2seq_kernel(tf_ref,                 # SMEM prefetch: (TRG_LEN,) int32
                   trg_ref,                # (TRG_LEN, B, 1) int32
                   encx_ref,               # (SRC_LEN, 4, B, H) f32  x@W_k + b_k
                   encU_ref,               # (4, H, H) f32  recurrent weights
                   decT_ref,               # (4, V, H) f32  emb@W_k + b_k folded
                   decU_ref,               # (4, H, H) f32  recurrent weights
                   wfc_ref, bfc_ref,       # (H, V), (1, V)
                   out_ref):               # (B, TRG_LEN*V) f32, lane-dense
    f32 = jnp.float32

    def lstm_cell(xk, h, c, u_ref):
        # xk[k]: (B, H) input-side pre-activation for gate k (bias folded in).
        # Gate weights are stacked on a leading axis, so u_ref[k] is a free
        # tile view -- no cross-lane slicing of a fused (B, 4H) gates vreg.
        def rec(k):
            return jnp.dot(h, u_ref[k], preferred_element_type=f32)
        i = jax.nn.sigmoid(xk[0] + rec(0))
        f = jax.nn.sigmoid(xk[1] + rec(1))
        g = jnp.tanh(xk[2] + rec(2))
        o = jax.nn.sigmoid(xk[3] + rec(3))
        c_new = f * c + i * g
        h_new = o * jnp.tanh(c_new)
        return h_new, c_new

    h = jnp.zeros((B, H), f32)
    c = jnp.zeros((B, H), f32)

    # ------------- encoder: input projections precomputed in bulk ------------
    for t in range(SRC_LEN):
        xk = tuple(encx_ref[t, k] for k in range(4))
        h, c = lstm_cell(xk, h, c, encU_ref)

    # ------------- decoder: greedy / teacher-forced, fully in-kernel ---------
    lane = jax.lax.broadcasted_iota(jnp.int32, (B, V), 1)
    wfc = wfc_ref[...]                     # hoisted out of the loop
    bfc = bfc_ref[...]
    tok = trg_ref[0]                       # (B, 1) int32, input = trg[0]
    step_logits = [jnp.zeros((B, V), f32)]  # outputs[0] stays zero (written once)
    for t in range(1, TRG_LEN):
        # embedding lookup + input projection as a single one-hot matmul per
        # gate against the folded (V, H) table
        onehot = (lane == tok).astype(f32)                       # (B, V)
        xk = tuple(jnp.dot(onehot, decT_ref[k], preferred_element_type=f32)
                   for k in range(4))
        h, c = lstm_cell(xk, h, c, decU_ref)
        logits = jnp.dot(h, wfc, preferred_element_type=f32) + bfc   # (B, V)
        step_logits.append(logits)

        # top1 = argmax(logits, axis=1), first occurrence on ties
        maxv = jnp.max(logits, axis=1, keepdims=True)
        top1 = jnp.min(jnp.where(logits == maxv, lane, V),
                       axis=1, keepdims=True)                    # (B, 1)
        tok = jnp.where(tf_ref[t] == 1, trg_ref[t], top1)

    # single lane-dense store: (B, TRG_LEN*V) = (2, 128) unmasked slab
    out_ref[...] = jnp.concatenate(step_logits, axis=1)


# ------------------------------- Glue / wrapper ----------------------------- #
def _split_gates(w):
    """(in, 4H) with columns [i|f|g|o] -> (4, in, H)."""
    return jnp.transpose(w.reshape(w.shape[0], 4, H), (1, 0, 2))


def seq2seq_forward(src, trg, params, tf):
    # Bulk / one-time preprocessing in plain JAX (outside the recurrence):
    enc_W = _split_gates(params["enc_wih"])            # (4, E, H)
    enc_U = _split_gates(params["enc_whh"])            # (4, H, H)
    enc_b = _split_gates(params["enc_b"])              # (4, 1, H)
    dec_W = _split_gates(params["dec_wih"])            # (4, E, H)
    dec_U = _split_gates(params["dec_whh"])            # (4, H, H)
    dec_b = _split_gates(params["dec_b"])              # (4, 1, H)

    # Encoder embedding lookup + input projection for ALL timesteps in one
    # matmul; bias folded in.  (S, 4, B, H)
    src_emb = jnp.take(params["enc_emb"], src, axis=0)               # (S, B, E)
    enc_x = jnp.einsum("sbe,keh->skbh", src_emb, enc_W) + enc_b[None]

    # Decoder embedding folded into the gate weights (bias folded): (4, V, H)
    dec_T = jnp.einsum("ve,keh->kvh", params["dec_emb"], dec_W) + dec_b

    trg_v = trg[..., None].astype(jnp.int32)                         # (T, B, 1)

    out2d = pl.pallas_call(
        seq2seq_kernel,
        out_shape=jax.ShapeDtypeStruct((B, TRG_LEN * V), jnp.float32),
        grid_spec=pltpu.PrefetchScalarGridSpec(
            num_scalar_prefetch=1,          # tf decisions -> SMEM scalar reads
            grid=(1,),                      # single invocation, loops in-kernel
            in_specs=[
                pl.BlockSpec((TRG_LEN, B, 1), lambda i, _tf: (0, 0, 0)),
                pl.BlockSpec((SRC_LEN, 4, B, H), lambda i, _tf: (0, 0, 0, 0)),
                pl.BlockSpec((4, H, H), lambda i, _tf: (0, 0, 0)),
                pl.BlockSpec((4, V, H), lambda i, _tf: (0, 0, 0)),
                pl.BlockSpec((4, H, H), lambda i, _tf: (0, 0, 0)),
                pl.BlockSpec((H, V), lambda i, _tf: (0, 0)),
                pl.BlockSpec((1, V), lambda i, _tf: (0, 0)),
            ],
            out_specs=pl.BlockSpec((B, TRG_LEN * V), lambda i, _tf: (0, 0)),
        ),
        # NOTE(v7x): at realistic batch sizes add a leading batch grid axis
        # marked "parallel" to use both TensorCores; at B=2 it is latency-bound.
        compiler_params=pltpu.CompilerParams(
            dimension_semantics=("arbitrary",)),
    )(tf.astype(jnp.int32), trg_v, enc_x, enc_U, dec_T, dec_U,
      params["dec_wfc"], params["dec_bfc"])

    # lane-dense (B, T*V) slab -> (T, B, V)
    return jnp.transpose(out2d.reshape(B, TRG_LEN, V), (1, 0, 2))


# --------------------------------- Params ----------------------------------- #
def init_params(key):
    ks = jax.random.split(key, 10)
    s = 0.1
    # b_* is (b_ih + b_hh) combined (equivalent to PyTorch's two bias vectors)
    return dict(
        enc_emb=jax.random.normal(ks[0], (V, E), jnp.float32) * s,
        enc_wih=jax.random.normal(ks[1], (E, G4), jnp.float32) * s,
        enc_whh=jax.random.normal(ks[2], (H, G4), jnp.float32) * s,
        enc_b=jax.random.normal(ks[3], (1, G4), jnp.float32) * s,
        dec_emb=jax.random.normal(ks[4], (V, E), jnp.float32) * s,
        dec_wih=jax.random.normal(ks[5], (E, G4), jnp.float32) * s,
        dec_whh=jax.random.normal(ks[6], (H, G4), jnp.float32) * s,
        dec_b=jax.random.normal(ks[7], (1, G4), jnp.float32) * s,
        dec_wfc=jax.random.normal(ks[8], (H, V), jnp.float32) * s,
        dec_bfc=jax.random.normal(ks[9], (1, V), jnp.float32) * s,
    )


# --------------------------------- Reference --------------------------------- #
def seq2seq_reference(src, trg, params, tf):
    """Pure-JAX reference mirroring the PyTorch forward."""
    def cell(x, h, c, wih, whh, b):
        gates = x @ wih + h @ whh + b
        i = jax.nn.sigmoid(gates[:, :H])
        f = jax.nn.sigmoid(gates[:, H:2 * H])
        g = jnp.tanh(gates[:, 2 * H:3 * H])
        o = jax.nn.sigmoid(gates[:, 3 * H:])
        c = f * c + i * g
        return o * jnp.tanh(c), c

    h = jnp.zeros((B, H), jnp.float32)
    c = jnp.zeros((B, H), jnp.float32)
    src_emb = params["enc_emb"][src]
    for t in range(SRC_LEN):
        h, c = cell(src_emb[t], h, c,
                    params["enc_wih"], params["enc_whh"], params["enc_b"])
    outputs = jnp.zeros((TRG_LEN, B, V), jnp.float32)
    inp = trg[0]
    for t in range(1, TRG_LEN):
        x = params["dec_emb"][inp]
        h, c = cell(x, h, c,
                    params["dec_wih"], params["dec_whh"], params["dec_b"])
        logits = h @ params["dec_wfc"] + params["dec_bfc"]
        outputs = outputs.at[t].set(logits)
        top1 = jnp.argmax(logits, axis=1).astype(jnp.int32)
        inp = jnp.where(tf[t] == 1, trg[t], top1)
    return outputs


if __name__ == "__main__":
    key = jax.random.PRNGKey(0)
    kp, ksrc, ktrg, ktf = jax.random.split(key, 4)
    params = init_params(kp)
    src = jax.random.randint(ksrc, (SRC_LEN, B), 0, V, dtype=jnp.int32)
    trg = jax.random.randint(ktrg, (TRG_LEN, B), 0, V, dtype=jnp.int32)
    # TODO(synk): PyTorch draws random.random() per step for teacher forcing;
    # we precompute deterministic Bernoulli(0.5) decisions instead.
    tf = (jax.random.uniform(ktf, (TRG_LEN,)) < 0.5).astype(jnp.int32)

    fwd = jax.jit(seq2seq_forward)
    out = jax.block_until_ready(fwd(src, trg, params, tf))
    ref = seq2seq_reference(src, trg, params, tf)

    assert out.shape == (TRG_LEN, B, V)
    assert jnp.allclose(out, ref, atol=1e-4, rtol=1e-4), \
        float(jnp.max(jnp.abs(out - ref)))
    print("KERNEL_OK")
</pallas_src>

<mosaic_0001>
module attributes {stable_mosaic.version = 11 : i64} {
  func.func @seq2seq_kernel(%arg0: i32, %arg1: memref<8xi32, #tpu.memory_space<smem>>, %arg2: memref<8x2x1xi32, #tpu.memory_space<vmem>>, %arg3: memref<8x4x2x32xf32, #tpu.memory_space<vmem>>, %arg4: memref<4x32x32xf32, #tpu.memory_space<vmem>>, %arg5: memref<4x16x32xf32, #tpu.memory_space<vmem>>, %arg6: memref<4x32x32xf32, #tpu.memory_space<vmem>>, %arg7: memref<32x16xf32, #tpu.memory_space<vmem>>, %arg8: memref<1x16xf32, #tpu.memory_space<vmem>>, %arg9: memref<2x128xf32, #tpu.memory_space<vmem>>) attributes {dimension_semantics = [#tpu.dimension_semantics<arbitrary>], iteration_bounds = array<i64: 1>, scalar_prefetch = 1 : i64, scratch_operands = 0 : i64, tpu.core_type = #tpu.core_type<tc>, window_params = [{pipeline_mode = #tpu.pipeline_mode<synchronous>, transform_indices = @transform_0, window_bounds = array<i64: 8, 2, 1>}, {pipeline_mode = #tpu.pipeline_mode<synchronous>, transform_indices = @transform_1, window_bounds = array<i64: 8, 4, 2, 32>}, {pipeline_mode = #tpu.pipeline_mode<synchronous>, transform_indices = @transform_2, window_bounds = array<i64: 4, 32, 32>}, {pipeline_mode = #tpu.pipeline_mode<synchronous>, transform_indices = @transform_3, window_bounds = array<i64: 4, 16, 32>}, {pipeline_mode = #tpu.pipeline_mode<synchronous>, transform_indices = @transform_4, window_bounds = array<i64: 4, 32, 32>}, {pipeline_mode = #tpu.pipeline_mode<synchronous>, transform_indices = @transform_5, window_bounds = array<i64: 32, 16>}, {pipeline_mode = #tpu.pipeline_mode<synchronous>, transform_indices = @transform_6, window_bounds = array<i64: 1, 16>}, {pipeline_mode = #tpu.pipeline_mode<synchronous>, transform_indices = @transform_7, window_bounds = array<i64: 2, 128>}]} {
    %cst = arith.constant 0.000000e+00 : f32
    %0 = vector.broadcast %cst : f32 to vector<2x32xf32>
    %cst_0 = arith.constant 0.000000e+00 : f32
    %1 = vector.broadcast %cst_0 : f32 to vector<2x32xf32>
    %c0 = arith.constant 0 : index
    %c0_1 = arith.constant 0 : index
    %c0_2 = arith.constant 0 : index
    %c0_3 = arith.constant 0 : index
    %2 = vector.load %arg3[%c0, %c0_1, %c0_2, %c0_3] : memref<8x4x2x32xf32, #tpu.memory_space<vmem>>, vector<1x1x2x32xf32>
    %3 = vector.shape_cast %2 : vector<1x1x2x32xf32> to vector<2x32xf32>
    %c0_4 = arith.constant 0 : index
    %c1 = arith.constant 1 : index
    %c0_5 = arith.constant 0 : index
    %c0_6 = arith.constant 0 : index
    %4 = vector.load %arg3[%c0_4, %c1, %c0_5, %c0_6] : memref<8x4x2x32xf32, #tpu.memory_space<vmem>>, vector<1x1x2x32xf32>
    %5 = vector.shape_cast %4 : vector<1x1x2x32xf32> to vector<2x32xf32>
    %c0_7 = arith.constant 0 : index
    %c2 = arith.constant 2 : index
    %c0_8 = arith.constant 0 : index
    %c0_9 = arith.constant 0 : index
    %6 = vector.load %arg3[%c0_7, %c2, %c0_8, %c0_9] : memref<8x4x2x32xf32, #tpu.memory_space<vmem>>, vector<1x1x2x32xf32>
    %7 = vector.shape_cast %6 : vector<1x1x2x32xf32> to vector<2x32xf32>
    %c0_10 = arith.constant 0 : index
    %c3 = arith.constant 3 : index
    %c0_11 = arith.constant 0 : index
    %c0_12 = arith.constant 0 : index
    %8 = vector.load %arg3[%c0_10, %c3, %c0_11, %c0_12] : memref<8x4x2x32xf32, #tpu.memory_space<vmem>>, vector<1x1x2x32xf32>
    %9 = vector.shape_cast %8 : vector<1x1x2x32xf32> to vector<2x32xf32>
    %c0_13 = arith.constant 0 : index
    %c0_14 = arith.constant 0 : index
    %c0_15 = arith.constant 0 : index
    %10 = vector.load %arg4[%c0_13, %c0_14, %c0_15] : memref<4x32x32xf32, #tpu.memory_space<vmem>>, vector<1x32x32xf32>
    %11 = vector.shape_cast %10 : vector<1x32x32xf32> to vector<32x32xf32>
    %cst_16 = arith.constant dense<0.000000e+00> : vector<2x32xf32>
    %12 = tpu.matmul %0, %11, %cst_16 {dimension_numbers = #tpu.dot_dimension_numbers<[1], [0], [0], [1], [0, 0, 1, 1], [], []>} : vector<2x32xf32>, vector<32x32xf32>, vector<2x32xf32> -> vector<2x32xf32>
    %13 = arith.addf %3, %12 : vector<2x32xf32>
    %14 = arith.negf %13 : vector<2x32xf32>
    %15 = math.exp %14 : vector<2x32xf32>
    %cst_17 = arith.constant 1.000000e+00 : f32
    %16 = vector.broadcast %cst_17 : f32 to vector<2x32xf32>
    %17 = arith.addf %16, %15 : vector<2x32xf32>
    %18 = arith.divf %16, %17 : vector<2x32xf32>
    %c1_18 = arith.constant 1 : index
    %c0_19 = arith.constant 0 : index
    %c0_20 = arith.constant 0 : index
    %19 = vector.load %arg4[%c1_18, %c0_19, %c0_20] : memref<4x32x32xf32, #tpu.memory_space<vmem>>, vector<1x32x32xf32>
    %20 = vector.shape_cast %19 : vector<1x32x32xf32> to vector<32x32xf32>
    %cst_21 = arith.constant dense<0.000000e+00> : vector<2x32xf32>
    %21 = tpu.matmul %0, %20, %cst_21 {dimension_numbers = #tpu.dot_dimension_numbers<[1], [0], [0], [1], [0, 0, 1, 1], [], []>} : vector<2x32xf32>, vector<32x32xf32>, vector<2x32xf32> -> vector<2x32xf32>
    %22 = arith.addf %5, %21 : vector<2x32xf32>
    %23 = arith.negf %22 : vector<2x32xf32>
    %24 = math.exp %23 : vector<2x32xf32>
    %cst_22 = arith.constant 1.000000e+00 : f32
    %25 = vector.broadcast %cst_22 : f32 to vector<2x32xf32>
    %26 = arith.addf %25, %24 : vector<2x32xf32>
    %27 = arith.divf %25, %26 : vector<2x32xf32>
    %c2_23 = arith.constant 2 : index
    %c0_24 = arith.constant 0 : index
    %c0_25 = arith.constant 0 : index
    %28 = vector.load %arg4[%c2_23, %c0_24, %c0_25] : memref<4x32x32xf32, #tpu.memory_space<vmem>>, vector<1x32x32xf32>
    %29 = vector.shape_cast %28 : vector<1x32x32xf32> to vector<32x32xf32>
    %cst_26 = arith.constant dense<0.000000e+00> : vector<2x32xf32>
    %30 = tpu.matmul %0, %29, %cst_26 {dimension_numbers = #tpu.dot_dimension_numbers<[1], [0], [0], [1], [0, 0, 1, 1], [], []>} : vector<2x32xf32>, vector<32x32xf32>, vector<2x32xf32> -> vector<2x32xf32>
    %31 = arith.addf %7, %30 : vector<2x32xf32>
    %32 = math.tanh %31 : vector<2x32xf32>
    %c3_27 = arith.constant 3 : index
    %c0_28 = arith.constant 0 : index
    %c0_29 = arith.constant 0 : index
    %33 = vector.load %arg4[%c3_27, %c0_28, %c0_29] : memref<4x32x32xf32, #tpu.memory_space<vmem>>, vector<1x32x32xf32>
    %34 = vector.shape_cast %33 : vector<1x32x32xf32> to vector<32x32xf32>
    %cst_30 = arith.constant dense<0.000000e+00> : vector<2x32xf32>
    %35 = tpu.matmul %0, %34, %cst_30 {dimension_numbers = #tpu.dot_dimension_numbers<[1], [0], [0], [1], [0, 0, 1, 1], [], []>} : vector<2x32xf32>, vector<32x32xf32>, vector<2x32xf32> -> vector<2x32xf32>
    %36 = arith.addf %9, %35 : vector<2x32xf32>
    %37 = arith.negf %36 : vector<2x32xf32>
    %38 = math.exp %37 : vector<2x32xf32>
    %cst_31 = arith.constant 1.000000e+00 : f32
    %39 = vector.broadcast %cst_31 : f32 to vector<2x32xf32>
    %40 = arith.addf %39, %38 : vector<2x32xf32>
    %41 = arith.divf %39, %40 : vector<2x32xf32>
    %42 = arith.mulf %27, %1 : vector<2x32xf32>
    %43 = arith.mulf %18, %32 : vector<2x32xf32>
    %44 = arith.addf %42, %43 : vector<2x32xf32>
    %45 = math.tanh %44 : vector<2x32xf32>
    %46 = arith.mulf %41, %45 : vector<2x32xf32>
    %c1_32 = arith.constant 1 : index
    %c0_33 = arith.constant 0 : index
    %c0_34 = arith.constant 0 : index
    %c0_35 = arith.constant 0 : index
    %47 = vector.load %arg3[%c1_32, %c0_33, %c0_34, %c0_35] : memref<8x4x2x32xf32, #tpu.memory_space<vmem>>, vector<1x1x2x32xf32>
    %48 = vector.shape_cast %47 : vector<1x1x2x32xf32> to vector<2x32xf32>
    %c1_36 = arith.constant 1 : index
    %c1_37 = arith.constant 1 : index
    %c0_38 = arith.constant 0 : index
    %c0_39 = arith.constant 0 : index
    %49 = vector.load %arg3[%c1_36, %c1_37, %c0_38, %c0_39] : memref<8x4x2x32xf32, #tpu.memory_space<vmem>>, vector<1x1x2x32xf32>
    %50 = vector.shape_cast %49 : vector<1x1x2x32xf32> to vector<2x32xf32>
    %c1_40 = arith.constant 1 : index
    %c2_41 = arith.constant 2 : index
    %c0_42 = arith.constant 0 : index
    %c0_43 = arith.constant 0 : index
    %51 = vector.load %arg3[%c1_40, %c2_41, %c0_42, %c0_43] : memref<8x4x2x32xf32, #tpu.memory_space<vmem>>, vector<1x1x2x32xf32>
    %52 = vector.shape_cast %51 : vector<1x1x2x32xf32> to vector<2x32xf32>
    %c1_44 = arith.constant 1 : index
    %c3_45 = arith.constant 3 : index
    %c0_46 = arith.constant 0 : index
    %c0_47 = arith.constant 0 : index
    %53 = vector.load %arg3[%c1_44, %c3_45, %c0_46, %c0_47] : memref<8x4x2x32xf32, #tpu.memory_space<vmem>>, vector<1x1x2x32xf32>
    %54 = vector.shape_cast %53 : vector<1x1x2x32xf32> to vector<2x32xf32>
    %c0_48 = arith.constant 0 : index
    %c0_49 = arith.constant 0 : index
    %c0_50 = arith.constant 0 : index
    %55 = vector.load %arg4[%c0_48, %c0_49, %c0_50] : memref<4x32x32xf32, #tpu.memory_space<vmem>>, vector<1x32x32xf32>
    %56 = vector.shape_cast %55 : vector<1x32x32xf32> to vector<32x32xf32>
    %cst_51 = arith.constant dense<0.000000e+00> : vector<2x32xf32>
    %57 = tpu.matmul %46, %56, %cst_51 {dimension_numbers = #tpu.dot_dimension_numbers<[1], [0], [0], [1], [0, 0, 1, 1], [], []>} : vector<2x32xf32>, vector<32x32xf32>, vector<2x32xf32> -> vector<2x32xf32>
    %58 = arith.addf %48, %57 : vector<2x32xf32>
    %59 = arith.negf %58 : vector<2x32xf32>
    %60 = math.exp %59 : vector<2x32xf32>
    %cst_52 = arith.constant 1.000000e+00 : f32
    %61 = vector.broadcast %cst_52 : f32 to vector<2x32xf32>
    %62 = arith.addf %61, %60 : vector<2x32xf32>
    %63 = arith.divf %61, %62 : vector<2x32xf32>
    %c1_53 = arith.constant 1 : index
    %c0_54 = arith.constant 0 : index
    %c0_55 = arith.constant 0 : index
    %64 = vector.load %arg4[%c1_53, %c0_54, %c0_55] : memref<4x32x32xf32, #tpu.memory_space<vmem>>, vector<1x32x32xf32>
    %65 = vector.shape_cast %64 : vector<1x32x32xf32> to vector<32x32xf32>
    %cst_56 = arith.constant dense<0.000000e+00> : vector<2x32xf32>
    %66 = tpu.matmul %46, %65, %cst_56 {dimension_numbers = #tpu.dot_dimension_numbers<[1], [0], [0], [1], [0, 0, 1, 1], [], []>} : vector<2x32xf32>, vector<32x32xf32>, vector<2x32xf32> -> vector<2x32xf32>
    %67 = arith.addf %50, %66 : vector<2x32xf32>
    %68 = arith.negf %67 : vector<2x32xf32>
    %69 = math.exp %68 : vector<2x32xf32>
    %cst_57 = arith.constant 1.000000e+00 : f32
    %70 = vector.broadcast %cst_57 : f32 to vector<2x32xf32>
    %71 = arith.addf %70, %69 : vector<2x32xf32>
    %72 = arith.divf %70, %71 : vector<2x32xf32>
    %c2_58 = arith.constant 2 : index
    %c0_59 = arith.constant 0 : index
    %c0_60 = arith.constant 0 : index
    %73 = vector.load %arg4[%c2_58, %c0_59, %c0_60] : memref<4x32x32xf32, #tpu.memory_space<vmem>>, vector<1x32x32xf32>
    %74 = vector.shape_cast %73 : vector<1x32x32xf32> to vector<32x32xf32>
    %cst_61 = arith.constant dense<0.000000e+00> : vector<2x32xf32>
    %75 = tpu.matmul %46, %74, %cst_61 {dimension_numbers = #tpu.dot_dimension_numbers<[1], [0], [0], [1], [0, 0, 1, 1], [], []>} : vector<2x32xf32>, vector<32x32xf32>, vector<2x32xf32> -> vector<2x32xf32>
    %76 = arith.addf %52, %75 : vector<2x32xf32>
    %77 = math.tanh %76 : vector<2x32xf32>
    %c3_62 = arith.constant 3 : index
    %c0_63 = arith.constant 0 : index
    %c0_64 = arith.constant 0 : index
    %78 = vector.load %arg4[%c3_62, %c0_63, %c0_64] : memref<4x32x32xf32, #tpu.memory_space<vmem>>, vector<1x32x32xf32>
    %79 = vector.shape_cast %78 : vector<1x32x32xf32> to vector<32x32xf32>
    %cst_65 = arith.constant dense<0.000000e+00> : vector<2x32xf32>
    %80 = tpu.matmul %46, %79, %cst_65 {dimension_numbers = #tpu.dot_dimension_numbers<[1], [0], [0], [1], [0, 0, 1, 1], [], []>} : vector<2x32xf32>, vector<32x32xf32>, vector<2x32xf32> -> vector<2x32xf32>
    %81 = arith.addf %54, %80 : vector<2x32xf32>
    %82 = arith.negf %81 : vector<2x32xf32>
    %83 = math.exp %82 : vector<2x32xf32>
    %cst_66 = arith.constant 1.000000e+00 : f32
    %84 = vector.broadcast %cst_66 : f32 to vector<2x32xf32>
    %85 = arith.addf %84, %83 : vector<2x32xf32>
    %86 = arith.divf %84, %85 : vector<2x32xf32>
    %87 = arith.mulf %72, %44 : vector<2x32xf32>
    %88 = arith.mulf %63, %77 : vector<2x32xf32>
    %89 = arith.addf %87, %88 : vector<2x32xf32>
    %90 = math.tanh %89 : vector<2x32xf32>
    %91 = arith.mulf %86, %90 : vector<2x32xf32>
    %c2_67 = arith.constant 2 : index
    %c0_68 = arith.constant 0 : index
    %c0_69 = arith.constant 0 : index
    %c0_70 = arith.constant 0 : index
    %92 = vector.load %arg3[%c2_67, %c0_68, %c0_69, %c0_70] : memref<8x4x2x32xf32, #tpu.memory_space<vmem>>, vector<1x1x2x32xf32>
    %93 = vector.shape_cast %92 : vector<1x1x2x32xf32> to vector<2x32xf32>
    %c2_71 = arith.constant 2 : index
    %c1_72 = arith.constant 1 : index
    %c0_73 = arith.constant 0 : index
    %c0_74 = arith.constant 0 : index
    %94 = vector.load %arg3[%c2_71, %c1_72, %c0_73, %c0_74] : memref<8x4x2x32xf32, #tpu.memory_space<vmem>>, vector<1x1x2x32xf32>
    %95 = vector.shape_cast %94 : vector<1x1x2x32xf32> to vector<2x32xf32>
    %c2_75 = arith.constant 2 : index
    %c2_76 = arith.constant 2 : index
    %c0_77 = arith.constant 0 : index
    %c0_78 = arith.constant 0 : index
    %96 = vector.load %arg3[%c2_75, %c2_76, %c0_77, %c0_78] : memref<8x4x2x32xf32, #tpu.memory_space<vmem>>, vector<1x1x2x32xf32>
    %97 = vector.shape_cast %96 : vector<1x1x2x32xf32> to vector<2x32xf32>
    %c2_79 = arith.constant 2 : index
    %c3_80 = arith.constant 3 : index
    %c0_81 = arith.constant 0 : index
    %c0_82 = arith.constant 0 : index
    %98 = vector.load %arg3[%c2_79, %c3_80, %c0_81, %c0_82] : memref<8x4x2x32xf32, #tpu.memory_space<vmem>>, vector<1x1x2x32xf32>
    %99 = vector.shape_cast %98 : vector<1x1x2x32xf32> to vector<2x32xf32>
    %c0_83 = arith.constant 0 : index
    %c0_84 = arith.constant 0 : index
    %c0_85 = arith.constant 0 : index
    %100 = vector.load %arg4[%c0_83, %c0_84, %c0_85] : memref<4x32x32xf32, #tpu.memory_space<vmem>>, vector<1x32x32xf32>
    %101 = vector.shape_cast %100 : vector<1x32x32xf32> to vector<32x32xf32>
    %cst_86 = arith.constant dense<0.000000e+00> : vector<2x32xf32>
    %102 = tpu.matmul %91, %101, %cst_86 {dimension_numbers = #tpu.dot_dimension_numbers<[1], [0], [0], [1], [0, 0, 1, 1], [], []>} : vector<2x32xf32>, vector<32x32xf32>, vector<2x32xf32> -> vector<2x32xf32>
    %103 = arith.addf %93, %102 : vector<2x32xf32>
    %104 = arith.negf %103 : vector<2x32xf32>
    %105 = math.exp %104 : vector<2x32xf32>
    %cst_87 = arith.constant 1.000000e+00 : f32
    %106 = vector.broadcast %cst_87 : f32 to vector<2x32xf32>
    %107 = arith.addf %106, %105 : vector<2x32xf32>
    %108 = arith.divf %106, %107 : vector<2x32xf32>
    %c1_88 = arith.constant 1 : index
    %c0_89 = arith.constant 0 : index
    %c0_90 = arith.constant 0 : index
    %109 = vector.load %arg4[%c1_88, %c0_89, %c0_90] : memref<4x32x32xf32, #tpu.memory_space<vmem>>, vector<1x32x32xf32>
    %110 = vector.shape_cast %109 : vector<1x32x32xf32> to vector<32x32xf32>
    %cst_91 = arith.constant dense<0.000000e+00> : vector<2x32xf32>
    %111 = tpu.matmul %91, %110, %cst_91 {dimension_numbers = #tpu.dot_dimension_numbers<[1], [0], [0], [1], [0, 0, 1, 1], [], []>} : vector<2x32xf32>, vector<32x32xf32>, vector<2x32xf32> -> vector<2x32xf32>
    %112 = arith.addf %95, %111 : vector<2x32xf32>
    %113 = arith.negf %112 : vector<2x32xf32>
    %114 = math.exp %113 : vector<2x32xf32>
    %cst_92 = arith.constant 1.000000e+00 : f32
    %115 = vector.broadcast %cst_92 : f32 to vector<2x32xf32>
    %116 = arith.addf %115, %114 : vector<2x32xf32>
    %117 = arith.divf %115, %116 : vector<2x32xf32>
    %c2_93 = arith.constant 2 : index
    %c0_94 = arith.constant 0 : index
    %c0_95 = arith.constant 0 : index
    %118 = vector.load %arg4[%c2_93, %c0_94, %c0_95] : memref<4x32x32xf32, #tpu.memory_space<vmem>>, vector<1x32x32xf32>
    %119 = vector.shape_cast %118 : vector<1x32x32xf32> to vector<32x32xf32>
    %cst_96 = arith.constant dense<0.000000e+00> : vector<2x32xf32>
    %120 = tpu.matmul %91, %119, %cst_96 {dimension_numbers = #tpu.dot_dimension_numbers<[1], [0], [0], [1], [0, 0, 1, 1], [], []>} : vector<2x32xf32>, vector<32x32xf32>, vector<2x32xf32> -> vector<2x32xf32>
    %121 = arith.addf %97, %120 : vector<2x32xf32>
    %122 = math.tanh %121 : vector<2x32xf32>
    %c3_97 = arith.constant 3 : index
    %c0_98 = arith.constant 0 : index
    %c0_99 = arith.constant 0 : index
    %123 = vector.load %arg4[%c3_97, %c0_98, %c0_99] : memref<4x32x32xf32, #tpu.memory_space<vmem>>, vector<1x32x32xf32>
    %124 = vector.shape_cast %123 : vector<1x32x32xf32> to vector<32x32xf32>
    %cst_100 = arith.constant dense<0.000000e+00> : vector<2x32xf32>
    %125 = tpu.matmul %91, %124, %cst_100 {dimension_numbers = #tpu.dot_dimension_numbers<[1], [0], [0], [1], [0, 0, 1, 1], [], []>} : vector<2x32xf32>, vector<32x32xf32>, vector<2x32xf32> -> vector<2x32xf32>
    %126 = arith.addf %99, %125 : vector<2x32xf32>
    %127 = arith.negf %126 : vector<2x32xf32>
    %128 = math.exp %127 : vector<2x32xf32>
    %cst_101 = arith.constant 1.000000e+00 : f32
    %129 = vector.broadcast %cst_101 : f32 to vector<2x32xf32>
    %130 = arith.addf %129, %128 : vector<2x32xf32>
    %131 = arith.divf %129, %130 : vector<2x32xf32>
    %132 = arith.mulf %117, %89 : vector<2x32xf32>
    %133 = arith.mulf %108, %122 : vector<2x32xf32>
    %134 = arith.addf %132, %133 : vector<2x32xf32>
    %135 = math.tanh %134 : vector<2x32xf32>
    %136 = arith.mulf %131, %135 : vector<2x32xf32>
    %c3_102 = arith.constant 3 : index
    %c0_103 = arith.constant 0 : index
    %c0_104 = arith.constant 0 : index
    %c0_105 = arith.constant 0 : index
    %137 = vector.load %arg3[%c3_102, %c0_103, %c0_104, %c0_105] : memref<8x4x2x32xf32, #tpu.memory_space<vmem>>, vector<1x1x2x32xf32>
    %138 = vector.shape_cast %137 : vector<1x1x2x32xf32> to vector<2x32xf32>
    %c3_106 = arith.constant 3 : index
    %c1_107 = arith.constant 1 : index
    %c0_108 = arith.constant 0 : index
    %c0_109 = arith.constant 0 : index
    %139 = vector.load %arg3[%c3_106, %c1_107, %c0_108, %c0_109] : memref<8x4x2x32xf32, #tpu.memory_space<vmem>>, vector<1x1x2x32xf32>
    %140 = vector.shape_cast %139 : vector<1x1x2x32xf32> to vector<2x32xf32>
    %c3_110 = arith.constant 3 : index
    %c2_111 = arith.constant 2 : index
    %c0_112 = arith.constant 0 : index
    %c0_113 = arith.constant 0 : index
    %141 = vector.load %arg3[%c3_110, %c2_111, %c0_112, %c0_113] : memref<8x4x2x32xf32, #tpu.memory_space<vmem>>, vector<1x1x2x32xf32>
    %142 = vector.shape_cast %141 : vector<1x1x2x32xf32> to vector<2x32xf32>
    %c3_114 = arith.constant 3 : index
    %c3_115 = arith.constant 3 : index
    %c0_116 = arith.constant 0 : index
    %c0_117 = arith.constant 0 : index
    %143 = vector.load %arg3[%c3_114, %c3_115, %c0_116, %c0_117] : memref<8x4x2x32xf32, #tpu.memory_space<vmem>>, vector<1x1x2x32xf32>
    %144 = vector.shape_cast %143 : vector<1x1x2x32xf32> to vector<2x32xf32>
    %c0_118 = arith.constant 0 : index
    %c0_119 = arith.constant 0 : index
    %c0_120 = arith.constant 0 : index
    %145 = vector.load %arg4[%c0_118, %c0_119, %c0_120] : memref<4x32x32xf32, #tpu.memory_space<vmem>>, vector<1x32x32xf32>
    %146 = vector.shape_cast %145 : vector<1x32x32xf32> to vector<32x32xf32>
    %cst_121 = arith.constant dense<0.000000e+00> : vector<2x32xf32>
    %147 = tpu.matmul %136, %146, %cst_121 {dimension_numbers = #tpu.dot_dimension_numbers<[1], [0], [0], [1], [0, 0, 1, 1], [], []>} : vector<2x32xf32>, vector<32x32xf32>, vector<2x32xf32> -> vector<2x32xf32>
    %148 = arith.addf %138, %147 : vector<2x32xf32>
    %149 = arith.negf %148 : vector<2x32xf32>
    %150 = math.exp %149 : vector<2x32xf32>
    %cst_122 = arith.constant 1.000000e+00 : f32
    %151 = vector.broadcast %cst_122 : f32 to vector<2x32xf32>
    %152 = arith.addf %151, %150 : vector<2x32xf32>
    %153 = arith.divf %151, %152 : vector<2x32xf32>
    %c1_123 = arith.constant 1 : index
    %c0_124 = arith.constant 0 : index
    %c0_125 = arith.constant 0 : index
    %154 = vector.load %arg4[%c1_123, %c0_124, %c0_125] : memref<4x32x32xf32, #tpu.memory_space<vmem>>, vector<1x32x32xf32>
    %155 = vector.shape_cast %154 : vector<1x32x32xf32> to vector<32x32xf32>
    %cst_126 = arith.constant dense<0.000000e+00> : vector<2x32xf32>
    %156 = tpu.matmul %136, %155, %cst_126 {dimension_numbers = #tpu.dot_dimension_numbers<[1], [0], [0], [1], [0, 0, 1, 1], [], []>} : vector<2x32xf32>, vector<32x32xf32>, vector<2x32xf32> -> vector<2x32xf32>
    %157 = arith.addf %140, %156 : vector<2x32xf32>
    %158 = arith.negf %157 : vector<2x32xf32>
    %159 = math.exp %158 : vector<2x32xf32>
    %cst_127 = arith.constant 1.000000e+00 : f32
    %160 = vector.broadcast %cst_127 : f32 to vector<2x32xf32>
    %161 = arith.addf %160, %159 : vector<2x32xf32>
    %162 = arith.divf %160, %161 : vector<2x32xf32>
    %c2_128 = arith.constant 2 : index
    %c0_129 = arith.constant 0 : index
    %c0_130 = arith.constant 0 : index
    %163 = vector.load %arg4[%c2_128, %c0_129, %c0_130] : memref<4x32x32xf32, #tpu.memory_space<vmem>>, vector<1x32x32xf32>
    %164 = vector.shape_cast %163 : vector<1x32x32xf32> to vector<32x32xf32>
    %cst_131 = arith.constant dense<0.000000e+00> : vector<2x32xf32>
    %165 = tpu.matmul %136, %164, %cst_131 {dimension_numbers = #tpu.dot_dimension_numbers<[1], [0], [0], [1], [0, 0, 1, 1], [], []>} : vector<2x32xf32>, vector<32x32xf32>, vector<2x32xf32> -> vector<2x32xf32>
    %166 = arith.addf %142, %165 : vector<2x32xf32>
    %167 = math.tanh %166 : vector<2x32xf32>
    %c3_132 = arith.constant 3 : index
    %c0_133 = arith.constant 0 : index
    %c0_134 = arith.constant 0 : index
    %168 = vector.load %arg4[%c3_132, %c0_133, %c0_134] : memref<4x32x32xf32, #tpu.memory_space<vmem>>, vector<1x32x32xf32>
    %169 = vector.shape_cast %168 : vector<1x32x32xf32> to vector<32x32xf32>
    %cst_135 = arith.constant dense<0.000000e+00> : vector<2x32xf32>
    %170 = tpu.matmul %136, %169, %cst_135 {dimension_numbers = #tpu.dot_dimension_numbers<[1], [0], [0], [1], [0, 0, 1, 1], [], []>} : vector<2x32xf32>, vector<32x32xf32>, vector<2x32xf32> -> vector<2x32xf32>
    %171 = arith.addf %144, %170 : vector<2x32xf32>
    %172 = arith.negf %171 : vector<2x32xf32>
    %173 = math.exp %172 : vector<2x32xf32>
    %cst_136 = arith.constant 1.000000e+00 : f32
    %174 = vector.broadcast %cst_136 : f32 to vector<2x32xf32>
    %175 = arith.addf %174, %173 : vector<2x32xf32>
    %176 = arith.divf %174, %175 : vector<2x32xf32>
    %177 = arith.mulf %162, %134 : vector<2x32xf32>
    %178 = arith.mulf %153, %167 : vector<2x32xf32>
    %179 = arith.addf %177, %178 : vector<2x32xf32>
    %180 = math.tanh %179 : vector<2x32xf32>
    %181 = arith.mulf %176, %180 : vector<2x32xf32>
    %c4 = arith.constant 4 : index
    %c0_137 = arith.constant 0 : index
    %c0_138 = arith.constant 0 : index
    %c0_139 = arith.constant 0 : index
    %182 = vector.load %arg3[%c4, %c0_137, %c0_138, %c0_139] : memref<8x4x2x32xf32, #tpu.memory_space<vmem>>, vector<1x1x2x32xf32>
    %183 = vector.shape_cast %182 : vector<1x1x2x32xf32> to vector<2x32xf32>
    %c4_140 = arith.constant 4 : index
    %c1_141 = arith.constant 1 : index
    %c0_142 = arith.constant 0 : index
    %c0_143 = arith.constant 0 : index
    %184 = vector.load %arg3[%c4_140, %c1_141, %c0_142, %c0_143] : memref<8x4x2x32xf32, #tpu.memory_space<vmem>>, vector<1x1x2x32xf32>
    %185 = vector.shape_cast %184 : vector<1x1x2x32xf32> to vector<2x32xf32>
    %c4_144 = arith.constant 4 : index
    %c2_145 = arith.constant 2 : index
    %c0_146 = arith.constant 0 : index
    %c0_147 = arith.constant 0 : index
    %186 = vector.load %arg3[%c4_144, %c2_145, %c0_146, %c0_147] : memref<8x4x2x32xf32, #tpu.memory_space<vmem>>, vector<1x1x2x32xf32>
    %187 = vector.shape_cast %186 : vector<1x1x2x32xf32> to vector<2x32xf32>
    %c4_148 = arith.constant 4 : index
    %c3_149 = arith.constant 3 : index
    %c0_150 = arith.constant 0 : index
    %c0_151 = arith.constant 0 : index
    %188 = vector.load %arg3[%c4_148, %c3_149, %c0_150, %c0_151] : memref<8x4x2x32xf32, #tpu.memory_space<vmem>>, vector<1x1x2x32xf32>
    %189 = vector.shape_cast %188 : vector<1x1x2x32xf32> to vector<2x32xf32>
    %c0_152 = arith.constant 0 : index
    %c0_153 = arith.constant 0 : index
    %c0_154 = arith.constant 0 : index
    %190 = vector.load %arg4[%c0_152, %c0_153, %c0_154] : memref<4x32x32xf32, #tpu.memory_space<vmem>>, vector<1x32x32xf32>
    %191 = vector.shape_cast %190 : vector<1x32x32xf32> to vector<32x32xf32>
    %cst_155 = arith.constant dense<0.000000e+00> : vector<2x32xf32>
    %192 = tpu.matmul %181, %191, %cst_155 {dimension_numbers = #tpu.dot_dimension_numbers<[1], [0], [0], [1], [0, 0, 1, 1], [], []>} : vector<2x32xf32>, vector<32x32xf32>, vector<2x32xf32> -> vector<2x32xf32>
    %193 = arith.addf %183, %192 : vector<2x32xf32>
    %194 = arith.negf %193 : vector<2x32xf32>
    %195 = math.exp %194 : vector<2x32xf32>
    %cst_156 = arith.constant 1.000000e+00 : f32
    %196 = vector.broadcast %cst_156 : f32 to vector<2x32xf32>
    %197 = arith.addf %196, %195 : vector<2x32xf32>
    %198 = arith.divf %196, %197 : vector<2x32xf32>
    %c1_157 = arith.constant 1 : index
    %c0_158 = arith.constant 0 : index
    %c0_159 = arith.constant 0 : index
    %199 = vector.load %arg4[%c1_157, %c0_158, %c0_159] : memref<4x32x32xf32, #tpu.memory_space<vmem>>, vector<1x32x32xf32>
    %200 = vector.shape_cast %199 : vector<1x32x32xf32> to vector<32x32xf32>
    %cst_160 = arith.constant dense<0.000000e+00> : vector<2x32xf32>
    %201 = tpu.matmul %181, %200, %cst_160 {dimension_numbers = #tpu.dot_dimension_numbers<[1], [0], [0], [1], [0, 0, 1, 1], [], []>} : vector<2x32xf32>, vector<32x32xf32>, vector<2x32xf32> -> vector<2x32xf32>
    %202 = arith.addf %185, %201 : vector<2x32xf32>
    %203 = arith.negf %202 : vector<2x32xf32>
    %204 = math.exp %203 : vector<2x32xf32>
    %cst_161 = arith.constant 1.000000e+00 : f32
    %205 = vector.broadcast %cst_161 : f32 to vector<2x32xf32>
    %206 = arith.addf %205, %204 : vector<2x32xf32>
    %207 = arith.divf %205, %206 : vector<2x32xf32>
    %c2_162 = arith.constant 2 : index
    %c0_163 = arith.constant 0 : index
    %c0_164 = arith.constant 0 : index
    %208 = vector.load %arg4[%c2_162, %c0_163, %c0_164] : memref<4x32x32xf32, #tpu.memory_space<vmem>>, vector<1x32x32xf32>
    %209 = vector.shape_cast %208 : vector<1x32x32xf32> to vector<32x32xf32>
    %cst_165 = arith.constant dense<0.000000e+00> : vector<2x32xf32>
    %210 = tpu.matmul %181, %209, %cst_165 {dimension_numbers = #tpu.dot_dimension_numbers<[1], [0], [0], [1], [0, 0, 1, 1], [], []>} : vector<2x32xf32>, vector<32x32xf32>, vector<2x32xf32> -> vector<2x32xf32>
    %211 = arith.addf %187, %210 : vector<2x32xf32>
    %212 = math.tanh %211 : vector<2x32xf32>
    %c3_166 = arith.constant 3 : index
    %c0_167 = arith.constant 0 : index
    %c0_168 = arith.constant 0 : index
    %213 = vector.load %arg4[%c3_166, %c0_167, %c0_168] : memref<4x32x32xf32, #tpu.memory_space<vmem>>, vector<1x32x32xf32>
    %214 = vector.shape_cast %213 : vector<1x32x32xf32> to vector<32x32xf32>
    %cst_169 = arith.constant dense<0.000000e+00> : vector<2x32xf32>
    %215 = tpu.matmul %181, %214, %cst_169 {dimension_numbers = #tpu.dot_dimension_numbers<[1], [0], [0], [1], [0, 0, 1, 1], [], []>} : vector<2x32xf32>, vector<32x32xf32>, vector<2x32xf32> -> vector<2x32xf32>
    %216 = arith.addf %189, %215 : vector<2x32xf32>
    %217 = arith.negf %216 : vector<2x32xf32>
    %218 = math.exp %217 : vector<2x32xf32>
    %cst_170 = arith.constant 1.000000e+00 : f32
    %219 = vector.broadcast %cst_170 : f32 to vector<2x32xf32>
    %220 = arith.addf %219, %218 : vector<2x32xf32>
    %221 = arith.divf %219, %220 : vector<2x32xf32>
    %222 = arith.mulf %207, %179 : vector<2x32xf32>
    %223 = arith.mulf %198, %212 : vector<2x32xf32>
    %224 = arith.addf %222, %223 : vector<2x32xf32>
    %225 = math.tanh %224 : vector<2x32xf32>
    %226 = arith.mulf %221, %225 : vector<2x32xf32>
    %c5 = arith.constant 5 : index
    %c0_171 = arith.constant 0 : index
    %c0_172 = arith.constant 0 : index
    %c0_173 = arith.constant 0 : index
    %227 = vector.load %arg3[%c5, %c0_171, %c0_172, %c0_173] : memref<8x4x2x32xf32, #tpu.memory_space<vmem>>, vector<1x1x2x32xf32>
    %228 = vector.shape_cast %227 : vector<1x1x2x32xf32> to vector<2x32xf32>
    %c5_174 = arith.constant 5 : index
    %c1_175 = arith.constant 1 : index
    %c0_176 = arith.constant 0 : index
    %c0_177 = arith.constant 0 : index
    %229 = vector.load %arg3[%c5_174, %c1_175, %c0_176, %c0_177] : memref<8x4x2x32xf32, #tpu.memory_space<vmem>>, vector<1x1x2x32xf32>
    %230 = vector.shape_cast %229 : vector<1x1x2x32xf32> to vector<2x32xf32>
    %c5_178 = arith.constant 5 : index
    %c2_179 = arith.constant 2 : index
    %c0_180 = arith.constant 0 : index
    %c0_181 = arith.constant 0 : index
    %231 = vector.load %arg3[%c5_178, %c2_179, %c0_180, %c0_181] : memref<8x4x2x32xf32, #tpu.memory_space<vmem>>, vector<1x1x2x32xf32>
    %232 = vector.shape_cast %231 : vector<1x1x2x32xf32> to vector<2x32xf32>
    %c5_182 = arith.constant 5 : index
    %c3_183 = arith.constant 3 : index
    %c0_184 = arith.constant 0 : index
    %c0_185 = arith.constant 0 : index
    %233 = vector.load %arg3[%c5_182, %c3_183, %c0_184, %c0_185] : memref<8x4x2x32xf32, #tpu.memory_space<vmem>>, vector<1x1x2x32xf32>
    %234 = vector.shape_cast %233 : vector<1x1x2x32xf32> to vector<2x32xf32>
    %c0_186 = arith.constant 0 : index
    %c0_187 = arith.constant 0 : index
    %c0_188 = arith.constant 0 : index
    %235 = vector.load %arg4[%c0_186, %c0_187, %c0_188] : memref<4x32x32xf32, #tpu.memory_space<vmem>>, vector<1x32x32xf32>
    %236 = vector.shape_cast %235 : vector<1x32x32xf32> to vector<32x32xf32>
    %cst_189 = arith.constant dense<0.000000e+00> : vector<2x32xf32>
    %237 = tpu.matmul %226, %236, %cst_189 {dimension_numbers = #tpu.dot_dimension_numbers<[1], [0], [0], [1], [0, 0, 1, 1], [], []>} : vector<2x32xf32>, vector<32x32xf32>, vector<2x32xf32> -> vector<2x32xf32>
    %238 = arith.addf %228, %237 : vector<2x32xf32>
    %239 = arith.negf %238 : vector<2x32xf32>
    %240 = math.exp %239 : vector<2x32xf32>
    %cst_190 = arith.constant 1.000000e+00 : f32
    %241 = vector.broadcast %cst_190 : f32 to vector<2x32xf32>
    %242 = arith.addf %241, %240 : vector<2x32xf32>
    %243 = arith.divf %241, %242 : vector<2x32xf32>
    %c1_191 = arith.constant 1 : index
    %c0_192 = arith.constant 0 : index
    %c0_193 = arith.constant 0 : index
    %244 = vector.load %arg4[%c1_191, %c0_192, %c0_193] : memref<4x32x32xf32, #tpu.memory_space<vmem>>, vector<1x32x32xf32>
    %245 = vector.shape_cast %244 : vector<1x32x32xf32> to vector<32x32xf32>
    %cst_194 = arith.constant dense<0.000000e+00> : vector<2x32xf32>
    %246 = tpu.matmul %226, %245, %cst_194 {dimension_numbers = #tpu.dot_dimension_numbers<[1], [0], [0], [1], [0, 0, 1, 1], [], []>} : vector<2x32xf32>, vector<32x32xf32>, vector<2x32xf32> -> vector<2x32xf32>
    %247 = arith.addf %230, %246 : vector<2x32xf32>
    %248 = arith.negf %247 : vector<2x32xf32>
    %249 = math.exp %248 : vector<2x32xf32>
    %cst_195 = arith.constant 1.000000e+00 : f32
    %250 = vector.broadcast %cst_195 : f32 to vector<2x32xf32>
    %251 = arith.addf %250, %249 : vector<2x32xf32>
    %252 = arith.divf %250, %251 : vector<2x32xf32>
    %c2_196 = arith.constant 2 : index
    %c0_197 = arith.constant 0 : index
    %c0_198 = arith.constant 0 : index
    %253 = vector.load %arg4[%c2_196, %c0_197, %c0_198] : memref<4x32x32xf32, #tpu.memory_space<vmem>>, vector<1x32x32xf32>
    %254 = vector.shape_cast %253 : vector<1x32x32xf32> to vector<32x32xf32>
    %cst_199 = arith.constant dense<0.000000e+00> : vector<2x32xf32>
    %255 = tpu.matmul %226, %254, %cst_199 {dimension_numbers = #tpu.dot_dimension_numbers<[1], [0], [0], [1], [0, 0, 1, 1], [], []>} : vector<2x32xf32>, vector<32x32xf32>, vector<2x32xf32> -> vector<2x32xf32>
    %256 = arith.addf %232, %255 : vector<2x32xf32>
    %257 = math.tanh %256 : vector<2x32xf32>
    %c3_200 = arith.constant 3 : index
    %c0_201 = arith.constant 0 : index
    %c0_202 = arith.constant 0 : index
    %258 = vector.load %arg4[%c3_200, %c0_201, %c0_202] : memref<4x32x32xf32, #tpu.memory_space<vmem>>, vector<1x32x32xf32>
    %259 = vector.shape_cast %258 : vector<1x32x32xf32> to vector<32x32xf32>
    %cst_203 = arith.constant dense<0.000000e+00> : vector<2x32xf32>
    %260 = tpu.matmul %226, %259, %cst_203 {dimension_numbers = #tpu.dot_dimension_numbers<[1], [0], [0], [1], [0, 0, 1, 1], [], []>} : vector<2x32xf32>, vector<32x32xf32>, vector<2x32xf32> -> vector<2x32xf32>
    %261 = arith.addf %234, %260 : vector<2x32xf32>
    %262 = arith.negf %261 : vector<2x32xf32>
    %263 = math.exp %262 : vector<2x32xf32>
    %cst_204 = arith.constant 1.000000e+00 : f32
    %264 = vector.broadcast %cst_204 : f32 to vector<2x32xf32>
    %265 = arith.addf %264, %263 : vector<2x32xf32>
    %266 = arith.divf %264, %265 : vector<2x32xf32>
    %267 = arith.mulf %252, %224 : vector<2x32xf32>
    %268 = arith.mulf %243, %257 : vector<2x32xf32>
    %269 = arith.addf %267, %268 : vector<2x32xf32>
    %270 = math.tanh %269 : vector<2x32xf32>
    %271 = arith.mulf %266, %270 : vector<2x32xf32>
    %c6 = arith.constant 6 : index
    %c0_205 = arith.constant 0 : index
    %c0_206 = arith.constant 0 : index
    %c0_207 = arith.constant 0 : index
    %272 = vector.load %arg3[%c6, %c0_205, %c0_206, %c0_207] : memref<8x4x2x32xf32, #tpu.memory_space<vmem>>, vector<1x1x2x32xf32>
    %273 = vector.shape_cast %272 : vector<1x1x2x32xf32> to vector<2x32xf32>
    %c6_208 = arith.constant 6 : index
    %c1_209 = arith.constant 1 : index
    %c0_210 = arith.constant 0 : index
    %c0_211 = arith.constant 0 : index
    %274 = vector.load %arg3[%c6_208, %c1_209, %c0_210, %c0_211] : memref<8x4x2x32xf32, #tpu.memory_space<vmem>>, vector<1x1x2x32xf32>
    %275 = vector.shape_cast %274 : vector<1x1x2x32xf32> to vector<2x32xf32>
    %c6_212 = arith.constant 6 : index
    %c2_213 = arith.constant 2 : index
    %c0_214 = arith.constant 0 : index
    %c0_215 = arith.constant 0 : index
    %276 = vector.load %arg3[%c6_212, %c2_213, %c0_214, %c0_215] : memref<8x4x2x32xf32, #tpu.memory_space<vmem>>, vector<1x1x2x32xf32>
    %277 = vector.shape_cast %276 : vector<1x1x2x32xf32> to vector<2x32xf32>
    %c6_216 = arith.constant 6 : index
    %c3_217 = arith.constant 3 : index
    %c0_218 = arith.constant 0 : index
    %c0_219 = arith.constant 0 : index
    %278 = vector.load %arg3[%c6_216, %c3_217, %c0_218, %c0_219] : memref<8x4x2x32xf32, #tpu.memory_space<vmem>>, vector<1x1x2x32xf32>
    %279 = vector.shape_cast %278 : vector<1x1x2x32xf32> to vector<2x32xf32>
    %c0_220 = arith.constant 0 : index
    %c0_221 = arith.constant 0 : index
    %c0_222 = arith.constant 0 : index
    %280 = vector.load %arg4[%c0_220, %c0_221, %c0_222] : memref<4x32x32xf32, #tpu.memory_space<vmem>>, vector<1x32x32xf32>
    %281 = vector.shape_cast %280 : vector<1x32x32xf32> to vector<32x32xf32>
    %cst_223 = arith.constant dense<0.000000e+00> : vector<2x32xf32>
    %282 = tpu.matmul %271, %281, %cst_223 {dimension_numbers = #tpu.dot_dimension_numbers<[1], [0], [0], [1], [0, 0, 1, 1], [], []>} : vector<2x32xf32>, vector<32x32xf32>, vector<2x32xf32> -> vector<2x32xf32>
    %283 = arith.addf %273, %282 : vector<2x32xf32>
    %284 = arith.negf %283 : vector<2x32xf32>
    %285 = math.exp %284 : vector<2x32xf32>
    %cst_224 = arith.constant 1.000000e+00 : f32
    %286 = vector.broadcast %cst_224 : f32 to vector<2x32xf32>
    %287 = arith.addf %286, %285 : vector<2x32xf32>
    %288 = arith.divf %286, %287 : vector<2x32xf32>
    %c1_225 = arith.constant 1 : index
    %c0_226 = arith.constant 0 : index
    %c0_227 = arith.constant 0 : index
    %289 = vector.load %arg4[%c1_225, %c0_226, %c0_227] : memref<4x32x32xf32, #tpu.memory_space<vmem>>, vector<1x32x32xf32>
    %290 = vector.shape_cast %289 : vector<1x32x32xf32> to vector<32x32xf32>
    %cst_228 = arith.constant dense<0.000000e+00> : vector<2x32xf32>
    %291 = tpu.matmul %271, %290, %cst_228 {dimension_numbers = #tpu.dot_dimension_numbers<[1], [0], [0], [1], [0, 0, 1, 1], [], []>} : vector<2x32xf32>, vector<32x32xf32>, vector<2x32xf32> -> vector<2x32xf32>
    %292 = arith.addf %275, %291 : vector<2x32xf32>
    %293 = arith.negf %292 : vector<2x32xf32>
    %294 = math.exp %293 : vector<2x32xf32>
    %cst_229 = arith.constant 1.000000e+00 : f32
    %295 = vector.broadcast %cst_229 : f32 to vector<2x32xf32>
    %296 = arith.addf %295, %294 : vector<2x32xf32>
    %297 = arith.divf %295, %296 : vector<2x32xf32>
    %c2_230 = arith.constant 2 : index
    %c0_231 = arith.constant 0 : index
    %c0_232 = arith.constant 0 : index
    %298 = vector.load %arg4[%c2_230, %c0_231, %c0_232] : memref<4x32x32xf32, #tpu.memory_space<vmem>>, vector<1x32x32xf32>
    %299 = vector.shape_cast %298 : vector<1x32x32xf32> to vector<32x32xf32>
    %cst_233 = arith.constant dense<0.000000e+00> : vector<2x32xf32>
    %300 = tpu.matmul %271, %299, %cst_233 {dimension_numbers = #tpu.dot_dimension_numbers<[1], [0], [0], [1], [0, 0, 1, 1], [], []>} : vector<2x32xf32>, vector<32x32xf32>, vector<2x32xf32> -> vector<2x32xf32>
    %301 = arith.addf %277, %300 : vector<2x32xf32>
    %302 = math.tanh %301 : vector<2x32xf32>
    %c3_234 = arith.constant 3 : index
    %c0_235 = arith.constant 0 : index
    %c0_236 = arith.constant 0 : index
    %303 = vector.load %arg4[%c3_234, %c0_235, %c0_236] : memref<4x32x32xf32, #tpu.memory_space<vmem>>, vector<1x32x32xf32>
    %304 = vector.shape_cast %303 : vector<1x32x32xf32> to vector<32x32xf32>
    %cst_237 = arith.constant dense<0.000000e+00> : vector<2x32xf32>
    %305 = tpu.matmul %271, %304, %cst_237 {dimension_numbers = #tpu.dot_dimension_numbers<[1], [0], [0], [1], [0, 0, 1, 1], [], []>} : vector<2x32xf32>, vector<32x32xf32>, vector<2x32xf32> -> vector<2x32xf32>
    %306 = arith.addf %279, %305 : vector<2x32xf32>
    %307 = arith.negf %306 : vector<2x32xf32>
    %308 = math.exp %307 : vector<2x32xf32>
    %cst_238 = arith.constant 1.000000e+00 : f32
    %309 = vector.broadcast %cst_238 : f32 to vector<2x32xf32>
    %310 = arith.addf %309, %308 : vector<2x32xf32>
    %311 = arith.divf %309, %310 : vector<2x32xf32>
    %312 = arith.mulf %297, %269 : vector<2x32xf32>
    %313 = arith.mulf %288, %302 : vector<2x32xf32>
    %314 = arith.addf %312, %313 : vector<2x32xf32>
    %315 = math.tanh %314 : vector<2x32xf32>
    %316 = arith.mulf %311, %315 : vector<2x32xf32>
    %c7 = arith.constant 7 : index
    %c0_239 = arith.constant 0 : index
    %c0_240 = arith.constant 0 : index
    %c0_241 = arith.constant 0 : index
    %317 = vector.load %arg3[%c7, %c0_239, %c0_240, %c0_241] : memref<8x4x2x32xf32, #tpu.memory_space<vmem>>, vector<1x1x2x32xf32>
    %318 = vector.shape_cast %317 : vector<1x1x2x32xf32> to vector<2x32xf32>
    %c7_242 = arith.constant 7 : index
    %c1_243 = arith.constant 1 : index
    %c0_244 = arith.constant 0 : index
    %c0_245 = arith.constant 0 : index
    %319 = vector.load %arg3[%c7_242, %c1_243, %c0_244, %c0_245] : memref<8x4x2x32xf32, #tpu.memory_space<vmem>>, vector<1x1x2x32xf32>
    %320 = vector.shape_cast %319 : vector<1x1x2x32xf32> to vector<2x32xf32>
    %c7_246 = arith.constant 7 : index
    %c2_247 = arith.constant 2 : index
    %c0_248 = arith.constant 0 : index
    %c0_249 = arith.constant 0 : index
    %321 = vector.load %arg3[%c7_246, %c2_247, %c0_248, %c0_249] : memref<8x4x2x32xf32, #tpu.memory_space<vmem>>, vector<1x1x2x32xf32>
    %322 = vector.shape_cast %321 : vector<1x1x2x32xf32> to vector<2x32xf32>
    %c7_250 = arith.constant 7 : index
    %c3_251 = arith.constant 3 : index
    %c0_252 = arith.constant 0 : index
    %c0_253 = arith.constant 0 : index
    %323 = vector.load %arg3[%c7_250, %c3_251, %c0_252, %c0_253] : memref<8x4x2x32xf32, #tpu.memory_space<vmem>>, vector<1x1x2x32xf32>
    %324 = vector.shape_cast %323 : vector<1x1x2x32xf32> to vector<2x32xf32>
    %c0_254 = arith.constant 0 : index
    %c0_255 = arith.constant 0 : index
    %c0_256 = arith.constant 0 : index
    %325 = vector.load %arg4[%c0_254, %c0_255, %c0_256] : memref<4x32x32xf32, #tpu.memory_space<vmem>>, vector<1x32x32xf32>
    %326 = vector.shape_cast %325 : vector<1x32x32xf32> to vector<32x32xf32>
    %cst_257 = arith.constant dense<0.000000e+00> : vector<2x32xf32>
    %327 = tpu.matmul %316, %326, %cst_257 {dimension_numbers = #tpu.dot_dimension_numbers<[1], [0], [0], [1], [0, 0, 1, 1], [], []>} : vector<2x32xf32>, vector<32x32xf32>, vector<2x32xf32> -> vector<2x32xf32>
    %328 = arith.addf %318, %327 : vector<2x32xf32>
    %329 = arith.negf %328 : vector<2x32xf32>
    %330 = math.exp %329 : vector<2x32xf32>
    %cst_258 = arith.constant 1.000000e+00 : f32
    %331 = vector.broadcast %cst_258 : f32 to vector<2x32xf32>
    %332 = arith.addf %331, %330 : vector<2x32xf32>
    %333 = arith.divf %331, %332 : vector<2x32xf32>
    %c1_259 = arith.constant 1 : index
    %c0_260 = arith.constant 0 : index
    %c0_261 = arith.constant 0 : index
    %334 = vector.load %arg4[%c1_259, %c0_260, %c0_261] : memref<4x32x32xf32, #tpu.memory_space<vmem>>, vector<1x32x32xf32>
    %335 = vector.shape_cast %334 : vector<1x32x32xf32> to vector<32x32xf32>
    %cst_262 = arith.constant dense<0.000000e+00> : vector<2x32xf32>
    %336 = tpu.matmul %316, %335, %cst_262 {dimension_numbers = #tpu.dot_dimension_numbers<[1], [0], [0], [1], [0, 0, 1, 1], [], []>} : vector<2x32xf32>, vector<32x32xf32>, vector<2x32xf32> -> vector<2x32xf32>
    %337 = arith.addf %320, %336 : vector<2x32xf32>
    %338 = arith.negf %337 : vector<2x32xf32>
    %339 = math.exp %338 : vector<2x32xf32>
    %cst_263 = arith.constant 1.000000e+00 : f32
    %340 = vector.broadcast %cst_263 : f32 to vector<2x32xf32>
    %341 = arith.addf %340, %339 : vector<2x32xf32>
    %342 = arith.divf %340, %341 : vector<2x32xf32>
    %c2_264 = arith.constant 2 : index
    %c0_265 = arith.constant 0 : index
    %c0_266 = arith.constant 0 : index
    %343 = vector.load %arg4[%c2_264, %c0_265, %c0_266] : memref<4x32x32xf32, #tpu.memory_space<vmem>>, vector<1x32x32xf32>
    %344 = vector.shape_cast %343 : vector<1x32x32xf32> to vector<32x32xf32>
    %cst_267 = arith.constant dense<0.000000e+00> : vector<2x32xf32>
    %345 = tpu.matmul %316, %344, %cst_267 {dimension_numbers = #tpu.dot_dimension_numbers<[1], [0], [0], [1], [0, 0, 1, 1], [], []>} : vector<2x32xf32>, vector<32x32xf32>, vector<2x32xf32> -> vector<2x32xf32>
    %346 = arith.addf %322, %345 : vector<2x32xf32>
    %347 = math.tanh %346 : vector<2x32xf32>
    %c3_268 = arith.constant 3 : index
    %c0_269 = arith.constant 0 : index
    %c0_270 = arith.constant 0 : index
    %348 = vector.load %arg4[%c3_268, %c0_269, %c0_270] : memref<4x32x32xf32, #tpu.memory_space<vmem>>, vector<1x32x32xf32>
    %349 = vector.shape_cast %348 : vector<1x32x32xf32> to vector<32x32xf32>
    %cst_271 = arith.constant dense<0.000000e+00> : vector<2x32xf32>
    %350 = tpu.matmul %316, %349, %cst_271 {dimension_numbers = #tpu.dot_dimension_numbers<[1], [0], [0], [1], [0, 0, 1, 1], [], []>} : vector<2x32xf32>, vector<32x32xf32>, vector<2x32xf32> -> vector<2x32xf32>
    %351 = arith.addf %324, %350 : vector<2x32xf32>
    %352 = arith.negf %351 : vector<2x32xf32>
    %353 = math.exp %352 : vector<2x32xf32>
    %cst_272 = arith.constant 1.000000e+00 : f32
    %354 = vector.broadcast %cst_272 : f32 to vector<2x32xf32>
    %355 = arith.addf %354, %353 : vector<2x32xf32>
    %356 = arith.divf %354, %355 : vector<2x32xf32>
    %357 = arith.mulf %342, %314 : vector<2x32xf32>
    %358 = arith.mulf %333, %347 : vector<2x32xf32>
    %359 = arith.addf %357, %358 : vector<2x32xf32>
    %360 = math.tanh %359 : vector<2x32xf32>
    %361 = arith.mulf %356, %360 : vector<2x32xf32>
    %362 = tpu.iota {dimensions = array<i32: 1>} : vector<2x16xi32>
    %c0_273 = arith.constant 0 : index
    %c0_274 = arith.constant 0 : index
    %363 = vector.load %arg7[%c0_273, %c0_274] : memref<32x16xf32, #tpu.memory_space<vmem>>, vector<32x16xf32>
    %c0_275 = arith.constant 0 : index
    %c0_276 = arith.constant 0 : index
    %364 = vector.load %arg8[%c0_275, %c0_276] : memref<1x16xf32, #tpu.memory_space<vmem>>, vector<1x16xf32>
    %c0_277 = arith.constant 0 : index
    %c0_278 = arith.constant 0 : index
    %c0_279 = arith.constant 0 : index
    %365 = vector.load %arg2[%c0_277, %c0_278, %c0_279] : memref<8x2x1xi32, #tpu.memory_space<vmem>>, vector<1x2x1xi32>
    %366 = vector.shape_cast %365 : vector<1x2x1xi32> to vector<2x1xi32>
    %cst_280 = arith.constant 0.000000e+00 : f32
    %367 = vector.broadcast %cst_280 : f32 to vector<2x16xf32>
    %368 = vector.broadcast %366 : vector<2x1xi32> to vector<2x16xi32>
    %369 = arith.cmpi eq, %362, %368 : vector<2x16xi32>
    %370 = arith.extui %369 : vector<2x16xi1> to vector<2x16xi32>
    %371 = arith.sitofp %370 : vector<2x16xi32> to vector<2x16xf32>
    %c0_281 = arith.constant 0 : index
    %c0_282 = arith.constant 0 : index
    %c0_283 = arith.constant 0 : index
    %372 = vector.load %arg5[%c0_281, %c0_282, %c0_283] : memref<4x16x32xf32, #tpu.memory_space<vmem>>, vector<1x16x32xf32>
    %373 = vector.shape_cast %372 : vector<1x16x32xf32> to vector<16x32xf32>
    %cst_284 = arith.constant dense<0.000000e+00> : vector<2x32xf32>
    %374 = tpu.matmul %371, %373, %cst_284 {dimension_numbers = #tpu.dot_dimension_numbers<[1], [0], [0], [1], [0, 0, 1, 1], [], []>} : vector<2x16xf32>, vector<16x32xf32>, vector<2x32xf32> -> vector<2x32xf32>
    %c1_285 = arith.constant 1 : index
    %c0_286 = arith.constant 0 : index
    %c0_287 = arith.constant 0 : index
    %375 = vector.load %arg5[%c1_285, %c0_286, %c0_287] : memref<4x16x32xf32, #tpu.memory_space<vmem>>, vector<1x16x32xf32>
    %376 = vector.shape_cast %375 : vector<1x16x32xf32> to vector<16x32xf32>
    %cst_288 = arith.constant dense<0.000000e+00> : vector<2x32xf32>
    %377 = tpu.matmul %371, %376, %cst_288 {dimension_numbers = #tpu.dot_dimension_numbers<[1], [0], [0], [1], [0, 0, 1, 1], [], []>} : vector<2x16xf32>, vector<16x32xf32>, vector<2x32xf32> -> vector<2x32xf32>
    %c2_289 = arith.constant 2 : index
    %c0_290 = arith.constant 0 : index
    %c0_291 = arith.constant 0 : index
    %378 = vector.load %arg5[%c2_289, %c0_290, %c0_291] : memref<4x16x32xf32, #tpu.memory_space<vmem>>, vector<1x16x32xf32>
    %379 = vector.shape_cast %378 : vector<1x16x32xf32> to vector<16x32xf32>
    %cst_292 = arith.constant dense<0.000000e+00> : vector<2x32xf32>
    %380 = tpu.matmul %371, %379, %cst_292 {dimension_numbers = #tpu.dot_dimension_numbers<[1], [0], [0], [1], [0, 0, 1, 1], [], []>} : vector<2x16xf32>, vector<16x32xf32>, vector<2x32xf32> -> vector<2x32xf32>
    %c3_293 = arith.constant 3 : index
    %c0_294 = arith.constant 0 : index
    %c0_295 = arith.constant 0 : index
    %381 = vector.load %arg5[%c3_293, %c0_294, %c0_295] : memref<4x16x32xf32, #tpu.memory_space<vmem>>, vector<1x16x32xf32>
    %382 = vector.shape_cast %381 : vector<1x16x32xf32> to vector<16x32xf32>
    %cst_296 = arith.constant dense<0.000000e+00> : vector<2x32xf32>
    %383 = tpu.matmul %371, %382, %cst_296 {dimension_numbers = #tpu.dot_dimension_numbers<[1], [0], [0], [1], [0, 0, 1, 1], [], []>} : vector<2x16xf32>, vector<16x32xf32>, vector<2x32xf32> -> vector<2x32xf32>
    %c0_297 = arith.constant 0 : index
    %c0_298 = arith.constant 0 : index
    %c0_299 = arith.constant 0 : index
    %384 = vector.load %arg6[%c0_297, %c0_298, %c0_299] : memref<4x32x32xf32, #tpu.memory_space<vmem>>, vector<1x32x32xf32>
    %385 = vector.shape_cast %384 : vector<1x32x32xf32> to vector<32x32xf32>
    %cst_300 = arith.constant dense<0.000000e+00> : vector<2x32xf32>
    %386 = tpu.matmul %361, %385, %cst_300 {dimension_numbers = #tpu.dot_dimension_numbers<[1], [0], [0], [1], [0, 0, 1, 1], [], []>} : vector<2x32xf32>, vector<32x32xf32>, vector<2x32xf32> -> vector<2x32xf32>
    %387 = arith.addf %374, %386 : vector<2x32xf32>
    %388 = arith.negf %387 : vector<2x32xf32>
    %389 = math.exp %388 : vector<2x32xf32>
    %cst_301 = arith.constant 1.000000e+00 : f32
    %390 = vector.broadcast %cst_301 : f32 to vector<2x32xf32>
    %391 = arith.addf %390, %389 : vector<2x32xf32>
    %392 = arith.divf %390, %391 : vector<2x32xf32>
    %c1_302 = arith.constant 1 : index
    %c0_303 = arith.constant 0 : index
    %c0_304 = arith.constant 0 : index
    %393 = vector.load %arg6[%c1_302, %c0_303, %c0_304] : memref<4x32x32xf32, #tpu.memory_space<vmem>>, vector<1x32x32xf32>
    %394 = vector.shape_cast %393 : vector<1x32x32xf32> to vector<32x32xf32>
    %cst_305 = arith.constant dense<0.000000e+00> : vector<2x32xf32>
    %395 = tpu.matmul %361, %394, %cst_305 {dimension_numbers = #tpu.dot_dimension_numbers<[1], [0], [0], [1], [0, 0, 1, 1], [], []>} : vector<2x32xf32>, vector<32x32xf32>, vector<2x32xf32> -> vector<2x32xf32>
    %396 = arith.addf %377, %395 : vector<2x32xf32>
    %397 = arith.negf %396 : vector<2x32xf32>
    %398 = math.exp %397 : vector<2x32xf32>
    %cst_306 = arith.constant 1.000000e+00 : f32
    %399 = vector.broadcast %cst_306 : f32 to vector<2x32xf32>
    %400 = arith.addf %399, %398 : vector<2x32xf32>
    %401 = arith.divf %399, %400 : vector<2x32xf32>
    %c2_307 = arith.constant 2 : index
    %c0_308 = arith.constant 0 : index
    %c0_309 = arith.constant 0 : index
    %402 = vector.load %arg6[%c2_307, %c0_308, %c0_309] : memref<4x32x32xf32, #tpu.memory_space<vmem>>, vector<1x32x32xf32>
    %403 = vector.shape_cast %402 : vector<1x32x32xf32> to vector<32x32xf32>
    %cst_310 = arith.constant dense<0.000000e+00> : vector<2x32xf32>
    %404 = tpu.matmul %361, %403, %cst_310 {dimension_numbers = #tpu.dot_dimension_numbers<[1], [0], [0], [1], [0, 0, 1, 1], [], []>} : vector<2x32xf32>, vector<32x32xf32>, vector<2x32xf32> -> vector<2x32xf32>
    %405 = arith.addf %380, %404 : vector<2x32xf32>
    %406 = math.tanh %405 : vector<2x32xf32>
    %c3_311 = arith.constant 3 : index
    %c0_312 = arith.constant 0 : index
    %c0_313 = arith.constant 0 : index
    %407 = vector.load %arg6[%c3_311, %c0_312, %c0_313] : memref<4x32x32xf32, #tpu.memory_space<vmem>>, vector<1x32x32xf32>
    %408 = vector.shape_cast %407 : vector<1x32x32xf32> to vector<32x32xf32>
    %cst_314 = arith.constant dense<0.000000e+00> : vector<2x32xf32>
    %409 = tpu.matmul %361, %408, %cst_314 {dimension_numbers = #tpu.dot_dimension_numbers<[1], [0], [0], [1], [0, 0, 1, 1], [], []>} : vector<2x32xf32>, vector<32x32xf32>, vector<2x32xf32> -> vector<2x32xf32>
    %410 = arith.addf %383, %409 : vector<2x32xf32>
    %411 = arith.negf %410 : vector<2x32xf32>
    %412 = math.exp %411 : vector<2x32xf32>
    %cst_315 = arith.constant 1.000000e+00 : f32
    %413 = vector.broadcast %cst_315 : f32 to vector<2x32xf32>
    %414 = arith.addf %413, %412 : vector<2x32xf32>
    %415 = arith.divf %413, %414 : vector<2x32xf32>
    %416 = arith.mulf %401, %359 : vector<2x32xf32>
    %417 = arith.mulf %392, %406 : vector<2x32xf32>
    %418 = arith.addf %416, %417 : vector<2x32xf32>
    %419 = math.tanh %418 : vector<2x32xf32>
    %420 = arith.mulf %415, %419 : vector<2x32xf32>
    %cst_316 = arith.constant dense<0.000000e+00> : vector<2x16xf32>
    %421 = tpu.matmul %420, %363, %cst_316 {dimension_numbers = #tpu.dot_dimension_numbers<[1], [0], [0], [1], [0, 0, 1, 1], [], []>} : vector<2x32xf32>, vector<32x16xf32>, vector<2x16xf32> -> vector<2x16xf32>
    %422 = vector.broadcast %364 : vector<1x16xf32> to vector<2x16xf32>
    %423 = arith.addf %421, %422 : vector<2x16xf32>
    %cst_317 = arith.constant dense<0xFF800000> : vector<2xf32>
    %424 = vector.multi_reduction <maximumf>, %423, %cst_317 [1] : vector<2x16xf32> to vector<2xf32>
    %425 = vector.shape_cast %424 : vector<2xf32> to vector<2x1xf32>
    %426 = vector.broadcast %425 : vector<2x1xf32> to vector<2x16xf32>
    %427 = arith.cmpf oeq, %423, %426 : vector<2x16xf32>
    %c16_i32 = arith.constant 16 : i32
    %428 = vector.broadcast %c16_i32 : i32 to vector<2x16xi32>
    %429 = arith.select %427, %362, %428 : vector<2x16xi1>, vector<2x16xi32>
    %cst_318 = arith.constant dense<2147483647> : vector<2xi32>
    %430 = vector.multi_reduction <minsi>, %429, %cst_318 [1] : vector<2x16xi32> to vector<2xi32>
    %431 = vector.shape_cast %430 : vector<2xi32> to vector<2x1xi32>
    %c1_319 = arith.constant 1 : index
    %432 = memref.load %arg1[%c1_319] : memref<8xi32, #tpu.memory_space<smem>>
    %c1_i32 = arith.constant 1 : i32
    %433 = arith.cmpi eq, %432, %c1_i32 : i32
    %c1_320 = arith.constant 1 : index
    %c0_321 = arith.constant 0 : index
    %c0_322 = arith.constant 0 : index
    %434 = vector.load %arg2[%c1_320, %c0_321, %c0_322] : memref<8x2x1xi32, #tpu.memory_space<vmem>>, vector<1x2x1xi32>
    %435 = vector.shape_cast %434 : vector<1x2x1xi32> to vector<2x1xi32>
    %436 = arith.select %433, %435, %431 : vector<2x1xi32>
    %437 = vector.broadcast %436 : vector<2x1xi32> to vector<2x16xi32>
    %438 = arith.cmpi eq, %362, %437 : vector<2x16xi32>
    %439 = arith.extui %438 : vector<2x16xi1> to vector<2x16xi32>
    %440 = arith.sitofp %439 : vector<2x16xi32> to vector<2x16xf32>
    %c0_323 = arith.constant 0 : index
    %c0_324 = arith.constant 0 : index
    %c0_325 = arith.constant 0 : index
    %441 = vector.load %arg5[%c0_323, %c0_324, %c0_325] : memref<4x16x32xf32, #tpu.memory_space<vmem>>, vector<1x16x32xf32>
    %442 = vector.shape_cast %441 : vector<1x16x32xf32> to vector<16x32xf32>
    %cst_326 = arith.constant dense<0.000000e+00> : vector<2x32xf32>
    %443 = tpu.matmul %440, %442, %cst_326 {dimension_numbers = #tpu.dot_dimension_numbers<[1], [0], [0], [1], [0, 0, 1, 1], [], []>} : vector<2x16xf32>, vector<16x32xf32>, vector<2x32xf32> -> vector<2x32xf32>
    %c1_327 = arith.constant 1 : index
    %c0_328 = arith.constant 0 : index
    %c0_329 = arith.constant 0 : index
    %444 = vector.load %arg5[%c1_327, %c0_328, %c0_329] : memref<4x16x32xf32, #tpu.memory_space<vmem>>, vector<1x16x32xf32>
    %445 = vector.shape_cast %444 : vector<1x16x32xf32> to vector<16x32xf32>
    %cst_330 = arith.constant dense<0.000000e+00> : vector<2x32xf32>
    %446 = tpu.matmul %440, %445, %cst_330 {dimension_numbers = #tpu.dot_dimension_numbers<[1], [0], [0], [1], [0, 0, 1, 1], [], []>} : vector<2x16xf32>, vector<16x32xf32>, vector<2x32xf32> -> vector<2x32xf32>
    %c2_331 = arith.constant 2 : index
    %c0_332 = arith.constant 0 : index
    %c0_333 = arith.constant 0 : index
    %447 = vector.load %arg5[%c2_331, %c0_332, %c0_333] : memref<4x16x32xf32, #tpu.memory_space<vmem>>, vector<1x16x32xf32>
    %448 = vector.shape_cast %447 : vector<1x16x32xf32> to vector<16x32xf32>
    %cst_334 = arith.constant dense<0.000000e+00> : vector<2x32xf32>
    %449 = tpu.matmul %440, %448, %cst_334 {dimension_numbers = #tpu.dot_dimension_numbers<[1], [0], [0], [1], [0, 0, 1, 1], [], []>} : vector<2x16xf32>, vector<16x32xf32>, vector<2x32xf32> -> vector<2x32xf32>
    %c3_335 = arith.constant 3 : index
    %c0_336 = arith.constant 0 : index
    %c0_337 = arith.constant 0 : index
    %450 = vector.load %arg5[%c3_335, %c0_336, %c0_337] : memref<4x16x32xf32, #tpu.memory_space<vmem>>, vector<1x16x32xf32>
    %451 = vector.shape_cast %450 : vector<1x16x32xf32> to vector<16x32xf32>
    %cst_338 = arith.constant dense<0.000000e+00> : vector<2x32xf32>
    %452 = tpu.matmul %440, %451, %cst_338 {dimension_numbers = #tpu.dot_dimension_numbers<[1], [0], [0], [1], [0, 0, 1, 1], [], []>} : vector<2x16xf32>, vector<16x32xf32>, vector<2x32xf32> -> vector<2x32xf32>
    %c0_339 = arith.constant 0 : index
    %c0_340 = arith.constant 0 : index
    %c0_341 = arith.constant 0 : index
    %453 = vector.load %arg6[%c0_339, %c0_340, %c0_341] : memref<4x32x32xf32, #tpu.memory_space<vmem>>, vector<1x32x32xf32>
    %454 = vector.shape_cast %453 : vector<1x32x32xf32> to vector<32x32xf32>
    %cst_342 = arith.constant dense<0.000000e+00> : vector<2x32xf32>
    %455 = tpu.matmul %420, %454, %cst_342 {dimension_numbers = #tpu.dot_dimension_numbers<[1], [0], [0], [1], [0, 0, 1, 1], [], []>} : vector<2x32xf32>, vector<32x32xf32>, vector<2x32xf32> -> vector<2x32xf32>
    %456 = arith.addf %443, %455 : vector<2x32xf32>
    %457 = arith.negf %456 : vector<2x32xf32>
    %458 = math.exp %457 : vector<2x32xf32>
    %cst_343 = arith.constant 1.000000e+00 : f32
    %459 = vector.broadcast %cst_343 : f32 to vector<2x32xf32>
    %460 = arith.addf %459, %458 : vector<2x32xf32>
    %461 = arith.divf %459, %460 : vector<2x32xf32>
    %c1_344 = arith.constant 1 : index
    %c0_345 = arith.constant 0 : index
    %c0_346 = arith.constant 0 : index
    %462 = vector.load %arg6[%c1_344, %c0_345, %c0_346] : memref<4x32x32xf32, #tpu.memory_space<vmem>>, vector<1x32x32xf32>
    %463 = vector.shape_cast %462 : vector<1x32x32xf32> to vector<32x32xf32>
    %cst_347 = arith.constant dense<0.000000e+00> : vector<2x32xf32>
    %464 = tpu.matmul %420, %463, %cst_347 {dimension_numbers = #tpu.dot_dimension_numbers<[1], [0], [0], [1], [0, 0, 1, 1], [], []>} : vector<2x32xf32>, vector<32x32xf32>, vector<2x32xf32> -> vector<2x32xf32>
    %465 = arith.addf %446, %464 : vector<2x32xf32>
    %466 = arith.negf %465 : vector<2x32xf32>
    %467 = math.exp %466 : vector<2x32xf32>
    %cst_348 = arith.constant 1.000000e+00 : f32
    %468 = vector.broadcast %cst_348 : f32 to vector<2x32xf32>
    %469 = arith.addf %468, %467 : vector<2x32xf32>
    %470 = arith.divf %468, %469 : vector<2x32xf32>
    %c2_349 = arith.constant 2 : index
    %c0_350 = arith.constant 0 : index
    %c0_351 = arith.constant 0 : index
    %471 = vector.load %arg6[%c2_349, %c0_350, %c0_351] : memref<4x32x32xf32, #tpu.memory_space<vmem>>, vector<1x32x32xf32>
    %472 = vector.shape_cast %471 : vector<1x32x32xf32> to vector<32x32xf32>
    %cst_352 = arith.constant dense<0.000000e+00> : vector<2x32xf32>
    %473 = tpu.matmul %420, %472, %cst_352 {dimension_numbers = #tpu.dot_dimension_numbers<[1], [0], [0], [1], [0, 0, 1, 1], [], []>} : vector<2x32xf32>, vector<32x32xf32>, vector<2x32xf32> -> vector<2x32xf32>
    %474 = arith.addf %449, %473 : vector<2x32xf32>
    %475 = math.tanh %474 : vector<2x32xf32>
    %c3_353 = arith.constant 3 : index
    %c0_354 = arith.constant 0 : index
    %c0_355 = arith.constant 0 : index
    %476 = vector.load %arg6[%c3_353, %c0_354, %c0_355] : memref<4x32x32xf32, #tpu.memory_space<vmem>>, vector<1x32x32xf32>
    %477 = vector.shape_cast %476 : vector<1x32x32xf32> to vector<32x32xf32>
    %cst_356 = arith.constant dense<0.000000e+00> : vector<2x32xf32>
    %478 = tpu.matmul %420, %477, %cst_356 {dimension_numbers = #tpu.dot_dimension_numbers<[1], [0], [0], [1], [0, 0, 1, 1], [], []>} : vector<2x32xf32>, vector<32x32xf32>, vector<2x32xf32> -> vector<2x32xf32>
    %479 = arith.addf %452, %478 : vector<2x32xf32>
    %480 = arith.negf %479 : vector<2x32xf32>
    %481 = math.exp %480 : vector<2x32xf32>
    %cst_357 = arith.constant 1.000000e+00 : f32
    %482 = vector.broadcast %cst_357 : f32 to vector<2x32xf32>
    %483 = arith.addf %482, %481 : vector<2x32xf32>
    %484 = arith.divf %482, %483 : vector<2x32xf32>
    %485 = arith.mulf %470, %418 : vector<2x32xf32>
    %486 = arith.mulf %461, %475 : vector<2x32xf32>
    %487 = arith.addf %485, %486 : vector<2x32xf32>
    %488 = math.tanh %487 : vector<2x32xf32>
    %489 = arith.mulf %484, %488 : vector<2x32xf32>
    %cst_358 = arith.constant dense<0.000000e+00> : vector<2x16xf32>
    %490 = tpu.matmul %489, %363, %cst_358 {dimension_numbers = #tpu.dot_dimension_numbers<[1], [0], [0], [1], [0, 0, 1, 1], [], []>} : vector<2x32xf32>, vector<32x16xf32>, vector<2x16xf32> -> vector<2x16xf32>
    %491 = vector.broadcast %364 : vector<1x16xf32> to vector<2x16xf32>
    %492 = arith.addf %490, %491 : vector<2x16xf32>
    %cst_359 = arith.constant dense<0xFF800000> : vector<2xf32>
    %493 = vector.multi_reduction <maximumf>, %492, %cst_359 [1] : vector<2x16xf32> to vector<2xf32>
    %494 = vector.shape_cast %493 : vector<2xf32> to vector<2x1xf32>
    %495 = vector.broadcast %494 : vector<2x1xf32> to vector<2x16xf32>
    %496 = arith.cmpf oeq, %492, %495 : vector<2x16xf32>
    %c16_i32_360 = arith.constant 16 : i32
    %497 = vector.broadcast %c16_i32_360 : i32 to vector<2x16xi32>
    %498 = arith.select %496, %362, %497 : vector<2x16xi1>, vector<2x16xi32>
    %cst_361 = arith.constant dense<2147483647> : vector<2xi32>
    %499 = vector.multi_reduction <minsi>, %498, %cst_361 [1] : vector<2x16xi32> to vector<2xi32>
    %500 = vector.shape_cast %499 : vector<2xi32> to vector<2x1xi32>
    %c2_362 = arith.constant 2 : index
    %501 = memref.load %arg1[%c2_362] : memref<8xi32, #tpu.memory_space<smem>>
    %c1_i32_363 = arith.constant 1 : i32
    %502 = arith.cmpi eq, %501, %c1_i32_363 : i32
    %c2_364 = arith.constant 2 : index
    %c0_365 = arith.constant 0 : index
    %c0_366 = arith.constant 0 : index
    %503 = vector.load %arg2[%c2_364, %c0_365, %c0_366] : memref<8x2x1xi32, #tpu.memory_space<vmem>>, vector<1x2x1xi32>
    %504 = vector.shape_cast %503 : vector<1x2x1xi32> to vector<2x1xi32>
    %505 = arith.select %502, %504, %500 : vector<2x1xi32>
    %506 = vector.broadcast %505 : vector<2x1xi32> to vector<2x16xi32>
    %507 = arith.cmpi eq, %362, %506 : vector<2x16xi32>
    %508 = arith.extui %507 : vector<2x16xi1> to vector<2x16xi32>
    %509 = arith.sitofp %508 : vector<2x16xi32> to vector<2x16xf32>
    %c0_367 = arith.constant 0 : index
    %c0_368 = arith.constant 0 : index
    %c0_369 = arith.constant 0 : index
    %510 = vector.load %arg5[%c0_367, %c0_368, %c0_369] : memref<4x16x32xf32, #tpu.memory_space<vmem>>, vector<1x16x32xf32>
    %511 = vector.shape_cast %510 : vector<1x16x32xf32> to vector<16x32xf32>
    %cst_370 = arith.constant dense<0.000000e+00> : vector<2x32xf32>
    %512 = tpu.matmul %509, %511, %cst_370 {dimension_numbers = #tpu.dot_dimension_numbers<[1], [0], [0], [1], [0, 0, 1, 1], [], []>} : vector<2x16xf32>, vector<16x32xf32>, vector<2x32xf32> -> vector<2x32xf32>
    %c1_371 = arith.constant 1 : index
    %c0_372 = arith.constant 0 : index
    %c0_373 = arith.constant 0 : index
    %513 = vector.load %arg5[%c1_371, %c0_372, %c0_373] : memref<4x16x32xf32, #tpu.memory_space<vmem>>, vector<1x16x32xf32>
    %514 = vector.shape_cast %513 : vector<1x16x32xf32> to vector<16x32xf32>
    %cst_374 = arith.constant dense<0.000000e+00> : vector<2x32xf32>
    %515 = tpu.matmul %509, %514, %cst_374 {dimension_numbers = #tpu.dot_dimension_numbers<[1], [0], [0], [1], [0, 0, 1, 1], [], []>} : vector<2x16xf32>, vector<16x32xf32>, vector<2x32xf32> -> vector<2x32xf32>
    %c2_375 = arith.constant 2 : index
    %c0_376 = arith.constant 0 : index
    %c0_377 = arith.constant 0 : index
    %516 = vector.load %arg5[%c2_375, %c0_376, %c0_377] : memref<4x16x32xf32, #tpu.memory_space<vmem>>, vector<1x16x32xf32>
    %517 = vector.shape_cast %516 : vector<1x16x32xf32> to vector<16x32xf32>
    %cst_378 = arith.constant dense<0.000000e+00> : vector<2x32xf32>
    %518 = tpu.matmul %509, %517, %cst_378 {dimension_numbers = #tpu.dot_dimension_numbers<[1], [0], [0], [1], [0, 0, 1, 1], [], []>} : vector<2x16xf32>, vector<16x32xf32>, vector<2x32xf32> -> vector<2x32xf32>
    %c3_379 = arith.constant 3 : index
    %c0_380 = arith.constant 0 : index
    %c0_381 = arith.constant 0 : index
    %519 = vector.load %arg5[%c3_379, %c0_380, %c0_381] : memref<4x16x32xf32, #tpu.memory_space<vmem>>, vector<1x16x32xf32>
    %520 = vector.shape_cast %519 : vector<1x16x32xf32> to vector<16x32xf32>
    %cst_382 = arith.constant dense<0.000000e+00> : vector<2x32xf32>
    %521 = tpu.matmul %509, %520, %cst_382 {dimension_numbers = #tpu.dot_dimension_numbers<[1], [0], [0], [1], [0, 0, 1, 1], [], []>} : vector<2x16xf32>, vector<16x32xf32>, vector<2x32xf32> -> vector<2x32xf32>
    %c0_383 = arith.constant 0 : index
    %c0_384 = arith.constant 0 : index
    %c0_385 = arith.constant 0 : index
    %522 = vector.load %arg6[%c0_383, %c0_384, %c0_385] : memref<4x32x32xf32, #tpu.memory_space<vmem>>, vector<1x32x32xf32>
    %523 = vector.shape_cast %522 : vector<1x32x32xf32> to vector<32x32xf32>
    %cst_386 = arith.constant dense<0.000000e+00> : vector<2x32xf32>
    %524 = tpu.matmul %489, %523, %cst_386 {dimension_numbers = #tpu.dot_dimension_numbers<[1], [0], [0], [1], [0, 0, 1, 1], [], []>} : vector<2x32xf32>, vector<32x32xf32>, vector<2x32xf32> -> vector<2x32xf32>
    %525 = arith.addf %512, %524 : vector<2x32xf32>
    %526 = arith.negf %525 : vector<2x32xf32>
    %527 = math.exp %526 : vector<2x32xf32>
    %cst_387 = arith.constant 1.000000e+00 : f32
    %528 = vector.broadcast %cst_387 : f32 to vector<2x32xf32>
    %529 = arith.addf %528, %527 : vector<2x32xf32>
    %530 = arith.divf %528, %529 : vector<2x32xf32>
    %c1_388 = arith.constant 1 : index
    %c0_389 = arith.constant 0 : index
    %c0_390 = arith.constant 0 : index
    %531 = vector.load %arg6[%c1_388, %c0_389, %c0_390] : memref<4x32x32xf32, #tpu.memory_space<vmem>>, vector<1x32x32xf32>
    %532 = vector.shape_cast %531 : vector<1x32x32xf32> to vector<32x32xf32>
    %cst_391 = arith.constant dense<0.000000e+00> : vector<2x32xf32>
    %533 = tpu.matmul %489, %532, %cst_391 {dimension_numbers = #tpu.dot_dimension_numbers<[1], [0], [0], [1], [0, 0, 1, 1], [], []>} : vector<2x32xf32>, vector<32x32xf32>, vector<2x32xf32> -> vector<2x32xf32>
    %534 = arith.addf %515, %533 : vector<2x32xf32>
    %535 = arith.negf %534 : vector<2x32xf32>
    %536 = math.exp %535 : vector<2x32xf32>
    %cst_392 = arith.constant 1.000000e+00 : f32
    %537 = vector.broadcast %cst_392 : f32 to vector<2x32xf32>
    %538 = arith.addf %537, %536 : vector<2x32xf32>
    %539 = arith.divf %537, %538 : vector<2x32xf32>
    %c2_393 = arith.constant 2 : index
    %c0_394 = arith.constant 0 : index
    %c0_395 = arith.constant 0 : index
    %540 = vector.load %arg6[%c2_393, %c0_394, %c0_395] : memref<4x32x32xf32, #tpu.memory_space<vmem>>, vector<1x32x32xf32>
    %541 = vector.shape_cast %540 : vector<1x32x32xf32> to vector<32x32xf32>
    %cst_396 = arith.constant dense<0.000000e+00> : vector<2x32xf32>
    %542 = tpu.matmul %489, %541, %cst_396 {dimension_numbers = #tpu.dot_dimension_numbers<[1], [0], [0], [1], [0, 0, 1, 1], [], []>} : vector<2x32xf32>, vector<32x32xf32>, vector<2x32xf32> -> vector<2x32xf32>
    %543 = arith.addf %518, %542 : vector<2x32xf32>
    %544 = math.tanh %543 : vector<2x32xf32>
    %c3_397 = arith.constant 3 : index
    %c0_398 = arith.constant 0 : index
    %c0_399 = arith.constant 0 : index
    %545 = vector.load %arg6[%c3_397, %c0_398, %c0_399] : memref<4x32x32xf32, #tpu.memory_space<vmem>>, vector<1x32x32xf32>
    %546 = vector.shape_cast %545 : vector<1x32x32xf32> to vector<32x32xf32>
    %cst_400 = arith.constant dense<0.000000e+00> : vector<2x32xf32>
    %547 = tpu.matmul %489, %546, %cst_400 {dimension_numbers = #tpu.dot_dimension_numbers<[1], [0], [0], [1], [0, 0, 1, 1], [], []>} : vector<2x32xf32>, vector<32x32xf32>, vector<2x32xf32> -> vector<2x32xf32>
    %548 = arith.addf %521, %547 : vector<2x32xf32>
    %549 = arith.negf %548 : vector<2x32xf32>
    %550 = math.exp %549 : vector<2x32xf32>
    %cst_401 = arith.constant 1.000000e+00 : f32
    %551 = vector.broadcast %cst_401 : f32 to vector<2x32xf32>
    %552 = arith.addf %551, %550 : vector<2x32xf32>
    %553 = arith.divf %551, %552 : vector<2x32xf32>
    %554 = arith.mulf %539, %487 : vector<2x32xf32>
    %555 = arith.mulf %530, %544 : vector<2x32xf32>
    %556 = arith.addf %554, %555 : vector<2x32xf32>
    %557 = math.tanh %556 : vector<2x32xf32>
    %558 = arith.mulf %553, %557 : vector<2x32xf32>
    %cst_402 = arith.constant dense<0.000000e+00> : vector<2x16xf32>
    %559 = tpu.matmul %558, %363, %cst_402 {dimension_numbers = #tpu.dot_dimension_numbers<[1], [0], [0], [1], [0, 0, 1, 1], [], []>} : vector<2x32xf32>, vector<32x16xf32>, vector<2x16xf32> -> vector<2x16xf32>
    %560 = vector.broadcast %364 : vector<1x16xf32> to vector<2x16xf32>
    %561 = arith.addf %559, %560 : vector<2x16xf32>
    %cst_403 = arith.constant dense<0xFF800000> : vector<2xf32>
    %562 = vector.multi_reduction <maximumf>, %561, %cst_403 [1] : vector<2x16xf32> to vector<2xf32>
    %563 = vector.shape_cast %562 : vector<2xf32> to vector<2x1xf32>
    %564 = vector.broadcast %563 : vector<2x1xf32> to vector<2x16xf32>
    %565 = arith.cmpf oeq, %561, %564 : vector<2x16xf32>
    %c16_i32_404 = arith.constant 16 : i32
    %566 = vector.broadcast %c16_i32_404 : i32 to vector<2x16xi32>
    %567 = arith.select %565, %362, %566 : vector<2x16xi1>, vector<2x16xi32>
    %cst_405 = arith.constant dense<2147483647> : vector<2xi32>
    %568 = vector.multi_reduction <minsi>, %567, %cst_405 [1] : vector<2x16xi32> to vector<2xi32>
    %569 = vector.shape_cast %568 : vector<2xi32> to vector<2x1xi32>
    %c3_406 = arith.constant 3 : index
    %570 = memref.load %arg1[%c3_406] : memref<8xi32, #tpu.memory_space<smem>>
    %c1_i32_407 = arith.constant 1 : i32
    %571 = arith.cmpi eq, %570, %c1_i32_407 : i32
    %c3_408 = arith.constant 3 : index
    %c0_409 = arith.constant 0 : index
    %c0_410 = arith.constant 0 : index
    %572 = vector.load %arg2[%c3_408, %c0_409, %c0_410] : memref<8x2x1xi32, #tpu.memory_space<vmem>>, vector<1x2x1xi32>
    %573 = vector.shape_cast %572 : vector<1x2x1xi32> to vector<2x1xi32>
    %574 = arith.select %571, %573, %569 : vector<2x1xi32>
    %575 = vector.broadcast %574 : vector<2x1xi32> to vector<2x16xi32>
    %576 = arith.cmpi eq, %362, %575 : vector<2x16xi32>
    %577 = arith.extui %576 : vector<2x16xi1> to vector<2x16xi32>
    %578 = arith.sitofp %577 : vector<2x16xi32> to vector<2x16xf32>
    %c0_411 = arith.constant 0 : index
    %c0_412 = arith.constant 0 : index
    %c0_413 = arith.constant 0 : index
    %579 = vector.load %arg5[%c0_411, %c0_412, %c0_413] : memref<4x16x32xf32, #tpu.memory_space<vmem>>, vector<1x16x32xf32>
    %580 = vector.shape_cast %579 : vector<1x16x32xf32> to vector<16x32xf32>
    %cst_414 = arith.constant dense<0.000000e+00> : vector<2x32xf32>
    %581 = tpu.matmul %578, %580, %cst_414 {dimension_numbers = #tpu.dot_dimension_numbers<[1], [0], [0], [1], [0, 0, 1, 1], [], []>} : vector<2x16xf32>, vector<16x32xf32>, vector<2x32xf32> -> vector<2x32xf32>
    %c1_415 = arith.constant 1 : index
    %c0_416 = arith.constant 0 : index
    %c0_417 = arith.constant 0 : index
    %582 = vector.load %arg5[%c1_415, %c0_416, %c0_417] : memref<4x16x32xf32, #tpu.memory_space<vmem>>, vector<1x16x32xf32>
    %583 = vector.shape_cast %582 : vector<1x16x32xf32> to vector<16x32xf32>
    %cst_418 = arith.constant dense<0.000000e+00> : vector<2x32xf32>
    %584 = tpu.matmul %578, %583, %cst_418 {dimension_numbers = #tpu.dot_dimension_numbers<[1], [0], [0], [1], [0, 0, 1, 1], [], []>} : vector<2x16xf32>, vector<16x32xf32>, vector<2x32xf32> -> vector<2x32xf32>
    %c2_419 = arith.constant 2 : index
    %c0_420 = arith.constant 0 : index
    %c0_421 = arith.constant 0 : index
    %585 = vector.load %arg5[%c2_419, %c0_420, %c0_421] : memref<4x16x32xf32, #tpu.memory_space<vmem>>, vector<1x16x32xf32>
    %586 = vector.shape_cast %585 : vector<1x16x32xf32> to vector<16x32xf32>
    %cst_422 = arith.constant dense<0.000000e+00> : vector<2x32xf32>
    %587 = tpu.matmul %578, %586, %cst_422 {dimension_numbers = #tpu.dot_dimension_numbers<[1], [0], [0], [1], [0, 0, 1, 1], [], []>} : vector<2x16xf32>, vector<16x32xf32>, vector<2x32xf32> -> vector<2x32xf32>
    %c3_423 = arith.constant 3 : index
    %c0_424 = arith.constant 0 : index
    %c0_425 = arith.constant 0 : index
    %588 = vector.load %arg5[%c3_423, %c0_424, %c0_425] : memref<4x16x32xf32, #tpu.memory_space<vmem>>, vector<1x16x32xf32>
    %589 = vector.shape_cast %588 : vector<1x16x32xf32> to vector<16x32xf32>
    %cst_426 = arith.constant dense<0.000000e+00> : vector<2x32xf32>
    %590 = tpu.matmul %578, %589, %cst_426 {dimension_numbers = #tpu.dot_dimension_numbers<[1], [0], [0], [1], [0, 0, 1, 1], [], []>} : vector<2x16xf32>, vector<16x32xf32>, vector<2x32xf32> -> vector<2x32xf32>
    %c0_427 = arith.constant 0 : index
    %c0_428 = arith.constant 0 : index
    %c0_429 = arith.constant 0 : index
    %591 = vector.load %arg6[%c0_427, %c0_428, %c0_429] : memref<4x32x32xf32, #tpu.memory_space<vmem>>, vector<1x32x32xf32>
    %592 = vector.shape_cast %591 : vector<1x32x32xf32> to vector<32x32xf32>
    %cst_430 = arith.constant dense<0.000000e+00> : vector<2x32xf32>
    %593 = tpu.matmul %558, %592, %cst_430 {dimension_numbers = #tpu.dot_dimension_numbers<[1], [0], [0], [1], [0, 0, 1, 1], [], []>} : vector<2x32xf32>, vector<32x32xf32>, vector<2x32xf32> -> vector<2x32xf32>
    %594 = arith.addf %581, %593 : vector<2x32xf32>
    %595 = arith.negf %594 : vector<2x32xf32>
    %596 = math.exp %595 : vector<2x32xf32>
    %cst_431 = arith.constant 1.000000e+00 : f32
    %597 = vector.broadcast %cst_431 : f32 to vector<2x32xf32>
    %598 = arith.addf %597, %596 : vector<2x32xf32>
    %599 = arith.divf %597, %598 : vector<2x32xf32>
    %c1_432 = arith.constant 1 : index
    %c0_433 = arith.constant 0 : index
    %c0_434 = arith.constant 0 : index
    %600 = vector.load %arg6[%c1_432, %c0_433, %c0_434] : memref<4x32x32xf32, #tpu.memory_space<vmem>>, vector<1x32x32xf32>
    %601 = vector.shape_cast %600 : vector<1x32x32xf32> to vector<32x32xf32>
    %cst_435 = arith.constant dense<0.000000e+00> : vector<2x32xf32>
    %602 = tpu.matmul %558, %601, %cst_435 {dimension_numbers = #tpu.dot_dimension_numbers<[1], [0], [0], [1], [0, 0, 1, 1], [], []>} : vector<2x32xf32>, vector<32x32xf32>, vector<2x32xf32> -> vector<2x32xf32>
    %603 = arith.addf %584, %602 : vector<2x32xf32>
    %604 = arith.negf %603 : vector<2x32xf32>
    %605 = math.exp %604 : vector<2x32xf32>
    %cst_436 = arith.constant 1.000000e+00 : f32
    %606 = vector.broadcast %cst_436 : f32 to vector<2x32xf32>
    %607 = arith.addf %606, %605 : vector<2x32xf32>
    %608 = arith.divf %606, %607 : vector<2x32xf32>
    %c2_437 = arith.constant 2 : index
    %c0_438 = arith.constant 0 : index
    %c0_439 = arith.constant 0 : index
    %609 = vector.load %arg6[%c2_437, %c0_438, %c0_439] : memref<4x32x32xf32, #tpu.memory_space<vmem>>, vector<1x32x32xf32>
    %610 = vector.shape_cast %609 : vector<1x32x32xf32> to vector<32x32xf32>
    %cst_440 = arith.constant dense<0.000000e+00> : vector<2x32xf32>
    %611 = tpu.matmul %558, %610, %cst_440 {dimension_numbers = #tpu.dot_dimension_numbers<[1], [0], [0], [1], [0, 0, 1, 1], [], []>} : vector<2x32xf32>, vector<32x32xf32>, vector<2x32xf32> -> vector<2x32xf32>
    %612 = arith.addf %587, %611 : vector<2x32xf32>
    %613 = math.tanh %612 : vector<2x32xf32>
    %c3_441 = arith.constant 3 : index
    %c0_442 = arith.constant 0 : index
    %c0_443 = arith.constant 0 : index
    %614 = vector.load %arg6[%c3_441, %c0_442, %c0_443] : memref<4x32x32xf32, #tpu.memory_space<vmem>>, vector<1x32x32xf32>
    %615 = vector.shape_cast %614 : vector<1x32x32xf32> to vector<32x32xf32>
    %cst_444 = arith.constant dense<0.000000e+00> : vector<2x32xf32>
    %616 = tpu.matmul %558, %615, %cst_444 {dimension_numbers = #tpu.dot_dimension_numbers<[1], [0], [0], [1], [0, 0, 1, 1], [], []>} : vector<2x32xf32>, vector<32x32xf32>, vector<2x32xf32> -> vector<2x32xf32>
    %617 = arith.addf %590, %616 : vector<2x32xf32>
    %618 = arith.negf %617 : vector<2x32xf32>
    %619 = math.exp %618 : vector<2x32xf32>
    %cst_445 = arith.constant 1.000000e+00 : f32
    %620 = vector.broadcast %cst_445 : f32 to vector<2x32xf32>
    %621 = arith.addf %620, %619 : vector<2x32xf32>
    %622 = arith.divf %620, %621 : vector<2x32xf32>
    %623 = arith.mulf %608, %556 : vector<2x32xf32>
    %624 = arith.mulf %599, %613 : vector<2x32xf32>
    %625 = arith.addf %623, %624 : vector<2x32xf32>
    %626 = math.tanh %625 : vector<2x32xf32>
    %627 = arith.mulf %622, %626 : vector<2x32xf32>
    %cst_446 = arith.constant dense<0.000000e+00> : vector<2x16xf32>
    %628 = tpu.matmul %627, %363, %cst_446 {dimension_numbers = #tpu.dot_dimension_numbers<[1], [0], [0], [1], [0, 0, 1, 1], [], []>} : vector<2x32xf32>, vector<32x16xf32>, vector<2x16xf32> -> vector<2x16xf32>
    %629 = vector.broadcast %364 : vector<1x16xf32> to vector<2x16xf32>
    %630 = arith.addf %628, %629 : vector<2x16xf32>
    %cst_447 = arith.constant dense<0xFF800000> : vector<2xf32>
    %631 = vector.multi_reduction <maximumf>, %630, %cst_447 [1] : vector<2x16xf32> to vector<2xf32>
    %632 = vector.shape_cast %631 : vector<2xf32> to vector<2x1xf32>
    %633 = vector.broadcast %632 : vector<2x1xf32> to vector<2x16xf32>
    %634 = arith.cmpf oeq, %630, %633 : vector<2x16xf32>
    %c16_i32_448 = arith.constant 16 : i32
    %635 = vector.broadcast %c16_i32_448 : i32 to vector<2x16xi32>
    %636 = arith.select %634, %362, %635 : vector<2x16xi1>, vector<2x16xi32>
    %cst_449 = arith.constant dense<2147483647> : vector<2xi32>
    %637 = vector.multi_reduction <minsi>, %636, %cst_449 [1] : vector<2x16xi32> to vector<2xi32>
    %638 = vector.shape_cast %637 : vector<2xi32> to vector<2x1xi32>
    %c4_450 = arith.constant 4 : index
    %639 = memref.load %arg1[%c4_450] : memref<8xi32, #tpu.memory_space<smem>>
    %c1_i32_451 = arith.constant 1 : i32
    %640 = arith.cmpi eq, %639, %c1_i32_451 : i32
    %c4_452 = arith.constant 4 : index
    %c0_453 = arith.constant 0 : index
    %c0_454 = arith.constant 0 : index
    %641 = vector.load %arg2[%c4_452, %c0_453, %c0_454] : memref<8x2x1xi32, #tpu.memory_space<vmem>>, vector<1x2x1xi32>
    %642 = vector.shape_cast %641 : vector<1x2x1xi32> to vector<2x1xi32>
    %643 = arith.select %640, %642, %638 : vector<2x1xi32>
    %644 = vector.broadcast %643 : vector<2x1xi32> to vector<2x16xi32>
    %645 = arith.cmpi eq, %362, %644 : vector<2x16xi32>
    %646 = arith.extui %645 : vector<2x16xi1> to vector<2x16xi32>
    %647 = arith.sitofp %646 : vector<2x16xi32> to vector<2x16xf32>
    %c0_455 = arith.constant 0 : index
    %c0_456 = arith.constant 0 : index
    %c0_457 = arith.constant 0 : index
    %648 = vector.load %arg5[%c0_455, %c0_456, %c0_457] : memref<4x16x32xf32, #tpu.memory_space<vmem>>, vector<1x16x32xf32>
    %649 = vector.shape_cast %648 : vector<1x16x32xf32> to vector<16x32xf32>
    %cst_458 = arith.constant dense<0.000000e+00> : vector<2x32xf32>
    %650 = tpu.matmul %647, %649, %cst_458 {dimension_numbers = #tpu.dot_dimension_numbers<[1], [0], [0], [1], [0, 0, 1, 1], [], []>} : vector<2x16xf32>, vector<16x32xf32>, vector<2x32xf32> -> vector<2x32xf32>
    %c1_459 = arith.constant 1 : index
    %c0_460 = arith.constant 0 : index
    %c0_461 = arith.constant 0 : index
    %651 = vector.load %arg5[%c1_459, %c0_460, %c0_461] : memref<4x16x32xf32, #tpu.memory_space<vmem>>, vector<1x16x32xf32>
    %652 = vector.shape_cast %651 : vector<1x16x32xf32> to vector<16x32xf32>
    %cst_462 = arith.constant dense<0.000000e+00> : vector<2x32xf32>
    %653 = tpu.matmul %647, %652, %cst_462 {dimension_numbers = #tpu.dot_dimension_numbers<[1], [0], [0], [1], [0, 0, 1, 1], [], []>} : vector<2x16xf32>, vector<16x32xf32>, vector<2x32xf32> -> vector<2x32xf32>
    %c2_463 = arith.constant 2 : index
    %c0_464 = arith.constant 0 : index
    %c0_465 = arith.constant 0 : index
    %654 = vector.load %arg5[%c2_463, %c0_464, %c0_465] : memref<4x16x32xf32, #tpu.memory_space<vmem>>, vector<1x16x32xf32>
    %655 = vector.shape_cast %654 : vector<1x16x32xf32> to vector<16x32xf32>
    %cst_466 = arith.constant dense<0.000000e+00> : vector<2x32xf32>
    %656 = tpu.matmul %647, %655, %cst_466 {dimension_numbers = #tpu.dot_dimension_numbers<[1], [0], [0], [1], [0, 0, 1, 1], [], []>} : vector<2x16xf32>, vector<16x32xf32>, vector<2x32xf32> -> vector<2x32xf32>
    %c3_467 = arith.constant 3 : index
    %c0_468 = arith.constant 0 : index
    %c0_469 = arith.constant 0 : index
    %657 = vector.load %arg5[%c3_467, %c0_468, %c0_469] : memref<4x16x32xf32, #tpu.memory_space<vmem>>, vector<1x16x32xf32>
    %658 = vector.shape_cast %657 : vector<1x16x32xf32> to vector<16x32xf32>
    %cst_470 = arith.constant dense<0.000000e+00> : vector<2x32xf32>
    %659 = tpu.matmul %647, %658, %cst_470 {dimension_numbers = #tpu.dot_dimension_numbers<[1], [0], [0], [1], [0, 0, 1, 1], [], []>} : vector<2x16xf32>, vector<16x32xf32>, vector<2x32xf32> -> vector<2x32xf32>
    %c0_471 = arith.constant 0 : index
    %c0_472 = arith.constant 0 : index
    %c0_473 = arith.constant 0 : index
    %660 = vector.load %arg6[%c0_471, %c0_472, %c0_473] : memref<4x32x32xf32, #tpu.memory_space<vmem>>, vector<1x32x32xf32>
    %661 = vector.shape_cast %660 : vector<1x32x32xf32> to vector<32x32xf32>
    %cst_474 = arith.constant dense<0.000000e+00> : vector<2x32xf32>
    %662 = tpu.matmul %627, %661, %cst_474 {dimension_numbers = #tpu.dot_dimension_numbers<[1], [0], [0], [1], [0, 0, 1, 1], [], []>} : vector<2x32xf32>, vector<32x32xf32>, vector<2x32xf32> -> vector<2x32xf32>
    %663 = arith.addf %650, %662 : vector<2x32xf32>
    %664 = arith.negf %663 : vector<2x32xf32>
    %665 = math.exp %664 : vector<2x32xf32>
    %cst_475 = arith.constant 1.000000e+00 : f32
    %666 = vector.broadcast %cst_475 : f32 to vector<2x32xf32>
    %667 = arith.addf %666, %665 : vector<2x32xf32>
    %668 = arith.divf %666, %667 : vector<2x32xf32>
    %c1_476 = arith.constant 1 : index
    %c0_477 = arith.constant 0 : index
    %c0_478 = arith.constant 0 : index
    %669 = vector.load %arg6[%c1_476, %c0_477, %c0_478] : memref<4x32x32xf32, #tpu.memory_space<vmem>>, vector<1x32x32xf32>
    %670 = vector.shape_cast %669 : vector<1x32x32xf32> to vector<32x32xf32>
    %cst_479 = arith.constant dense<0.000000e+00> : vector<2x32xf32>
    %671 = tpu.matmul %627, %670, %cst_479 {dimension_numbers = #tpu.dot_dimension_numbers<[1], [0], [0], [1], [0, 0, 1, 1], [], []>} : vector<2x32xf32>, vector<32x32xf32>, vector<2x32xf32> -> vector<2x32xf32>
    %672 = arith.addf %653, %671 : vector<2x32xf32>
    %673 = arith.negf %672 : vector<2x32xf32>
    %674 = math.exp %673 : vector<2x32xf32>
    %cst_480 = arith.constant 1.000000e+00 : f32
    %675 = vector.broadcast %cst_480 : f32 to vector<2x32xf32>
    %676 = arith.addf %675, %674 : vector<2x32xf32>
    %677 = arith.divf %675, %676 : vector<2x32xf32>
    %c2_481 = arith.constant 2 : index
    %c0_482 = arith.constant 0 : index
    %c0_483 = arith.constant 0 : index
    %678 = vector.load %arg6[%c2_481, %c0_482, %c0_483] : memref<4x32x32xf32, #tpu.memory_space<vmem>>, vector<1x32x32xf32>
    %679 = vector.shape_cast %678 : vector<1x32x32xf32> to vector<32x32xf32>
    %cst_484 = arith.constant dense<0.000000e+00> : vector<2x32xf32>
    %680 = tpu.matmul %627, %679, %cst_484 {dimension_numbers = #tpu.dot_dimension_numbers<[1], [0], [0], [1], [0, 0, 1, 1], [], []>} : vector<2x32xf32>, vector<32x32xf32>, vector<2x32xf32> -> vector<2x32xf32>
    %681 = arith.addf %656, %680 : vector<2x32xf32>
    %682 = math.tanh %681 : vector<2x32xf32>
    %c3_485 = arith.constant 3 : index
    %c0_486 = arith.constant 0 : index
    %c0_487 = arith.constant 0 : index
    %683 = vector.load %arg6[%c3_485, %c0_486, %c0_487] : memref<4x32x32xf32, #tpu.memory_space<vmem>>, vector<1x32x32xf32>
    %684 = vector.shape_cast %683 : vector<1x32x32xf32> to vector<32x32xf32>
    %cst_488 = arith.constant dense<0.000000e+00> : vector<2x32xf32>
    %685 = tpu.matmul %627, %684, %cst_488 {dimension_numbers = #tpu.dot_dimension_numbers<[1], [0], [0], [1], [0, 0, 1, 1], [], []>} : vector<2x32xf32>, vector<32x32xf32>, vector<2x32xf32> -> vector<2x32xf32>
    %686 = arith.addf %659, %685 : vector<2x32xf32>
    %687 = arith.negf %686 : vector<2x32xf32>
    %688 = math.exp %687 : vector<2x32xf32>
    %cst_489 = arith.constant 1.000000e+00 : f32
    %689 = vector.broadcast %cst_489 : f32 to vector<2x32xf32>
    %690 = arith.addf %689, %688 : vector<2x32xf32>
    %691 = arith.divf %689, %690 : vector<2x32xf32>
    %692 = arith.mulf %677, %625 : vector<2x32xf32>
    %693 = arith.mulf %668, %682 : vector<2x32xf32>
    %694 = arith.addf %692, %693 : vector<2x32xf32>
    %695 = math.tanh %694 : vector<2x32xf32>
    %696 = arith.mulf %691, %695 : vector<2x32xf32>
    %cst_490 = arith.constant dense<0.000000e+00> : vector<2x16xf32>
    %697 = tpu.matmul %696, %363, %cst_490 {dimension_numbers = #tpu.dot_dimension_numbers<[1], [0], [0], [1], [0, 0, 1, 1], [], []>} : vector<2x32xf32>, vector<32x16xf32>, vector<2x16xf32> -> vector<2x16xf32>
    %698 = vector.broadcast %364 : vector<1x16xf32> to vector<2x16xf32>
    %699 = arith.addf %697, %698 : vector<2x16xf32>
    %cst_491 = arith.constant dense<0xFF800000> : vector<2xf32>
    %700 = vector.multi_reduction <maximumf>, %699, %cst_491 [1] : vector<2x16xf32> to vector<2xf32>
    %701 = vector.shape_cast %700 : vector<2xf32> to vector<2x1xf32>
    %702 = vector.broadcast %701 : vector<2x1xf32> to vector<2x16xf32>
    %703 = arith.cmpf oeq, %699, %702 : vector<2x16xf32>
    %c16_i32_492 = arith.constant 16 : i32
    %704 = vector.broadcast %c16_i32_492 : i32 to vector<2x16xi32>
    %705 = arith.select %703, %362, %704 : vector<2x16xi1>, vector<2x16xi32>
    %cst_493 = arith.constant dense<2147483647> : vector<2xi32>
    %706 = vector.multi_reduction <minsi>, %705, %cst_493 [1] : vector<2x16xi32> to vector<2xi32>
    %707 = vector.shape_cast %706 : vector<2xi32> to vector<2x1xi32>
    %c5_494 = arith.constant 5 : index
    %708 = memref.load %arg1[%c5_494] : memref<8xi32, #tpu.memory_space<smem>>
    %c1_i32_495 = arith.constant 1 : i32
    %709 = arith.cmpi eq, %708, %c1_i32_495 : i32
    %c5_496 = arith.constant 5 : index
    %c0_497 = arith.constant 0 : index
    %c0_498 = arith.constant 0 : index
    %710 = vector.load %arg2[%c5_496, %c0_497, %c0_498] : memref<8x2x1xi32, #tpu.memory_space<vmem>>, vector<1x2x1xi32>
    %711 = vector.shape_cast %710 : vector<1x2x1xi32> to vector<2x1xi32>
    %712 = arith.select %709, %711, %707 : vector<2x1xi32>
    %713 = vector.broadcast %712 : vector<2x1xi32> to vector<2x16xi32>
    %714 = arith.cmpi eq, %362, %713 : vector<2x16xi32>
    %715 = arith.extui %714 : vector<2x16xi1> to vector<2x16xi32>
    %716 = arith.sitofp %715 : vector<2x16xi32> to vector<2x16xf32>
    %c0_499 = arith.constant 0 : index
    %c0_500 = arith.constant 0 : index
    %c0_501 = arith.constant 0 : index
    %717 = vector.load %arg5[%c0_499, %c0_500, %c0_501] : memref<4x16x32xf32, #tpu.memory_space<vmem>>, vector<1x16x32xf32>
    %718 = vector.shape_cast %717 : vector<1x16x32xf32> to vector<16x32xf32>
    %cst_502 = arith.constant dense<0.000000e+00> : vector<2x32xf32>
    %719 = tpu.matmul %716, %718, %cst_502 {dimension_numbers = #tpu.dot_dimension_numbers<[1], [0], [0], [1], [0, 0, 1, 1], [], []>} : vector<2x16xf32>, vector<16x32xf32>, vector<2x32xf32> -> vector<2x32xf32>
    %c1_503 = arith.constant 1 : index
    %c0_504 = arith.constant 0 : index
    %c0_505 = arith.constant 0 : index
    %720 = vector.load %arg5[%c1_503, %c0_504, %c0_505] : memref<4x16x32xf32, #tpu.memory_space<vmem>>, vector<1x16x32xf32>
    %721 = vector.shape_cast %720 : vector<1x16x32xf32> to vector<16x32xf32>
    %cst_506 = arith.constant dense<0.000000e+00> : vector<2x32xf32>
    %722 = tpu.matmul %716, %721, %cst_506 {dimension_numbers = #tpu.dot_dimension_numbers<[1], [0], [0], [1], [0, 0, 1, 1], [], []>} : vector<2x16xf32>, vector<16x32xf32>, vector<2x32xf32> -> vector<2x32xf32>
    %c2_507 = arith.constant 2 : index
    %c0_508 = arith.constant 0 : index
    %c0_509 = arith.constant 0 : index
    %723 = vector.load %arg5[%c2_507, %c0_508, %c0_509] : memref<4x16x32xf32, #tpu.memory_space<vmem>>, vector<1x16x32xf32>
    %724 = vector.shape_cast %723 : vector<1x16x32xf32> to vector<16x32xf32>
    %cst_510 = arith.constant dense<0.000000e+00> : vector<2x32xf32>
    %725 = tpu.matmul %716, %724, %cst_510 {dimension_numbers = #tpu.dot_dimension_numbers<[1], [0], [0], [1], [0, 0, 1, 1], [], []>} : vector<2x16xf32>, vector<16x32xf32>, vector<2x32xf32> -> vector<2x32xf32>
    %c3_511 = arith.constant 3 : index
    %c0_512 = arith.constant 0 : index
    %c0_513 = arith.constant 0 : index
    %726 = vector.load %arg5[%c3_511, %c0_512, %c0_513] : memref<4x16x32xf32, #tpu.memory_space<vmem>>, vector<1x16x32xf32>
    %727 = vector.shape_cast %726 : vector<1x16x32xf32> to vector<16x32xf32>
    %cst_514 = arith.constant dense<0.000000e+00> : vector<2x32xf32>
    %728 = tpu.matmul %716, %727, %cst_514 {dimension_numbers = #tpu.dot_dimension_numbers<[1], [0], [0], [1], [0, 0, 1, 1], [], []>} : vector<2x16xf32>, vector<16x32xf32>, vector<2x32xf32> -> vector<2x32xf32>
    %c0_515 = arith.constant 0 : index
    %c0_516 = arith.constant 0 : index
    %c0_517 = arith.constant 0 : index
    %729 = vector.load %arg6[%c0_515, %c0_516, %c0_517] : memref<4x32x32xf32, #tpu.memory_space<vmem>>, vector<1x32x32xf32>
    %730 = vector.shape_cast %729 : vector<1x32x32xf32> to vector<32x32xf32>
    %cst_518 = arith.constant dense<0.000000e+00> : vector<2x32xf32>
    %731 = tpu.matmul %696, %730, %cst_518 {dimension_numbers = #tpu.dot_dimension_numbers<[1], [0], [0], [1], [0, 0, 1, 1], [], []>} : vector<2x32xf32>, vector<32x32xf32>, vector<2x32xf32> -> vector<2x32xf32>
    %732 = arith.addf %719, %731 : vector<2x32xf32>
    %733 = arith.negf %732 : vector<2x32xf32>
    %734 = math.exp %733 : vector<2x32xf32>
    %cst_519 = arith.constant 1.000000e+00 : f32
    %735 = vector.broadcast %cst_519 : f32 to vector<2x32xf32>
    %736 = arith.addf %735, %734 : vector<2x32xf32>
    %737 = arith.divf %735, %736 : vector<2x32xf32>
    %c1_520 = arith.constant 1 : index
    %c0_521 = arith.constant 0 : index
    %c0_522 = arith.constant 0 : index
    %738 = vector.load %arg6[%c1_520, %c0_521, %c0_522] : memref<4x32x32xf32, #tpu.memory_space<vmem>>, vector<1x32x32xf32>
    %739 = vector.shape_cast %738 : vector<1x32x32xf32> to vector<32x32xf32>
    %cst_523 = arith.constant dense<0.000000e+00> : vector<2x32xf32>
    %740 = tpu.matmul %696, %739, %cst_523 {dimension_numbers = #tpu.dot_dimension_numbers<[1], [0], [0], [1], [0, 0, 1, 1], [], []>} : vector<2x32xf32>, vector<32x32xf32>, vector<2x32xf32> -> vector<2x32xf32>
    %741 = arith.addf %722, %740 : vector<2x32xf32>
    %742 = arith.negf %741 : vector<2x32xf32>
    %743 = math.exp %742 : vector<2x32xf32>
    %cst_524 = arith.constant 1.000000e+00 : f32
    %744 = vector.broadcast %cst_524 : f32 to vector<2x32xf32>
    %745 = arith.addf %744, %743 : vector<2x32xf32>
    %746 = arith.divf %744, %745 : vector<2x32xf32>
    %c2_525 = arith.constant 2 : index
    %c0_526 = arith.constant 0 : index
    %c0_527 = arith.constant 0 : index
    %747 = vector.load %arg6[%c2_525, %c0_526, %c0_527] : memref<4x32x32xf32, #tpu.memory_space<vmem>>, vector<1x32x32xf32>
    %748 = vector.shape_cast %747 : vector<1x32x32xf32> to vector<32x32xf32>
    %cst_528 = arith.constant dense<0.000000e+00> : vector<2x32xf32>
    %749 = tpu.matmul %696, %748, %cst_528 {dimension_numbers = #tpu.dot_dimension_numbers<[1], [0], [0], [1], [0, 0, 1, 1], [], []>} : vector<2x32xf32>, vector<32x32xf32>, vector<2x32xf32> -> vector<2x32xf32>
    %750 = arith.addf %725, %749 : vector<2x32xf32>
    %751 = math.tanh %750 : vector<2x32xf32>
    %c3_529 = arith.constant 3 : index
    %c0_530 = arith.constant 0 : index
    %c0_531 = arith.constant 0 : index
    %752 = vector.load %arg6[%c3_529, %c0_530, %c0_531] : memref<4x32x32xf32, #tpu.memory_space<vmem>>, vector<1x32x32xf32>
    %753 = vector.shape_cast %752 : vector<1x32x32xf32> to vector<32x32xf32>
    %cst_532 = arith.constant dense<0.000000e+00> : vector<2x32xf32>
    %754 = tpu.matmul %696, %753, %cst_532 {dimension_numbers = #tpu.dot_dimension_numbers<[1], [0], [0], [1], [0, 0, 1, 1], [], []>} : vector<2x32xf32>, vector<32x32xf32>, vector<2x32xf32> -> vector<2x32xf32>
    %755 = arith.addf %728, %754 : vector<2x32xf32>
    %756 = arith.negf %755 : vector<2x32xf32>
    %757 = math.exp %756 : vector<2x32xf32>
    %cst_533 = arith.constant 1.000000e+00 : f32
    %758 = vector.broadcast %cst_533 : f32 to vector<2x32xf32>
    %759 = arith.addf %758, %757 : vector<2x32xf32>
    %760 = arith.divf %758, %759 : vector<2x32xf32>
    %761 = arith.mulf %746, %694 : vector<2x32xf32>
    %762 = arith.mulf %737, %751 : vector<2x32xf32>
    %763 = arith.addf %761, %762 : vector<2x32xf32>
    %764 = math.tanh %763 : vector<2x32xf32>
    %765 = arith.mulf %760, %764 : vector<2x32xf32>
    %cst_534 = arith.constant dense<0.000000e+00> : vector<2x16xf32>
    %766 = tpu.matmul %765, %363, %cst_534 {dimension_numbers = #tpu.dot_dimension_numbers<[1], [0], [0], [1], [0, 0, 1, 1], [], []>} : vector<2x32xf32>, vector<32x16xf32>, vector<2x16xf32> -> vector<2x16xf32>
    %767 = vector.broadcast %364 : vector<1x16xf32> to vector<2x16xf32>
    %768 = arith.addf %766, %767 : vector<2x16xf32>
    %cst_535 = arith.constant dense<0xFF800000> : vector<2xf32>
    %769 = vector.multi_reduction <maximumf>, %768, %cst_535 [1] : vector<2x16xf32> to vector<2xf32>
    %770 = vector.shape_cast %769 : vector<2xf32> to vector<2x1xf32>
    %771 = vector.broadcast %770 : vector<2x1xf32> to vector<2x16xf32>
    %772 = arith.cmpf oeq, %768, %771 : vector<2x16xf32>
    %c16_i32_536 = arith.constant 16 : i32
    %773 = vector.broadcast %c16_i32_536 : i32 to vector<2x16xi32>
    %774 = arith.select %772, %362, %773 : vector<2x16xi1>, vector<2x16xi32>
    %cst_537 = arith.constant dense<2147483647> : vector<2xi32>
    %775 = vector.multi_reduction <minsi>, %774, %cst_537 [1] : vector<2x16xi32> to vector<2xi32>
    %776 = vector.shape_cast %775 : vector<2xi32> to vector<2x1xi32>
    %c6_538 = arith.constant 6 : index
    %777 = memref.load %arg1[%c6_538] : memref<8xi32, #tpu.memory_space<smem>>
    %c1_i32_539 = arith.constant 1 : i32
    %778 = arith.cmpi eq, %777, %c1_i32_539 : i32
    %c6_540 = arith.constant 6 : index
    %c0_541 = arith.constant 0 : index
    %c0_542 = arith.constant 0 : index
    %779 = vector.load %arg2[%c6_540, %c0_541, %c0_542] : memref<8x2x1xi32, #tpu.memory_space<vmem>>, vector<1x2x1xi32>
    %780 = vector.shape_cast %779 : vector<1x2x1xi32> to vector<2x1xi32>
    %781 = arith.select %778, %780, %776 : vector<2x1xi32>
    %782 = vector.broadcast %781 : vector<2x1xi32> to vector<2x16xi32>
    %783 = arith.cmpi eq, %362, %782 : vector<2x16xi32>
    %784 = arith.extui %783 : vector<2x16xi1> to vector<2x16xi32>
    %785 = arith.sitofp %784 : vector<2x16xi32> to vector<2x16xf32>
    %c0_543 = arith.constant 0 : index
    %c0_544 = arith.constant 0 : index
    %c0_545 = arith.constant 0 : index
    %786 = vector.load %arg5[%c0_543, %c0_544, %c0_545] : memref<4x16x32xf32, #tpu.memory_space<vmem>>, vector<1x16x32xf32>
    %787 = vector.shape_cast %786 : vector<1x16x32xf32> to vector<16x32xf32>
    %cst_546 = arith.constant dense<0.000000e+00> : vector<2x32xf32>
    %788 = tpu.matmul %785, %787, %cst_546 {dimension_numbers = #tpu.dot_dimension_numbers<[1], [0], [0], [1], [0, 0, 1, 1], [], []>} : vector<2x16xf32>, vector<16x32xf32>, vector<2x32xf32> -> vector<2x32xf32>
    %c1_547 = arith.constant 1 : index
    %c0_548 = arith.constant 0 : index
    %c0_549 = arith.constant 0 : index
    %789 = vector.load %arg5[%c1_547, %c0_548, %c0_549] : memref<4x16x32xf32, #tpu.memory_space<vmem>>, vector<1x16x32xf32>
    %790 = vector.shape_cast %789 : vector<1x16x32xf32> to vector<16x32xf32>
    %cst_550 = arith.constant dense<0.000000e+00> : vector<2x32xf32>
    %791 = tpu.matmul %785, %790, %cst_550 {dimension_numbers = #tpu.dot_dimension_numbers<[1], [0], [0], [1], [0, 0, 1, 1], [], []>} : vector<2x16xf32>, vector<16x32xf32>, vector<2x32xf32> -> vector<2x32xf32>
    %c2_551 = arith.constant 2 : index
    %c0_552 = arith.constant 0 : index
    %c0_553 = arith.constant 0 : index
    %792 = vector.load %arg5[%c2_551, %c0_552, %c0_553] : memref<4x16x32xf32, #tpu.memory_space<vmem>>, vector<1x16x32xf32>
    %793 = vector.shape_cast %792 : vector<1x16x32xf32> to vector<16x32xf32>
    %cst_554 = arith.constant dense<0.000000e+00> : vector<2x32xf32>
    %794 = tpu.matmul %785, %793, %cst_554 {dimension_numbers = #tpu.dot_dimension_numbers<[1], [0], [0], [1], [0, 0, 1, 1], [], []>} : vector<2x16xf32>, vector<16x32xf32>, vector<2x32xf32> -> vector<2x32xf32>
    %c3_555 = arith.constant 3 : index
    %c0_556 = arith.constant 0 : index
    %c0_557 = arith.constant 0 : index
    %795 = vector.load %arg5[%c3_555, %c0_556, %c0_557] : memref<4x16x32xf32, #tpu.memory_space<vmem>>, vector<1x16x32xf32>
    %796 = vector.shape_cast %795 : vector<1x16x32xf32> to vector<16x32xf32>
    %cst_558 = arith.constant dense<0.000000e+00> : vector<2x32xf32>
    %797 = tpu.matmul %785, %796, %cst_558 {dimension_numbers = #tpu.dot_dimension_numbers<[1], [0], [0], [1], [0, 0, 1, 1], [], []>} : vector<2x16xf32>, vector<16x32xf32>, vector<2x32xf32> -> vector<2x32xf32>
    %c0_559 = arith.constant 0 : index
    %c0_560 = arith.constant 0 : index
    %c0_561 = arith.constant 0 : index
    %798 = vector.load %arg6[%c0_559, %c0_560, %c0_561] : memref<4x32x32xf32, #tpu.memory_space<vmem>>, vector<1x32x32xf32>
    %799 = vector.shape_cast %798 : vector<1x32x32xf32> to vector<32x32xf32>
    %cst_562 = arith.constant dense<0.000000e+00> : vector<2x32xf32>
    %800 = tpu.matmul %765, %799, %cst_562 {dimension_numbers = #tpu.dot_dimension_numbers<[1], [0], [0], [1], [0, 0, 1, 1], [], []>} : vector<2x32xf32>, vector<32x32xf32>, vector<2x32xf32> -> vector<2x32xf32>
    %801 = arith.addf %788, %800 : vector<2x32xf32>
    %802 = arith.negf %801 : vector<2x32xf32>
    %803 = math.exp %802 : vector<2x32xf32>
    %cst_563 = arith.constant 1.000000e+00 : f32
    %804 = vector.broadcast %cst_563 : f32 to vector<2x32xf32>
    %805 = arith.addf %804, %803 : vector<2x32xf32>
    %806 = arith.divf %804, %805 : vector<2x32xf32>
    %c1_564 = arith.constant 1 : index
    %c0_565 = arith.constant 0 : index
    %c0_566 = arith.constant 0 : index
    %807 = vector.load %arg6[%c1_564, %c0_565, %c0_566] : memref<4x32x32xf32, #tpu.memory_space<vmem>>, vector<1x32x32xf32>
    %808 = vector.shape_cast %807 : vector<1x32x32xf32> to vector<32x32xf32>
    %cst_567 = arith.constant dense<0.000000e+00> : vector<2x32xf32>
    %809 = tpu.matmul %765, %808, %cst_567 {dimension_numbers = #tpu.dot_dimension_numbers<[1], [0], [0], [1], [0, 0, 1, 1], [], []>} : vector<2x32xf32>, vector<32x32xf32>, vector<2x32xf32> -> vector<2x32xf32>
    %810 = arith.addf %791, %809 : vector<2x32xf32>
    %811 = arith.negf %810 : vector<2x32xf32>
    %812 = math.exp %811 : vector<2x32xf32>
    %cst_568 = arith.constant 1.000000e+00 : f32
    %813 = vector.broadcast %cst_568 : f32 to vector<2x32xf32>
    %814 = arith.addf %813, %812 : vector<2x32xf32>
    %815 = arith.divf %813, %814 : vector<2x32xf32>
    %c2_569 = arith.constant 2 : index
    %c0_570 = arith.constant 0 : index
    %c0_571 = arith.constant 0 : index
    %816 = vector.load %arg6[%c2_569, %c0_570, %c0_571] : memref<4x32x32xf32, #tpu.memory_space<vmem>>, vector<1x32x32xf32>
    %817 = vector.shape_cast %816 : vector<1x32x32xf32> to vector<32x32xf32>
    %cst_572 = arith.constant dense<0.000000e+00> : vector<2x32xf32>
    %818 = tpu.matmul %765, %817, %cst_572 {dimension_numbers = #tpu.dot_dimension_numbers<[1], [0], [0], [1], [0, 0, 1, 1], [], []>} : vector<2x32xf32>, vector<32x32xf32>, vector<2x32xf32> -> vector<2x32xf32>
    %819 = arith.addf %794, %818 : vector<2x32xf32>
    %820 = math.tanh %819 : vector<2x32xf32>
    %c3_573 = arith.constant 3 : index
    %c0_574 = arith.constant 0 : index
    %c0_575 = arith.constant 0 : index
    %821 = vector.load %arg6[%c3_573, %c0_574, %c0_575] : memref<4x32x32xf32, #tpu.memory_space<vmem>>, vector<1x32x32xf32>
    %822 = vector.shape_cast %821 : vector<1x32x32xf32> to vector<32x32xf32>
    %cst_576 = arith.constant dense<0.000000e+00> : vector<2x32xf32>
    %823 = tpu.matmul %765, %822, %cst_576 {dimension_numbers = #tpu.dot_dimension_numbers<[1], [0], [0], [1], [0, 0, 1, 1], [], []>} : vector<2x32xf32>, vector<32x32xf32>, vector<2x32xf32> -> vector<2x32xf32>
    %824 = arith.addf %797, %823 : vector<2x32xf32>
    %825 = arith.negf %824 : vector<2x32xf32>
    %826 = math.exp %825 : vector<2x32xf32>
    %cst_577 = arith.constant 1.000000e+00 : f32
    %827 = vector.broadcast %cst_577 : f32 to vector<2x32xf32>
    %828 = arith.addf %827, %826 : vector<2x32xf32>
    %829 = arith.divf %827, %828 : vector<2x32xf32>
    %830 = arith.mulf %815, %763 : vector<2x32xf32>
    %831 = arith.mulf %806, %820 : vector<2x32xf32>
    %832 = arith.addf %830, %831 : vector<2x32xf32>
    %833 = math.tanh %832 : vector<2x32xf32>
    %834 = arith.mulf %829, %833 : vector<2x32xf32>
    %cst_578 = arith.constant dense<0.000000e+00> : vector<2x16xf32>
    %835 = tpu.matmul %834, %363, %cst_578 {dimension_numbers = #tpu.dot_dimension_numbers<[1], [0], [0], [1], [0, 0, 1, 1], [], []>} : vector<2x32xf32>, vector<32x16xf32>, vector<2x16xf32> -> vector<2x16xf32>
    %836 = vector.broadcast %364 : vector<1x16xf32> to vector<2x16xf32>
    %837 = arith.addf %835, %836 : vector<2x16xf32>
    %838 = tpu.concatenate %367, %423, %492, %561, %630, %699, %768, %837 in 1 : vector<2x16xf32>, vector<2x16xf32>, vector<2x16xf32>, vector<2x16xf32>, vector<2x16xf32>, vector<2x16xf32>, vector<2x16xf32>, vector<2x16xf32> -> vector<2x128xf32>
    %c0_579 = arith.constant 0 : index
    %c0_580 = arith.constant 0 : index
    %839 = vector.load %arg9[%c0_579, %c0_580] : memref<2x128xf32, #tpu.memory_space<vmem>>, vector<2x128xf32>
    tpu.vector_store %arg9[%c0_579, %c0_580], %838 {strides = array<i32>} : memref<2x128xf32, #tpu.memory_space<vmem>>, vector<2x128xf32>,
    return
  }
  func.func @transform_0(%arg0: i32, %arg1: memref<8xi32, #tpu.memory_space<smem>>) -> (i32, i32, i32) {
    %c0_i32 = arith.constant 0 : i32
    %c0_i32_0 = arith.constant 0 : i32
    %c0_i32_1 = arith.constant 0 : i32
    %c0_i32_2 = arith.constant 0 : i32
    return %c0_i32, %c0_i32_0, %c0_i32_1 : i32, i32, i32
  }
  func.func @transform_1(%arg0: i32, %arg1: memref<8xi32, #tpu.memory_space<smem>>) -> (i32, i32, i32, i32) {
    %c0_i32 = arith.constant 0 : i32
    %c0_i32_0 = arith.constant 0 : i32
    %c0_i32_1 = arith.constant 0 : i32
    %c0_i32_2 = arith.constant 0 : i32
    %c0_i32_3 = arith.constant 0 : i32
    return %c0_i32, %c0_i32_0, %c0_i32_1, %c0_i32_2 : i32, i32, i32, i32
  }
  func.func @transform_2(%arg0: i32, %arg1: memref<8xi32, #tpu.memory_space<smem>>) -> (i32, i32, i32) {
    %c0_i32 = arith.constant 0 : i32
    %c0_i32_0 = arith.constant 0 : i32
    %c0_i32_1 = arith.constant 0 : i32
    %c0_i32_2 = arith.constant 0 : i32
    return %c0_i32, %c0_i32_0, %c0_i32_1 : i32, i32, i32
  }
  func.func @transform_3(%arg0: i32, %arg1: memref<8xi32, #tpu.memory_space<smem>>) -> (i32, i32, i32) {
    %c0_i32 = arith.constant 0 : i32
    %c0_i32_0 = arith.constant 0 : i32
    %c0_i32_1 = arith.constant 0 : i32
    %c0_i32_2 = arith.constant 0 : i32
    return %c0_i32, %c0_i32_0, %c0_i32_1 : i32, i32, i32
  }
  func.func @transform_4(%arg0: i32, %arg1: memref<8xi32, #tpu.memory_space<smem>>) -> (i32, i32, i32) {
    %c0_i32 = arith.constant 0 : i32
    %c0_i32_0 = arith.constant 0 : i32
    %c0_i32_1 = arith.constant 0 : i32
    %c0_i32_2 = arith.constant 0 : i32
    return %c0_i32, %c0_i32_0, %c0_i32_1 : i32, i32, i32
  }
  func.func @transform_5(%arg0: i32, %arg1: memref<8xi32, #tpu.memory_space<smem>>) -> (i32, i32) {
    %c0_i32 = arith.constant 0 : i32
    %c0_i32_0 = arith.constant 0 : i32
    %c0_i32_1 = arith.constant 0 : i32
    return %c0_i32, %c0_i32_0 : i32, i32
  }
  func.func @transform_6(%arg0: i32, %arg1: memref<8xi32, #tpu.memory_space<smem>>) -> (i32, i32) {
    %c0_i32 = arith.constant 0 : i32
    %c0_i32_0 = arith.constant 0 : i32
    %c0_i32_1 = arith.constant 0 : i32
    return %c0_i32, %c0_i32_0 : i32, i32
  }
  func.func @transform_7(%arg0: i32, %arg1: memref<8xi32, #tpu.memory_space<smem>>) -> (i32, i32) {
    %c0_i32 = arith.constant 0 : i32
    %c0_i32_0 = arith.constant 0 : i32
    %c0_i32_1 = arith.constant 0 : i32
    return %c0_i32, %c0_i32_0 : i32, i32
  }
}

</mosaic_0001>

<bundles_post_ra>
// kernel: seq2seq_forward.1
= control target key start
LH: loop header
LB: loop body
LE: loop exit
PB: predicated region body
PF: predicated region fallthrough
CT: control target
= control target key end

     0   :  { %s11131_s0 = inlined_call_operand.vmem [shape: s32[8], index: 0, kind: input, shape index: {}]   ;;  %s11132_s1 = inlined_call_operand.vmem [shape: s32[8,2,1], index: 1, kind: input, shape index: {}]   ;;  %s11133_s2 = inlined_call_operand.vmem [shape: f32[8,4,2,32], index: 2, kind: input, shape index: {}]   ;;  %s11134_s3 = inlined_call_operand.vmem [shape: f32[4,32,32], index: 3, kind: input, shape index: {}]   ;;  %s11135_s4 = inlined_call_operand.vmem [shape: f32[4,16,32], index: 4, kind: input, shape index: {}]   ;;  %s11136_s5 = inlined_call_operand.vmem [shape: f32[4,32,32], index: 5, kind: input, shape index: {}]   ;;  %s11137_s6 = inlined_call_operand.vmem [shape: f32[32,16], index: 6, kind: input, shape index: {}]   ;;  %s11138_s7 = inlined_call_operand.vmem [shape: f32[1,16], index: 7, kind: input, shape index: {}]   ;;  %s11139_s8 = inlined_call_operand.vmem [shape: f32[2,128], index: 8, kind: output, shape index: {}]  }
   0x1   :  { %s13_s29 = sshll.u32 %s11131_s0, 4  ;;  %s14_s29 = int_to_ptr.vmem [resolvable:$true] %s13_s29 }
   0x2   :  { %s9395_s30 = scalar_lea.vmem %s14_s29, 16  ;;  %p9400_p1 = scmp.lt.s32.totalorder %s14_s29, %s14_s29 }
   0x3   :  { %p9396_p0 = scmp.ne.s32.totalorder %s14_s29, %s9395_s30  ;;  %p9401_p2 = scmp.lt.s32.totalorder %s9395_s30, %s9395_s30 }
   0x5   :  { %p9402_p3 = por %p9401_p2, %p9400_p1 }
   0x7   :  { %p9403_p4 = pnand %p9402_p3, %p9396_p0 }
   0x9   :  { %9406 = shalt.err (!%p9403_p4)  }
   0xa   :  { %s9409_s9 = smov [#allocation3]  }
   0xb   :  { %16 = dma.vmem_to_smem %s14_s29, 16, %s9409_s9, [#allocation2] }
   0xc   :  { %9407 = dma.done.wait [#allocation2], 16 }
   0xd   :  { %9408 = vsyncadd [#allocation2], 4294967280 }
   0xe   :  { %18 = sfence }
   0xf   :  { %v9471_v0 = vld [vmem:[%s11134_s3 + $0x18] sm:$0xff]  ;;  %v9410_v2 = vmov 0.0   ;;  %v9483_v3 = vld [vmem:[%s11134_s3 + $0x10] sm:$0xff]  ;;  %v9497_v5 = vld [vmem:[%s11134_s3 + $0x8] sm:$0xff]  ;;  %vm9411_vm0 = vmmov 0   ;;  %vm44_vm1 = vcmask 261120  }
  0x10   :  { %v9476_v1 = vld [vmem:[%s11134_s3 + $0x38] sm:$0xff]  ;;  %8164 = vmatprep.subr.mxu0 %v9410_v2  ;;  %8175 = vmatprep.subr.mxu1 %v9410_v2  ;;  %v9488_v4 = vld [vmem:[%s11134_s3 + $0x30] sm:$0xff]  ;;  %v9502_v6 = vld [vmem:[%s11134_s3 + $0x28] sm:$0xff]  ;;  %vm2706_vm2 = vcmask 130048   ;;  %vm3318_vm4 = vcmask 123904   ;;  %s7655_s9 = sld [smem:[#allocation3 + $0x1]] }
  0x11   :  { %8165 = vmatpush3.msra.mxu0 %v9471_v0  ;;  %8176 = vmatpush3.msra.mxu1 %v9476_v1  ;;  %v9511_v7 = vld [vmem:[%s11134_s3] sm:$0xff]  ;;  %v9531_v9 = vld [vmem:[%s11134_s3 + $0x58] sm:$0xff]  ;;  %v9545_v11 = vld [vmem:[%s11134_s3 + $0x50] sm:$0xff]  ;;  %s7670_s0 = sld [smem:[#allocation3 + $0x2]]  ;;  %s9413_s30 = smov 16  }
  0x12   :  { %8166 = vmatprep.subr.mxu0 %v9410_v2  ;;  %8177 = vmatprep.subr.mxu1 %v9410_v2  ;;  %v9518_v8 = vld [vmem:[%s11134_s3 + $0x20] sm:$0xff]  ;;  %v9536_v10 = vld [vmem:[%s11134_s3 + $0x78] sm:$0xff]  ;;  %v9550_v12 = vld [vmem:[%s11134_s3 + $0x70] sm:$0xff]  ;;  %s7700_s18 = sld [smem:[#allocation3 + $0x4]]  ;;  %s9416_s14 = smov 48  }
  0x13   :  { %8167 = vmatpush3.msra.mxu0 %v9483_v3  ;;  %8178 = vmatpush3.msra.mxu1 %v9488_v4  ;;  %v9559_v13 = vld [vmem:[%s11134_s3 + $0x48] sm:$0xff]  ;;  %v9573_v15 = vld [vmem:[%s11134_s3 + $0x40] sm:$0xff]  ;;  %s9417_s15 = smov 64  }
  0x14   :  { %8168 = vmatprep.subr.mxu0 %v9410_v2  ;;  %8179 = vmatprep.subr.mxu1 %v9410_v2  ;;  %v9564_v14 = vld [vmem:[%s11134_s3 + $0x68] sm:$0xff]  ;;  %v9580_v16 = vld [vmem:[%s11134_s3 + $0x60] sm:$0xff] }
  0x15   :  { %8169 = vmatpush3.msra.mxu0 %v9497_v5  ;;  %8180 = vmatpush3.msra.mxu1 %v9502_v6  ;;  %v33_v17 = vld [vmem:[%s11133_s2] sm:$0x3]  ;;  %v7528_v18 = vld [vmem:[%s11133_s2 + $0x2] sm:$0x3]  ;;  %v7530_v27 = vld [vmem:[%s11133_s2 + $0x6] sm:$0x3] }
  0x16   :  { %8170 = vmatprep.subr.mxu0 %v9410_v2  ;;  %8181 = vmatprep.subr.mxu1 %v9410_v2  ;;  %v7529_v31 = vld [vmem:[%s11133_s2 + $0x4] sm:$0x3]  ;;  %v7546_v51 = vld [vmem:[%s11133_s2 + $0x8] sm:$0x3]  ;;  %v7547_v52 = vld [vmem:[%s11133_s2 + $0xa] sm:$0x3] }
  0x17   :  { %8171 = vmatpush3.msra.mxu0 %v9511_v7  ;;  %8172 = vmatprep.mubr.msk.f32.mxu0 %vm9411_vm0, %v9410_v2  ;;  %v7549_v61 = vld [vmem:[%s11133_s2 + $0xe] sm:$0x3]  ;;  %p3340_p5 = scmp.eq.s32.totalorder %s7655_s9, 1  ;;  %p4034_p6 = scmp.eq.s32.totalorder %s7670_s0, 1 }
  0x18   :  { %8182 = vmatpush3.msra.mxu1 %v9518_v8  ;;  %8183 = vmatprep.mubr.msk.f32.mxu1 %vm9411_vm0, %v9410_v2  ;;  %p5422_p8 = scmp.eq.s32.totalorder %s7700_s18, 1  ;;  %s9414_s9 = smov 96  }
  0x19   :  { %8173 = vmatmul.mubr.f32.vlgmr.msra.gmra.mxu0 %v9410_v2  ;;  %8184 = vmatmul.mubr.f32.vlgmr.msra.gmra.mxu1 %v9410_v2  ;;  %s3343_s10 = scalar_select %p3340_p5, 1, 0 }
  0x1a   :  { %8186 = vmatprep.subr.mxu0 %v9410_v2  ;;  %8197 = vmatprep.subr.mxu1 %v9410_v2  ;;  %s4037_s13 = scalar_select %p4034_p6, 1, 0 }
  0x1b   :  { %8187 = vmatpush3.msra.mxu0 %v9531_v9  ;;  %8198 = vmatpush3.msra.mxu1 %v9536_v10 }
  0x1c   :  { %8188 = vmatprep.subr.mxu0 %v9410_v2  ;;  %8199 = vmatprep.subr.mxu1 %v9410_v2 }
  0x1d   :  { %8189 = vmatpush3.msra.mxu0 %v9545_v11  ;;  %8200 = vmatpush3.msra.mxu1 %v9550_v12 }
  0x1e   :  { %8190 = vmatprep.subr.mxu0 %v9410_v2  ;;  %8201 = vmatprep.subr.mxu1 %v9410_v2 }
  0x1f   :  { %8191 = vmatpush3.msra.mxu0 %v9559_v13  ;;  %8202 = vmatpush3.msra.mxu1 %v9564_v14 }
  0x20   :  { %8192 = vmatprep.subr.mxu0 %v9410_v2  ;;  %8203 = vmatprep.subr.mxu1 %v9410_v2 }
  0x21   :  { %8193 = vmatpush3.msra.mxu0 %v9573_v15  ;;  %8194 = vmatprep.mubr.msk.f32.mxu0 %vm9411_vm0, %v9410_v2 }
  0x22   :  { %8204 = vmatpush3.msra.mxu1 %v9580_v16  ;;  %8205 = vmatprep.mubr.msk.f32.mxu1 %vm9411_vm0, %v9410_v2 }
  0x23   :  { %8195 = vmatmul.mubr.f32.vlgmr.msra.gmra.mxu0 %v9410_v2  ;;  %8206 = vmatmul.mubr.f32.vlgmr.msra.gmra.mxu1 %v9410_v2 }
  0x24   :  { %8208 = vmatprep.subr.mxu0 %v9410_v2  ;;  %8219 = vmatprep.subr.mxu1 %v9410_v2 }
  0x25   :  { %8209 = vmatpush3.msra.mxu0 %v9471_v0  ;;  %8220 = vmatpush3.msra.mxu1 %v9476_v1 }
  0x26   :  { %8210 = vmatprep.subr.mxu0 %v9410_v2  ;;  %8221 = vmatprep.subr.mxu1 %v9410_v2 }
  0x27   :  { %8211 = vmatpush3.msra.mxu0 %v9483_v3  ;;  %8222 = vmatpush3.msra.mxu1 %v9488_v4 }
  0x28   :  { %8212 = vmatprep.subr.mxu0 %v9410_v2  ;;  %8223 = vmatprep.subr.mxu1 %v9410_v2 }
  0x29   :  { %8213 = vmatpush3.msra.mxu0 %v9497_v5  ;;  %8224 = vmatpush3.msra.mxu1 %v9502_v6 }
  0x2a   :  { %8214 = vmatprep.subr.mxu0 %v9410_v2  ;;  %8225 = vmatprep.subr.mxu1 %v9410_v2 }
  0x2b   :  { %8215 = vmatpush3.msra.mxu0 %v9511_v7  ;;  %8226 = vmatpush3.msra.mxu1 %v9518_v8 }
  0x2c   :  { %8216 = vmatprep.mubr.msk.f32.mxu0 %vm9411_vm0, %v9410_v2  ;;  %8227 = vmatprep.mubr.msk.f32.mxu1 %vm9411_vm0, %v9410_v2 }
  0x2d   :  { %8230 = vmatprep.subr.mxu0 %v9410_v2  ;;  %8241 = vmatprep.subr.mxu1 %v9410_v2 }
  0xd9   :  { %v114_v19 = vpop.f32.mrf.mxu0  ;;  %v196_v20 = vpop.f32.mrf.mxu1 }
  0xda   :  { %v118_v21 = vadd.f32 %v114_v19, %v33_v17  ;;  %v200_v22 = vadd.f32 %v7528_v18, %v196_v20  ;;  %v7548_v20 = vld [vmem:[%s11133_s2 + $0xc] sm:$0x3] }
  0xdb   :  { %v8174_v23 = vpop.f32.mrf.mxu0  ;;  %v8185_v24 = vpop.f32.mrf.mxu1 }
  0xdc   :  { %v7531_v25 = vmul.f32 -1.442695, %v118_v21  ;;  %v7536_v26 = vmul.f32 -1.442695, %v200_v22 }
  0xde   :  { %9110 = vpow2.f32 %v7531_v25 }
  0xdf   :  { %9112 = vpow2.f32 %v7536_v26 }
  0xe3   :  { %v278_v28 = vpop.f32.mrf.mxu0  ;;  %v355_v29 = vpop.f32.mrf.mxu1 }
  0xe4   :  { %v359_v30 = vadd.f32 %v7530_v27, %v355_v29  ;;  %v282_v35 = vadd.f32 %v7529_v31, %v278_v28 }
  0xe5   :  { %v8196_v32 = vpop.f32.mrf.mxu0  ;;  %v8207_v33 = vpop.f32.mrf.mxu1 }
  0xe6   :  { %v7545_v34 = vmul.f32 -1.442695, %v359_v30 }
  0xe8   :  { %9114 = vpow2.f32 %v7545_v34 }
  0xe9   :  { %9116 = vtanh.f32 %v282_v35 }
  0xeb   :  { %v9111_v36 = vpop.eup %9110 }
  0xec   :  { %v9113_v37 = vpop.eup %9112  ;;  %v122_v38 = vadd.f32 1.0, %v9111_v36 }
  0xed   :  { %v204_v39 = vadd.f32 1.0, %v9113_v37 }
  0xee   :  { %9118 = vrcp.f32 %v122_v38  ;;  %v7557_v38 = vld [vmem:[%s11133_s2 + $0x10] sm:$0x3] }
  0xef   :  { %9120 = vrcp.f32 %v204_v39  ;;  %v7558_v39 = vld [vmem:[%s11133_s2 + $0x12] sm:$0x3] }
  0xf5   :  { %v9115_v40 = vpop.eup %9114 }
  0xf6   :  { %v9117_v41 = vpop.eup %9116  ;;  %v363_v43 = vadd.f32 1.0, %v9115_v40 }
  0xf8   :  { %9122 = vrcp.f32 %v363_v43 }
  0xfb   :  { %v9119_v42 = vpop.eup %9118 }
  0xfc   :  { %v9121_v44 = vpop.eup %9120  ;;  %v367_v45 = vmul.f32 %v9119_v42, %v9117_v41 }
  0xfd   :  { %v366_v46 = vmul.f32 0.0, %v9121_v44 }
  0xff   :  { %v9626_v47 = vadd.f32 %v367_v45, %v366_v46 }
 0x101   :  { %9124 = vtanh.f32 %v9626_v47 }
 0x105   :  { %v9123_v48 = vpop.eup %9122 }
 0x10e   :  { %v9125_v49 = vpop.eup %9124 }
 0x10f   :  { %v370_v50 = vmul.f32 %v9125_v49, %v9123_v48  ;;  %v7560_v48 = vld [vmem:[%s11133_s2 + $0x16] sm:$0x3] }
 0x111   :  { %8217 = vmatmul.mubr.msk.f32.vlgmr.msra.gmra.mxu0 %vm44_vm1, %v370_v50  ;;  %8228 = vmatmul.mubr.msk.f32.vlgmr.msra.gmra.mxu1 %vm44_vm1, %v370_v50 }
 0x112   :  { %8231 = vmatpush3.msra.mxu0 %v9531_v9  ;;  %8242 = vmatpush3.msra.mxu1 %v9536_v10 }
 0x113   :  { %8232 = vmatprep.subr.mxu0 %v9410_v2  ;;  %8243 = vmatprep.subr.mxu1 %v9410_v2 }
 0x114   :  { %8233 = vmatpush3.msra.mxu0 %v9545_v11  ;;  %8244 = vmatpush3.msra.mxu1 %v9550_v12 }
 0x115   :  { %8234 = vmatprep.subr.mxu0 %v9410_v2  ;;  %8245 = vmatprep.subr.mxu1 %v9410_v2 }
 0x116   :  { %8235 = vmatpush3.msra.mxu0 %v9559_v13  ;;  %8246 = vmatpush3.msra.mxu1 %v9564_v14 }
 0x117   :  { %8236 = vmatprep.subr.mxu0 %v9410_v2  ;;  %8247 = vmatprep.subr.mxu1 %v9410_v2 }
 0x118   :  { %8237 = vmatpush3.msra.mxu0 %v9573_v15  ;;  %8238 = vmatprep.mubr.msk.f32.mxu0 %vm9411_vm0, %v9410_v2 }
 0x119   :  { %8248 = vmatpush3.msra.mxu1 %v9580_v16  ;;  %8249 = vmatprep.mubr.msk.f32.mxu1 %vm9411_vm0, %v9410_v2 }
 0x11a   :  { %8239 = vmatmul.mubr.msk.f32.vlgmr.msra.gmra.mxu0 %vm44_vm1, %v370_v50  ;;  %8250 = vmatmul.mubr.msk.f32.vlgmr.msra.gmra.mxu1 %vm44_vm1, %v370_v50 }
 0x11b   :  { %8252 = vmatprep.subr.mxu0 %v9410_v2  ;;  %8263 = vmatprep.subr.mxu1 %v9410_v2 }
 0x11c   :  { %8253 = vmatpush3.msra.mxu0 %v9471_v0  ;;  %8264 = vmatpush3.msra.mxu1 %v9476_v1 }
 0x11d   :  { %8254 = vmatprep.subr.mxu0 %v9410_v2  ;;  %8265 = vmatprep.subr.mxu1 %v9410_v2 }
 0x11e   :  { %8255 = vmatpush3.msra.mxu0 %v9483_v3  ;;  %8266 = vmatpush3.msra.mxu1 %v9488_v4 }
 0x11f   :  { %8256 = vmatprep.subr.mxu0 %v9410_v2  ;;  %8267 = vmatprep.subr.mxu1 %v9410_v2 }
 0x120   :  { %8257 = vmatpush3.msra.mxu0 %v9497_v5  ;;  %8268 = vmatpush3.msra.mxu1 %v9502_v6 }
 0x121   :  { %8258 = vmatprep.subr.mxu0 %v9410_v2  ;;  %8269 = vmatprep.subr.mxu1 %v9410_v2 }
 0x122   :  { %8259 = vmatpush3.msra.mxu0 %v9511_v7  ;;  %8270 = vmatpush3.msra.mxu1 %v9518_v8 }
 0x123   :  { %8260 = vmatprep.mubr.msk.f32.mxu0 %vm9411_vm0, %v9410_v2  ;;  %8271 = vmatprep.mubr.msk.f32.mxu1 %vm9411_vm0, %v9410_v2 }
 0x124   :  { %8274 = vmatprep.subr.mxu0 %v9410_v2  ;;  %8285 = vmatprep.subr.mxu1 %v9410_v2 }
 0x1d1   :  { %v448_v53 = vpop.f32.mrf.mxu0  ;;  %v525_v54 = vpop.f32.mrf.mxu1 }
 0x1d2   :  { %v452_v55 = vadd.f32 %v7546_v51, %v448_v53  ;;  %v529_v56 = vadd.f32 %v7547_v52, %v525_v54  ;;  %v7559_v54 = vld [vmem:[%s11133_s2 + $0x14] sm:$0x3] }
 0x1d3   :  { %v8218_v57 = vpop.f32.mrf.mxu0  ;;  %v8229_v58 = vpop.f32.mrf.mxu1 }
 0x1d4   :  { %v7551_v59 = vmul.f32 -1.442695, %v452_v55  ;;  %v7553_v60 = vmul.f32 -1.442695, %v529_v56 }
 0x1d6   :  { %9126 = vpow2.f32 %v7551_v59 }
 0x1d7   :  { %9128 = vpow2.f32 %v7553_v60 }
 0x1da   :  { %v602_v62 = vpop.f32.mrf.mxu0  ;;  %v674_v63 = vpop.f32.mrf.mxu1 }
 0x1db   :  { %v678_v17 = vadd.f32 %v7549_v61, %v674_v63  ;;  %v606_v22 = vadd.f32 %v7548_v20, %v602_v62 }
 0x1dc   :  { %v8240_v18 = vpop.f32.mrf.mxu0  ;;  %v8251_v19 = vpop.f32.mrf.mxu1 }
 0x1dd   :  { %v7556_v21 = vmul.f32 -1.442695, %v678_v17 }
 0x1df   :  { %9130 = vpow2.f32 %v7556_v21 }
 0x1e0   :  { %9132 = vtanh.f32 %v606_v22 }
 0x1e3   :  { %v9127_v23 = vpop.eup %9126 }
 0x1e4   :  { %v9129_v24 = vpop.eup %9128  ;;  %v456_v25 = vadd.f32 1.0, %v9127_v23 }
 0x1e5   :  { %v533_v26 = vadd.f32 1.0, %v9129_v24 }
 0x1e6   :  { %9134 = vrcp.f32 %v456_v25  ;;  %v7568_v25 = vld [vmem:[%s11133_s2 + $0x18] sm:$0x3] }
 0x1e7   :  { %9136 = vrcp.f32 %v533_v26  ;;  %v7569_v26 = vld [vmem:[%s11133_s2 + $0x1a] sm:$0x3] }
 0x1ec   :  { %v9131_v27 = vpop.eup %9130 }
 0x1ed   :  { %v9133_v28 = vpop.eup %9132  ;;  %v682_v32 = vadd.f32 1.0, %v9131_v27 }
 0x1ef   :  { %9138 = vrcp.f32 %v682_v32 }
 0x1f3   :  { %v9135_v29 = vpop.eup %9134 }
 0x1f4   :  { %v9137_v30 = vpop.eup %9136  ;;  %v686_v31 = vmul.f32 %v9135_v29, %v9133_v28 }
 0x1f5   :  { %v685_v33 = vmul.f32 %v9137_v30, %v9626_v47 }
 0x1f7   :  { %v9686_v34 = vadd.f32 %v686_v31, %v685_v33 }
 0x1f9   :  { %9140 = vtanh.f32 %v9686_v34 }
 0x1fc   :  { %v9139_v35 = vpop.eup %9138 }
 0x206   :  { %v9141_v36 = vpop.eup %9140 }
 0x207   :  { %v689_v37 = vmul.f32 %v9141_v36, %v9139_v35  ;;  %v7571_v35 = vld [vmem:[%s11133_s2 + $0x1e] sm:$0x3] }
 0x209   :  { %8261 = vmatmul.mubr.msk.f32.vlgmr.msra.gmra.mxu0 %vm44_vm1, %v689_v37  ;;  %8272 = vmatmul.mubr.msk.f32.vlgmr.msra.gmra.mxu1 %vm44_vm1, %v689_v37 }
 0x20a   :  { %8275 = vmatpush3.msra.mxu0 %v9531_v9  ;;  %8286 = vmatpush3.msra.mxu1 %v9536_v10 }
 0x20b   :  { %8276 = vmatprep.subr.mxu0 %v9410_v2  ;;  %8287 = vmatprep.subr.mxu1 %v9410_v2 }
 0x20c   :  { %8277 = vmatpush3.msra.mxu0 %v9545_v11  ;;  %8288 = vmatpush3.msra.mxu1 %v9550_v12 }
 0x20d   :  { %8278 = vmatprep.subr.mxu0 %v9410_v2  ;;  %8289 = vmatprep.subr.mxu1 %v9410_v2 }
 0x20e   :  { %8279 = vmatpush3.msra.mxu0 %v9559_v13  ;;  %8290 = vmatpush3.msra.mxu1 %v9564_v14 }
 0x20f   :  { %8280 = vmatprep.subr.mxu0 %v9410_v2  ;;  %8291 = vmatprep.subr.mxu1 %v9410_v2 }
 0x210   :  { %8281 = vmatpush3.msra.mxu0 %v9573_v15  ;;  %8282 = vmatprep.mubr.msk.f32.mxu0 %vm9411_vm0, %v9410_v2 }
 0x211   :  { %8292 = vmatpush3.msra.mxu1 %v9580_v16  ;;  %8293 = vmatprep.mubr.msk.f32.mxu1 %vm9411_vm0, %v9410_v2 }
 0x212   :  { %8283 = vmatmul.mubr.msk.f32.vlgmr.msra.gmra.mxu0 %vm44_vm1, %v689_v37  ;;  %8294 = vmatmul.mubr.msk.f32.vlgmr.msra.gmra.mxu1 %vm44_vm1, %v689_v37 }
 0x213   :  { %8296 = vmatprep.subr.mxu0 %v9410_v2  ;;  %8307 = vmatprep.subr.mxu1 %v9410_v2 }
 0x214   :  { %8297 = vmatpush3.msra.mxu0 %v9471_v0  ;;  %8308 = vmatpush3.msra.mxu1 %v9476_v1 }
 0x215   :  { %8298 = vmatprep.subr.mxu0 %v9410_v2  ;;  %8309 = vmatprep.subr.mxu1 %v9410_v2 }
 0x216   :  { %8299 = vmatpush3.msra.mxu0 %v9483_v3  ;;  %8310 = vmatpush3.msra.mxu1 %v9488_v4 }
 0x217   :  { %8300 = vmatprep.subr.mxu0 %v9410_v2  ;;  %8311 = vmatprep.subr.mxu1 %v9410_v2 }
 0x218   :  { %8301 = vmatpush3.msra.mxu0 %v9497_v5  ;;  %8312 = vmatpush3.msra.mxu1 %v9502_v6 }
 0x219   :  { %8302 = vmatprep.subr.mxu0 %v9410_v2  ;;  %8313 = vmatprep.subr.mxu1 %v9410_v2 }
 0x21a   :  { %8303 = vmatpush3.msra.mxu0 %v9511_v7  ;;  %8314 = vmatpush3.msra.mxu1 %v9518_v8 }
 0x21b   :  { %8304 = vmatprep.mubr.msk.f32.mxu0 %vm9411_vm0, %v9410_v2  ;;  %8315 = vmatprep.mubr.msk.f32.mxu1 %vm9411_vm0, %v9410_v2 }
 0x21c   :  { %8318 = vmatprep.subr.mxu0 %v9410_v2  ;;  %8329 = vmatprep.subr.mxu1 %v9410_v2 }
 0x2c9   :  { %v767_v40 = vpop.f32.mrf.mxu0  ;;  %v844_v41 = vpop.f32.mrf.mxu1 }
 0x2ca   :  { %v771_v42 = vadd.f32 %v7557_v38, %v767_v40  ;;  %v848_v43 = vadd.f32 %v7558_v39, %v844_v41  ;;  %v7570_v41 = vld [vmem:[%s11133_s2 + $0x1c] sm:$0x3] }
 0x2cb   :  { %v8262_v44 = vpop.f32.mrf.mxu0  ;;  %v8273_v45 = vpop.f32.mrf.mxu1 }
 0x2cc   :  { %v7562_v46 = vmul.f32 -1.442695, %v771_v42  ;;  %v7564_v47 = vmul.f32 -1.442695, %v848_v43 }
 0x2ce   :  { %9142 = vpow2.f32 %v7562_v46 }
 0x2cf   :  { %9144 = vpow2.f32 %v7564_v47 }
 0x2d2   :  { %v921_v49 = vpop.f32.mrf.mxu0  ;;  %v993_v50 = vpop.f32.mrf.mxu1 }
 0x2d3   :  { %v997_v51 = vadd.f32 %v7560_v48, %v993_v50  ;;  %v925_v56 = vadd.f32 %v7559_v54, %v921_v49 }
 0x2d4   :  { %v8284_v52 = vpop.f32.mrf.mxu0  ;;  %v8295_v53 = vpop.f32.mrf.mxu1 }
 0x2d5   :  { %v7567_v55 = vmul.f32 -1.442695, %v997_v51 }
 0x2d7   :  { %9146 = vpow2.f32 %v7567_v55 }
 0x2d8   :  { %9148 = vtanh.f32 %v925_v56 }
 0x2db   :  { %v9143_v57 = vpop.eup %9142 }
 0x2dc   :  { %v9145_v58 = vpop.eup %9144  ;;  %v775_v59 = vadd.f32 1.0, %v9143_v57 }
 0x2dd   :  { %v852_v60 = vadd.f32 1.0, %v9145_v58 }
 0x2de   :  { %9150 = vrcp.f32 %v775_v59  ;;  %v7579_v59 = vld [vmem:[%s11133_s2 + $0x20] sm:$0x3] }
 0x2df   :  { %9152 = vrcp.f32 %v852_v60  ;;  %v7580_v60 = vld [vmem:[%s11133_s2 + $0x22] sm:$0x3] }
 0x2e4   :  { %v9147_v61 = vpop.eup %9146 }
 0x2e5   :  { %v9149_v62 = vpop.eup %9148  ;;  %v1001_v19 = vadd.f32 1.0, %v9147_v61 }
 0x2e7   :  { %9154 = vrcp.f32 %v1001_v19 }
 0x2eb   :  { %v9151_v63 = vpop.eup %9150 }
 0x2ec   :  { %v9153_v17 = vpop.eup %9152  ;;  %v1005_v18 = vmul.f32 %v9151_v63, %v9149_v62 }
 0x2ed   :  { %v1004_v20 = vmul.f32 %v9153_v17, %v9686_v34 }
 0x2ef   :  { %v9746_v21 = vadd.f32 %v1005_v18, %v1004_v20 }
 0x2f1   :  { %9156 = vtanh.f32 %v9746_v21 }
 0x2f4   :  { %v9155_v22 = vpop.eup %9154 }
 0x2fe   :  { %v9157_v23 = vpop.eup %9156 }
 0x2ff   :  { %v1008_v24 = vmul.f32 %v9157_v23, %v9155_v22  ;;  %v7582_v22 = vld [vmem:[%s11133_s2 + $0x26] sm:$0x3] }
 0x301   :  { %8305 = vmatmul.mubr.msk.f32.vlgmr.msra.gmra.mxu0 %vm44_vm1, %v1008_v24  ;;  %8316 = vmatmul.mubr.msk.f32.vlgmr.msra.gmra.mxu1 %vm44_vm1, %v1008_v24 }
 0x302   :  { %8319 = vmatpush3.msra.mxu0 %v9531_v9  ;;  %8330 = vmatpush3.msra.mxu1 %v9536_v10 }
 0x303   :  { %8320 = vmatprep.subr.mxu0 %v9410_v2  ;;  %8331 = vmatprep.subr.mxu1 %v9410_v2 }
 0x304   :  { %8321 = vmatpush3.msra.mxu0 %v9545_v11  ;;  %8332 = vmatpush3.msra.mxu1 %v9550_v12 }
 0x305   :  { %8322 = vmatprep.subr.mxu0 %v9410_v2  ;;  %8333 = vmatprep.subr.mxu1 %v9410_v2 }
 0x306   :  { %8323 = vmatpush3.msra.mxu0 %v9559_v13  ;;  %8334 = vmatpush3.msra.mxu1 %v9564_v14 }
 0x307   :  { %8324 = vmatprep.subr.mxu0 %v9410_v2  ;;  %8335 = vmatprep.subr.mxu1 %v9410_v2 }
 0x308   :  { %8325 = vmatpush3.msra.mxu0 %v9573_v15  ;;  %8326 = vmatprep.mubr.msk.f32.mxu0 %vm9411_vm0, %v9410_v2 }
 0x309   :  { %8336 = vmatpush3.msra.mxu1 %v9580_v16  ;;  %8337 = vmatprep.mubr.msk.f32.mxu1 %vm9411_vm0, %v9410_v2 }
 0x30a   :  { %8327 = vmatmul.mubr.msk.f32.vlgmr.msra.gmra.mxu0 %vm44_vm1, %v1008_v24  ;;  %8338 = vmatmul.mubr.msk.f32.vlgmr.msra.gmra.mxu1 %vm44_vm1, %v1008_v24 }
 0x30b   :  { %8340 = vmatprep.subr.mxu0 %v9410_v2  ;;  %8351 = vmatprep.subr.mxu1 %v9410_v2 }
 0x30c   :  { %8341 = vmatpush3.msra.mxu0 %v9471_v0  ;;  %8352 = vmatpush3.msra.mxu1 %v9476_v1 }
 0x30d   :  { %8342 = vmatprep.subr.mxu0 %v9410_v2  ;;  %8353 = vmatprep.subr.mxu1 %v9410_v2 }
 0x30e   :  { %8343 = vmatpush3.msra.mxu0 %v9483_v3  ;;  %8354 = vmatpush3.msra.mxu1 %v9488_v4 }
 0x30f   :  { %8344 = vmatprep.subr.mxu0 %v9410_v2  ;;  %8355 = vmatprep.subr.mxu1 %v9410_v2 }
 0x310   :  { %8345 = vmatpush3.msra.mxu0 %v9497_v5  ;;  %8356 = vmatpush3.msra.mxu1 %v9502_v6 }
 0x311   :  { %8346 = vmatprep.subr.mxu0 %v9410_v2  ;;  %8357 = vmatprep.subr.mxu1 %v9410_v2 }
 0x312   :  { %8347 = vmatpush3.msra.mxu0 %v9511_v7  ;;  %8358 = vmatpush3.msra.mxu1 %v9518_v8 }
 0x313   :  { %8348 = vmatprep.mubr.msk.f32.mxu0 %vm9411_vm0, %v9410_v2  ;;  %8359 = vmatprep.mubr.msk.f32.mxu1 %vm9411_vm0, %v9410_v2 }
 0x314   :  { %8362 = vmatprep.subr.mxu0 %v9410_v2  ;;  %8373 = vmatprep.subr.mxu1 %v9410_v2 }
 0x3c1   :  { %v1086_v27 = vpop.f32.mrf.mxu0  ;;  %v1163_v28 = vpop.f32.mrf.mxu1 }
 0x3c2   :  { %v1090_v29 = vadd.f32 %v7568_v25, %v1086_v27  ;;  %v1167_v30 = vadd.f32 %v7569_v26, %v1163_v28  ;;  %v7581_v28 = vld [vmem:[%s11133_s2 + $0x24] sm:$0x3] }
 0x3c3   :  { %v8306_v31 = vpop.f32.mrf.mxu0  ;;  %v8317_v32 = vpop.f32.mrf.mxu1 }
 0x3c4   :  { %v7573_v33 = vmul.f32 -1.442695, %v1090_v29  ;;  %v7575_v34 = vmul.f32 -1.442695, %v1167_v30 }
 0x3c6   :  { %9158 = vpow2.f32 %v7573_v33 }
 0x3c7   :  { %9160 = vpow2.f32 %v7575_v34 }
 0x3ca   :  { %v1240_v36 = vpop.f32.mrf.mxu0  ;;  %v1312_v37 = vpop.f32.mrf.mxu1 }
 0x3cb   :  { %v1316_v38 = vadd.f32 %v7571_v35, %v1312_v37  ;;  %v1244_v43 = vadd.f32 %v7570_v41, %v1240_v36 }
 0x3cc   :  { %v8328_v39 = vpop.f32.mrf.mxu0  ;;  %v8339_v40 = vpop.f32.mrf.mxu1 }
 0x3cd   :  { %v7578_v42 = vmul.f32 -1.442695, %v1316_v38 }
 0x3cf   :  { %9162 = vpow2.f32 %v7578_v42 }
 0x3d0   :  { %9164 = vtanh.f32 %v1244_v43 }
 0x3d3   :  { %v9159_v44 = vpop.eup %9158 }
 0x3d4   :  { %v9161_v45 = vpop.eup %9160  ;;  %v1094_v46 = vadd.f32 1.0, %v9159_v44 }
 0x3d5   :  { %v1171_v47 = vadd.f32 1.0, %v9161_v45 }
 0x3d6   :  { %9166 = vrcp.f32 %v1094_v46 }
 0x3d7   :  { %9168 = vrcp.f32 %v1171_v47 }
 0x3dc   :  { %v9163_v48 = vpop.eup %9162 }
 0x3dd   :  { %v9165_v49 = vpop.eup %9164  ;;  %v1320_v53 = vadd.f32 1.0, %v9163_v48  ;;  %v7593_v48 = vld [vmem:[%s11133_s2 + $0x2e] sm:$0x3] }
 0x3df   :  { %9170 = vrcp.f32 %v1320_v53 }
 0x3e3   :  { %v9167_v50 = vpop.eup %9166 }
 0x3e4   :  { %v9169_v51 = vpop.eup %9168  ;;  %v1324_v52 = vmul.f32 %v9167_v50, %v9165_v49 }
 0x3e5   :  { %v1323_v54 = vmul.f32 %v9169_v51, %v9746_v21 }
 0x3e7   :  { %v9806_v55 = vadd.f32 %v1324_v52, %v1323_v54  ;;  %v7592_v54 = vld [vmem:[%s11133_s2 + $0x2c] sm:$0x3] }
 0x3e9   :  { %9172 = vtanh.f32 %v9806_v55 }
 0x3ec   :  { %v9171_v56 = vpop.eup %9170 }
 0x3f6   :  { %v9173_v57 = vpop.eup %9172 }
 0x3f7   :  { %v1327_v58 = vmul.f32 %v9173_v57, %v9171_v56 }
 0x3f9   :  { %8349 = vmatmul.mubr.msk.f32.vlgmr.msra.gmra.mxu0 %vm44_vm1, %v1327_v58  ;;  %8360 = vmatmul.mubr.msk.f32.vlgmr.msra.gmra.mxu1 %vm44_vm1, %v1327_v58 }
 0x3fa   :  { %8363 = vmatpush3.msra.mxu0 %v9531_v9  ;;  %8374 = vmatpush3.msra.mxu1 %v9536_v10 }
 0x3fb   :  { %8364 = vmatprep.subr.mxu0 %v9410_v2  ;;  %8375 = vmatprep.subr.mxu1 %v9410_v2 }
 0x3fc   :  { %8365 = vmatpush3.msra.mxu0 %v9545_v11  ;;  %8376 = vmatpush3.msra.mxu1 %v9550_v12 }
 0x3fd   :  { %8366 = vmatprep.subr.mxu0 %v9410_v2  ;;  %8377 = vmatprep.subr.mxu1 %v9410_v2 }
 0x3fe   :  { %8367 = vmatpush3.msra.mxu0 %v9559_v13  ;;  %8378 = vmatpush3.msra.mxu1 %v9564_v14 }
 0x3ff   :  { %8368 = vmatprep.subr.mxu0 %v9410_v2  ;;  %8379 = vmatprep.subr.mxu1 %v9410_v2 }
 0x400   :  { %8369 = vmatpush3.msra.mxu0 %v9573_v15  ;;  %8370 = vmatprep.mubr.msk.f32.mxu0 %vm9411_vm0, %v9410_v2 }
 0x401   :  { %8380 = vmatpush3.msra.mxu1 %v9580_v16  ;;  %8381 = vmatprep.mubr.msk.f32.mxu1 %vm9411_vm0, %v9410_v2 }
 0x402   :  { %8371 = vmatmul.mubr.msk.f32.vlgmr.msra.gmra.mxu0 %vm44_vm1, %v1327_v58  ;;  %8382 = vmatmul.mubr.msk.f32.vlgmr.msra.gmra.mxu1 %vm44_vm1, %v1327_v58 }
 0x403   :  { %8384 = vmatprep.subr.mxu0 %v9410_v2  ;;  %8395 = vmatprep.subr.mxu1 %v9410_v2 }
 0x404   :  { %8385 = vmatpush3.msra.mxu0 %v9471_v0  ;;  %8396 = vmatpush3.msra.mxu1 %v9476_v1 }
 0x405   :  { %8386 = vmatprep.subr.mxu0 %v9410_v2  ;;  %8397 = vmatprep.subr.mxu1 %v9410_v2 }
 0x406   :  { %8387 = vmatpush3.msra.mxu0 %v9483_v3  ;;  %8398 = vmatpush3.msra.mxu1 %v9488_v4 }
 0x407   :  { %8388 = vmatprep.subr.mxu0 %v9410_v2  ;;  %8399 = vmatprep.subr.mxu1 %v9410_v2 }
 0x408   :  { %8389 = vmatpush3.msra.mxu0 %v9497_v5  ;;  %8400 = vmatpush3.msra.mxu1 %v9502_v6 }
 0x409   :  { %8390 = vmatprep.subr.mxu0 %v9410_v2  ;;  %8401 = vmatprep.subr.mxu1 %v9410_v2 }
 0x40a   :  { %8391 = vmatpush3.msra.mxu0 %v9511_v7  ;;  %8402 = vmatpush3.msra.mxu1 %v9518_v8 }
 0x40b   :  { %8392 = vmatprep.mubr.msk.f32.mxu0 %vm9411_vm0, %v9410_v2  ;;  %8403 = vmatprep.mubr.msk.f32.mxu1 %vm9411_vm0, %v9410_v2 }
 0x40c   :  { %8406 = vmatprep.subr.mxu0 %v9410_v2  ;;  %8417 = vmatprep.subr.mxu1 %v9410_v2 }
 0x4b9   :  { %v1405_v61 = vpop.f32.mrf.mxu0  ;;  %v1482_v62 = vpop.f32.mrf.mxu1 }
 0x4ba   :  { %v1409_v63 = vadd.f32 %v7579_v59, %v1405_v61  ;;  %v1486_v17 = vadd.f32 %v7580_v60, %v1482_v62 }
 0x4bb   :  { %v8350_v18 = vpop.f32.mrf.mxu0  ;;  %v8361_v19 = vpop.f32.mrf.mxu1 }
 0x4bc   :  { %v7584_v20 = vmul.f32 -1.442695, %v1409_v63  ;;  %v7586_v21 = vmul.f32 -1.442695, %v1486_v17 }
 0x4be   :  { %9174 = vpow2.f32 %v7584_v20 }
 0x4bf   :  { %9176 = vpow2.f32 %v7586_v21 }
 0x4c2   :  { %v1559_v23 = vpop.f32.mrf.mxu0  ;;  %v1631_v24 = vpop.f32.mrf.mxu1 }
 0x4c3   :  { %v1635_v25 = vadd.f32 %v7582_v22, %v1631_v24  ;;  %v1563_v30 = vadd.f32 %v7581_v28, %v1559_v23  ;;  %v7602_v28 = vld [vmem:[%s11133_s2 + $0x32] sm:$0x3] }
 0x4c4   :  { %v8372_v26 = vpop.f32.mrf.mxu0  ;;  %v8383_v27 = vpop.f32.mrf.mxu1 }
 0x4c5   :  { %v7589_v29 = vmul.f32 -1.442695, %v1635_v25  ;;  %v2611_v25 = vld [vmem:[%s11132_s1] sm:$0x3]  ;;  %v9412_v26 = vmov 0  }
 0x4c6   :  { %9108 = vset.pattern.permute.xlu0 %v9412_v26  ;;  %9109 = vset.pattern.permute.xlu1 %v9412_v26  ;;  %v7601_v27 = vld [vmem:[%s11133_s2 + $0x30] sm:$0x3] }
 0x4c7   :  { %9178 = vpow2.f32 %v7589_v29  ;;  %2613 = vperm.xlu0 %9108, %v2611_v25  }
 0x4c8   :  { %9180 = vtanh.f32 %v1563_v30 }
 0x4cb   :  { %v9175_v31 = vpop.eup %9174 }
 0x4cc   :  { %v9177_v32 = vpop.eup %9176  ;;  %v1413_v33 = vadd.f32 1.0, %v9175_v31 }
 0x4cd   :  { %v1490_v34 = vadd.f32 1.0, %v9177_v32 }
 0x4ce   :  { %9182 = vrcp.f32 %v1413_v33 }
 0x4cf   :  { %9184 = vrcp.f32 %v1490_v34 }
 0x4d4   :  { %v9179_v35 = vpop.eup %9178 }
 0x4d5   :  { %v9181_v36 = vpop.eup %9180  ;;  %v1639_v40 = vadd.f32 1.0, %v9179_v35 }
 0x4d7   :  { %9186 = vrcp.f32 %v1639_v40 }
 0x4db   :  { %v9183_v37 = vpop.eup %9182 }
 0x4dc   :  { %v9185_v38 = vpop.eup %9184  ;;  %v1643_v39 = vmul.f32 %v9183_v37, %v9181_v36  ;;  %v7604_v37 = vld [vmem:[%s11133_s2 + $0x36] sm:$0x3] }
 0x4dd   :  { %v1642_v41 = vmul.f32 %v9185_v38, %v9806_v55 }
 0x4df   :  { %v9866_v42 = vadd.f32 %v1643_v39, %v1642_v41 }
 0x4e1   :  { %9188 = vtanh.f32 %v9866_v42 }
 0x4e4   :  { %v9187_v43 = vpop.eup %9186 }
 0x4ee   :  { %v9189_v44 = vpop.eup %9188 }
 0x4ef   :  { %v1646_v45 = vmul.f32 %v9189_v44, %v9187_v43  ;;  %v7603_v43 = vld [vmem:[%s11133_s2 + $0x34] sm:$0x3] }
 0x4f1   :  { %8393 = vmatmul.mubr.msk.f32.vlgmr.msra.gmra.mxu0 %vm44_vm1, %v1646_v45  ;;  %8404 = vmatmul.mubr.msk.f32.vlgmr.msra.gmra.mxu1 %vm44_vm1, %v1646_v45 }
 0x4f2   :  { %8407 = vmatpush3.msra.mxu0 %v9531_v9  ;;  %8418 = vmatpush3.msra.mxu1 %v9536_v10 }
 0x4f3   :  { %8408 = vmatprep.subr.mxu0 %v9410_v2  ;;  %8419 = vmatprep.subr.mxu1 %v9410_v2 }
 0x4f4   :  { %8409 = vmatpush3.msra.mxu0 %v9545_v11  ;;  %8420 = vmatpush3.msra.mxu1 %v9550_v12 }
 0x4f5   :  { %8410 = vmatprep.subr.mxu0 %v9410_v2  ;;  %8421 = vmatprep.subr.mxu1 %v9410_v2 }
 0x4f6   :  { %8411 = vmatpush3.msra.mxu0 %v9559_v13  ;;  %8422 = vmatpush3.msra.mxu1 %v9564_v14 }
 0x4f7   :  { %8412 = vmatprep.subr.mxu0 %v9410_v2  ;;  %8423 = vmatprep.subr.mxu1 %v9410_v2 }
 0x4f8   :  { %8413 = vmatpush3.msra.mxu0 %v9573_v15  ;;  %8414 = vmatprep.mubr.msk.f32.mxu0 %vm9411_vm0, %v9410_v2 }
 0x4f9   :  { %8424 = vmatpush3.msra.mxu1 %v9580_v16  ;;  %8425 = vmatprep.mubr.msk.f32.mxu1 %vm9411_vm0, %v9410_v2 }
 0x4fa   :  { %8415 = vmatmul.mubr.msk.f32.vlgmr.msra.gmra.mxu0 %vm44_vm1, %v1646_v45  ;;  %8426 = vmatmul.mubr.msk.f32.vlgmr.msra.gmra.mxu1 %vm44_vm1, %v1646_v45 }
 0x4fb   :  { %8428 = vmatprep.subr.mxu0 %v9410_v2  ;;  %8439 = vmatprep.subr.mxu1 %v9410_v2 }
 0x4fc   :  { %8429 = vmatpush3.msra.mxu0 %v9471_v0  ;;  %8440 = vmatpush3.msra.mxu1 %v9476_v1  ;;  %v7590_v0 = vld [vmem:[%s11133_s2 + $0x28] sm:$0x3]  ;;  %v7591_v1 = vld [vmem:[%s11133_s2 + $0x2a] sm:$0x3] }
 0x4fd   :  { %8430 = vmatprep.subr.mxu0 %v9410_v2  ;;  %8441 = vmatprep.subr.mxu1 %v9410_v2 }
 0x4fe   :  { %8431 = vmatpush3.msra.mxu0 %v9483_v3  ;;  %8442 = vmatpush3.msra.mxu1 %v9488_v4 }
 0x4ff   :  { %8432 = vmatprep.subr.mxu0 %v9410_v2  ;;  %8443 = vmatprep.subr.mxu1 %v9410_v2 }
 0x500   :  { %8433 = vmatpush3.msra.mxu0 %v9497_v5  ;;  %8444 = vmatpush3.msra.mxu1 %v9502_v6 }
 0x501   :  { %8434 = vmatprep.subr.mxu0 %v9410_v2  ;;  %8445 = vmatprep.subr.mxu1 %v9410_v2 }
 0x502   :  { %8435 = vmatpush3.msra.mxu0 %v9511_v7  ;;  %8446 = vmatpush3.msra.mxu1 %v9518_v8 }
 0x503   :  { %8436 = vmatprep.mubr.msk.f32.mxu0 %vm9411_vm0, %v9410_v2  ;;  %8447 = vmatprep.mubr.msk.f32.mxu1 %vm9411_vm0, %v9410_v2 }
 0x504   :  { %8450 = vmatprep.subr.mxu0 %v9410_v2  ;;  %8461 = vmatprep.subr.mxu1 %v9410_v2 }
 0x5b1   :  { %v1724_v3 = vpop.f32.mrf.mxu0  ;;  %v1801_v4 = vpop.f32.mrf.mxu1 }
 0x5b2   :  { %v1728_v5 = vadd.f32 %v7590_v0, %v1724_v3  ;;  %v1805_v6 = vadd.f32 %v7591_v1, %v1801_v4 }
 0x5b3   :  { %v8394_v7 = vpop.f32.mrf.mxu0  ;;  %v8405_v8 = vpop.f32.mrf.mxu1 }
 0x5b4   :  { %v7595_v46 = vmul.f32 -1.442695, %v1728_v5  ;;  %v7597_v47 = vmul.f32 -1.442695, %v1805_v6 }
 0x5b6   :  { %9190 = vpow2.f32 %v7595_v46 }
 0x5b7   :  { %9192 = vpow2.f32 %v7597_v47 }
 0x5ba   :  { %v1878_v49 = vpop.f32.mrf.mxu0  ;;  %v1950_v50 = vpop.f32.mrf.mxu1 }
 0x5bb   :  { %v1954_v51 = vadd.f32 %v7593_v48, %v1950_v50  ;;  %v1882_v56 = vadd.f32 %v7592_v54, %v1878_v49  ;;  %v9359_v54 = vld [vmem:[%s11134_s3 + $0x78] sm:$0xff] }
 0x5bc   :  { %v8416_v52 = vpop.f32.mrf.mxu0  ;;  %v8427_v53 = vpop.f32.mrf.mxu1 }
 0x5bd   :  { %v7600_v55 = vmul.f32 -1.442695, %v1954_v51  ;;  %v9358_v53 = vld [vmem:[%s11134_s3 + $0x58] sm:$0xff] }
 0x5bf   :  { %9194 = vpow2.f32 %v7600_v55  ;;  %v9360_v55 = vld [vmem:[%s11134_s3 + $0x50] sm:$0xff] }
 0x5c0   :  { %9196 = vtanh.f32 %v1882_v56  ;;  %v9361_v56 = vld [vmem:[%s11134_s3 + $0x70] sm:$0xff] }
 0x5c3   :  { %v9191_v57 = vpop.eup %9190 }
 0x5c4   :  { %v9193_v58 = vpop.eup %9192  ;;  %v1732_v59 = vadd.f32 1.0, %v9191_v57  ;;  %v9362_v57 = vld [vmem:[%s11134_s3 + $0x48] sm:$0xff] }
 0x5c5   :  { %v1809_v60 = vadd.f32 1.0, %v9193_v58  ;;  %v9363_v58 = vld [vmem:[%s11134_s3 + $0x68] sm:$0xff] }
 0x5c6   :  { %9198 = vrcp.f32 %v1732_v59  ;;  %v9364_v59 = vld [vmem:[%s11134_s3 + $0x40] sm:$0xff] }
 0x5c7   :  { %9200 = vrcp.f32 %v1809_v60  ;;  %v9365_v60 = vld [vmem:[%s11134_s3 + $0x60] sm:$0xff] }
 0x5cc   :  { %v9195_v61 = vpop.eup %9194 }
 0x5cd   :  { %v9197_v62 = vpop.eup %9196  ;;  %v1958_v19 = vadd.f32 1.0, %v9195_v61  ;;  %v2604_v61 = vlaneseq }
 0x5cf   :  { %9202 = vrcp.f32 %v1958_v19  ;;  %v10072_v19 = vld [vmem:[%s11136_s5 + $0x10] sm:$0xff] }
 0x5d3   :  { %v9199_v63 = vpop.eup %9198 }
 0x5d4   :  { %v9201_v17 = vpop.eup %9200  ;;  %v1962_v18 = vmul.f32 %v9199_v63, %v9197_v62  ;;  %v10055_v62 = vld [vmem:[%s11135_s4 + $0x8] sm:$0xff]  ;;  %v10060_v63 = vld [vmem:[%s11135_s4] sm:$0xff] }
 0x5d5   :  { %v1961_v20 = vmul.f32 %v9201_v17, %v9866_v42  ;;  %v10065_v17 = vld [vmem:[%s11136_s5 + $0x18] sm:$0xff] }
 0x5d7   :  { %v9926_v21 = vadd.f32 %v1962_v18, %v1961_v20  ;;  %v2614_v18 = vpop.permute.xlu0 %2613  ;;  %v10074_v20 = vand.u32 127, %v2604_v61 }
 0x5d9   :  { %9204 = vtanh.f32 %v9926_v21  ;;  %vm2615_vm3 = vcmp.eq.s32.totalorder %v10074_v20, %v2614_v18  ;;  %v10281_v18 = vld [vmem:[%s11137_s6 + $0x18] sm:$0xff] }
 0x5dc   :  { %v9203_v22 = vpop.eup %9202 }
 0x5e6   :  { %v9205_v23 = vpop.eup %9204 }
 0x5e7   :  { %v1965_v24 = vmul.f32 %v9205_v23, %v9203_v22  ;;  %v10090_v22 = vld [vmem:[%s11136_s5 + $0x38] sm:$0xff]  ;;  %v10096_v23 = vld [vmem:[%s11136_s5] sm:$0xff] }
 0x5e9   :  { %8437 = vmatmul.mubr.msk.f32.vlgmr.msra.gmra.mxu0 %vm44_vm1, %v1965_v24  ;;  %8448 = vmatmul.mubr.msk.f32.vlgmr.msra.gmra.mxu1 %vm44_vm1, %v1965_v24 }
 0x5ea   :  { %8451 = vmatpush3.msra.mxu0 %v9531_v9  ;;  %8462 = vmatpush3.msra.mxu1 %v9536_v10  ;;  %v9350_v9 = vld [vmem:[%s11134_s3 + $0x18] sm:$0xff] }
 0x5eb   :  { %8452 = vmatprep.subr.mxu0 %v9410_v2  ;;  %8463 = vmatprep.subr.mxu1 %v9410_v2  ;;  %v9351_v10 = vld [vmem:[%s11134_s3 + $0x38] sm:$0xff] }
 0x5ec   :  { %8453 = vmatpush3.msra.mxu0 %v9545_v11  ;;  %8464 = vmatpush3.msra.mxu1 %v9550_v12  ;;  %v9352_v11 = vld [vmem:[%s11134_s3 + $0x10] sm:$0xff] }
 0x5ed   :  { %8454 = vmatprep.subr.mxu0 %v9410_v2  ;;  %8465 = vmatprep.subr.mxu1 %v9410_v2  ;;  %v9353_v12 = vld [vmem:[%s11134_s3 + $0x30] sm:$0xff] }
 0x5ee   :  { %8455 = vmatpush3.msra.mxu0 %v9559_v13  ;;  %8466 = vmatpush3.msra.mxu1 %v9564_v14  ;;  %v9354_v13 = vld [vmem:[%s11134_s3 + $0x8] sm:$0xff] }
 0x5ef   :  { %8456 = vmatprep.subr.mxu0 %v9410_v2  ;;  %8467 = vmatprep.subr.mxu1 %v9410_v2  ;;  %v9355_v14 = vld [vmem:[%s11134_s3 + $0x28] sm:$0xff] }
 0x5f0   :  { %8457 = vmatpush3.msra.mxu0 %v9573_v15  ;;  %8458 = vmatprep.mubr.msk.f32.mxu0 %vm9411_vm0, %v9410_v2  ;;  %v9356_v15 = vld [vmem:[%s11134_s3] sm:$0xff] }
 0x5f1   :  { %8468 = vmatpush3.msra.mxu1 %v9580_v16  ;;  %8469 = vmatprep.mubr.msk.f32.mxu1 %vm9411_vm0, %v9410_v2  ;;  %v9357_v16 = vld [vmem:[%s11134_s3 + $0x20] sm:$0xff]  ;;  %s9418_s3 = smov 80  }
 0x5f2   :  { %8459 = vmatmul.mubr.msk.f32.vlgmr.msra.gmra.mxu0 %vm44_vm1, %v1965_v24  ;;  %8470 = vmatmul.mubr.msk.f32.vlgmr.msra.gmra.mxu1 %vm44_vm1, %v1965_v24  ;;  %v10099_v24 = vsel %vm2615_vm3, 1.0, %v9410_v2 }
 0x5f3   :  { %8472 = vmatprep.subr.mxu0 %v9410_v2  ;;  %8483 = vmatprep.subr.mxu1 %v9410_v2 }
 0x5f4   :  { %8473 = vmatpush3.msra.mxu0 %v9350_v9  ;;  %8484 = vmatpush3.msra.mxu1 %v9351_v10  ;;  %v10107_v9 = vld [vmem:[%s11136_s5 + $0x30] sm:$0xff]  ;;  %v10116_v10 = vld [vmem:[%s11136_s5 + $0x28] sm:$0xff] }
 0x5f5   :  { %8474 = vmatprep.subr.mxu0 %v9410_v2  ;;  %8485 = vmatprep.subr.mxu1 %v9410_v2 }
 0x5f6   :  { %8475 = vmatpush3.msra.mxu0 %v9352_v11  ;;  %8486 = vmatpush3.msra.mxu1 %v9353_v12  ;;  %v10126_v11 = vld [vmem:[%s11136_s5 + $0x20] sm:$0xff]  ;;  %v7612_v12 = vld [vmem:[%s11133_s2 + $0x38] sm:$0x3] }
 0x5f7   :  { %8476 = vmatprep.subr.mxu0 %v9410_v2  ;;  %8487 = vmatprep.subr.mxu1 %v9410_v2 }
 0x5f8   :  { %8477 = vmatpush3.msra.mxu0 %v9354_v13  ;;  %8488 = vmatpush3.msra.mxu1 %v9355_v14  ;;  %v7613_v13 = vld [vmem:[%s11133_s2 + $0x3a] sm:$0x3] }
 0x5f9   :  { %8478 = vmatprep.subr.mxu0 %v9410_v2  ;;  %8489 = vmatprep.subr.mxu1 %v9410_v2 }
 0x5fa   :  { %8479 = vmatpush3.msra.mxu0 %v9356_v15  ;;  %8490 = vmatpush3.msra.mxu1 %v9357_v16 }
 0x5fb   :  { %8480 = vmatprep.mubr.msk.f32.mxu0 %vm9411_vm0, %v9410_v2  ;;  %8491 = vmatprep.mubr.msk.f32.mxu1 %vm9411_vm0, %v9410_v2 }
 0x5fc   :  { %8494 = vmatprep.subr.mxu0 %v9410_v2  ;;  %8505 = vmatprep.subr.mxu1 %v9410_v2 }
 0x6a9   :  { %v2043_v29 = vpop.f32.mrf.mxu0  ;;  %v2120_v30 = vpop.f32.mrf.mxu1 }
 0x6aa   :  { %v2047_v31 = vadd.f32 %v7601_v27, %v2043_v29  ;;  %v2124_v32 = vadd.f32 %v7602_v28, %v2120_v30  ;;  %v7615_v30 = vld [vmem:[%s11133_s2 + $0x3e] sm:$0x3] }
 0x6ab   :  { %v8438_v33 = vpop.f32.mrf.mxu0  ;;  %v8449_v34 = vpop.f32.mrf.mxu1 }
 0x6ac   :  { %v7606_v35 = vmul.f32 -1.442695, %v2047_v31  ;;  %v7608_v36 = vmul.f32 -1.442695, %v2124_v32 }
 0x6ae   :  { %9206 = vpow2.f32 %v7606_v35 }
 0x6af   :  { %9208 = vpow2.f32 %v7608_v36  ;;  %v7614_v36 = vld [vmem:[%s11133_s2 + $0x3c] sm:$0x3]  ;;  %s7685_s2 = sld [smem:[#allocation3 + $0x3]] }
 0x6b2   :  { %v2197_v38 = vpop.f32.mrf.mxu0  ;;  %v2269_v39 = vpop.f32.mrf.mxu1 }
 0x6b3   :  { %v2273_v40 = vadd.f32 %v7604_v37, %v2269_v39  ;;  %v2201_v45 = vadd.f32 %v7603_v43, %v2197_v38 }
 0x6b4   :  { %v8460_v41 = vpop.f32.mrf.mxu0  ;;  %v8471_v42 = vpop.f32.mrf.mxu1 }
 0x6b5   :  { %v7611_v44 = vmul.f32 -1.442695, %v2273_v40  ;;  %p4728_p7 = scmp.eq.s32.totalorder %s7685_s2, 1 }
 0x6b6   :  { %s5425_s2 = scalar_select %p5422_p8, 1, 0 }
 0x6b7   :  { %9210 = vpow2.f32 %v7611_v44  ;;  %s4731_s19 = scalar_select %p4728_p7, 1, 0 }
 0x6b8   :  { %9212 = vtanh.f32 %v2201_v45 }
 0x6bb   :  { %v9207_v0 = vpop.eup %9206 }
 0x6bc   :  { %v9209_v1 = vpop.eup %9208  ;;  %v2051_v3 = vadd.f32 1.0, %v9207_v0 }
 0x6bd   :  { %v2128_v4 = vadd.f32 1.0, %v9209_v1 }
 0x6be   :  { %9214 = vrcp.f32 %v2051_v3 }
 0x6bf   :  { %9216 = vrcp.f32 %v2128_v4 }
 0x6c4   :  { %v9211_v5 = vpop.eup %9210 }
 0x6c5   :  { %v9213_v6 = vpop.eup %9212  ;;  %v2277_v47 = vadd.f32 1.0, %v9211_v5 }
 0x6c7   :  { %9218 = vrcp.f32 %v2277_v47  ;;  %v10156_v47 = vld [vmem:[%s11136_s5 + $0x58] sm:$0xff] }
 0x6cb   :  { %v9215_v7 = vpop.eup %9214 }
 0x6cc   :  { %v9217_v8 = vpop.eup %9216  ;;  %v2281_v46 = vmul.f32 %v9215_v7, %v9213_v6 }
 0x6cd   :  { %v2280_v48 = vmul.f32 %v9217_v8, %v9926_v21  ;;  %v10081_v21 = vld [vmem:[%s11136_s5 + $0x8] sm:$0xff] }
 0x6cf   :  { %v10005_v49 = vadd.f32 %v2281_v46, %v2280_v48  ;;  %v10151_v46 = vld [vmem:[%s11135_s4 + $0x18] sm:$0xff]  ;;  %v10163_v48 = vld [vmem:[%s11135_s4 + $0x10] sm:$0xff] }
 0x6d1   :  { %9220 = vtanh.f32 %v10005_v49 }
 0x6d4   :  { %v9219_v50 = vpop.eup %9218 }
 0x6de   :  { %v9221_v51 = vpop.eup %9220 }
 0x6df   :  { %v2284_v52 = vmul.f32 %v9221_v51, %v9219_v50  ;;  %v10179_v50 = vld [vmem:[%s11136_s5 + $0x48] sm:$0xff] }
 0x6e0   :  { %v10184_v51 = vld [vmem:[%s11135_s4 + $0x28] sm:$0xff] }
 0x6e1   :  { %8481 = vmatmul.mubr.msk.f32.vlgmr.msra.gmra.mxu0 %vm44_vm1, %v2284_v52  ;;  %8492 = vmatmul.mubr.msk.f32.vlgmr.msra.gmra.mxu1 %vm44_vm1, %v2284_v52 }
 0x6e2   :  { %8495 = vmatpush3.msra.mxu0 %v9358_v53  ;;  %8506 = vmatpush3.msra.mxu1 %v9359_v54  ;;  %v10202_v53 = vld [vmem:[%s11135_s4 + $0x20] sm:$0xff]  ;;  %v10214_v54 = vld [vmem:[%s11136_s5 + $0x78] sm:$0xff] }
 0x6e3   :  { %8496 = vmatprep.subr.mxu0 %v9410_v2  ;;  %8507 = vmatprep.subr.mxu1 %v9410_v2 }
 0x6e4   :  { %8497 = vmatpush3.msra.mxu0 %v9360_v55  ;;  %8508 = vmatpush3.msra.mxu1 %v9361_v56  ;;  %v10219_v55 = vld [vmem:[%s11135_s4 + $0x38] sm:$0xff]  ;;  %v10230_v56 = vld [vmem:[%s11136_s5 + $0x70] sm:$0xff] }
 0x6e5   :  { %8498 = vmatprep.subr.mxu0 %v9410_v2  ;;  %8509 = vmatprep.subr.mxu1 %v9410_v2 }
 0x6e6   :  { %8499 = vmatpush3.msra.mxu0 %v9362_v57  ;;  %8510 = vmatpush3.msra.mxu1 %v9363_v58  ;;  %v10235_v57 = vld [vmem:[%s11135_s4 + $0x30] sm:$0xff]  ;;  %v10244_v58 = vld [vmem:[%s11136_s5 + $0x68] sm:$0xff] }
 0x6e7   :  { %8500 = vmatprep.subr.mxu0 %v9410_v2  ;;  %8511 = vmatprep.subr.mxu1 %v9410_v2 }
 0x6e8   :  { %8501 = vmatpush3.msra.mxu0 %v9364_v59  ;;  %8502 = vmatprep.mubr.msk.f32.mxu0 %vm9411_vm0, %v9410_v2  ;;  %v10254_v59 = vld [vmem:[%s11136_s5 + $0x60] sm:$0xff] }
 0x6e9   :  { %8512 = vmatpush3.msra.mxu1 %v9365_v60  ;;  %8513 = vmatprep.mubr.msk.f32.mxu1 %vm9411_vm0, %v9410_v2 }
 0x6ea   :  { %8503 = vmatmul.mubr.msk.f32.vlgmr.msra.gmra.mxu0 %vm44_vm1, %v2284_v52  ;;  %8514 = vmatmul.mubr.msk.f32.vlgmr.msra.gmra.mxu1 %vm44_vm1, %v2284_v52  ;;  %v10195_v52 = vld [vmem:[%s11136_s5 + $0x40] sm:$0xff] }
 0x6eb   :  { %8527 = vmatprep.subr.mxu1 %v9410_v2  ;;  %8531 = vmatprep.mubr.msk.f32.mxu1 %vm9411_vm0, %v9410_v2 }
 0x6ec   :  { %8516 = vmatprep.subr.mxu0 %v9410_v2  ;;  %8524 = vmatprep.mubr.msk.f32.mxu0 %vm9411_vm0, %v9410_v2 }
 0x6ed   :  { %8528 = vmatpush3.msra.mxu1 %v10055_v62  ;;  %8517 = vmatpush3.msra.mxu0 %v10065_v17 }
 0x6ee   :  { %8529 = vmatprep.subr.mxu1 %v9410_v2  ;;  %8518 = vmatprep.subr.mxu0 %v9410_v2 }
 0x6ef   :  { %8530 = vmatpush3.msra.mxu1 %v10060_v63  ;;  %8519 = vmatpush3.msra.mxu0 %v10072_v19 }
 0x6f0   :  { %8534 = vmatprep.subr.mxu1 %v9410_v2  ;;  %8520 = vmatprep.subr.mxu0 %v9410_v2 }
 0x6f1   :  { %8521 = vmatpush3.msra.mxu0 %v10081_v21  ;;  %8532 = vmatmul.mubr.msk.f32.vlgmr.msra.gmra.mxu1 %vm2706_vm2, %v10099_v24 }
 0x6f2   :  { %8522 = vmatprep.subr.mxu0 %v9410_v2  ;;  %8535 = vmatpush3.msra.mxu1 %v10090_v22 }
 0x6f3   :  { %8523 = vmatpush3.msra.mxu0 %v10096_v23  ;;  %8536 = vmatprep.subr.mxu1 %v9410_v2 }
 0x6f4   :  { %8542 = vmatprep.mubr.msk.f32.mxu1 %vm9411_vm0, %v9410_v2  ;;  %8537 = vmatpush3.msra.mxu1 %v10107_v9 }
 0x6f5   :  { %8552 = vmatprep.subr.mxu0 %v9410_v2  ;;  %8538 = vmatprep.subr.mxu1 %v9410_v2 }
 0x6f6   :  { %8539 = vmatpush3.msra.mxu1 %v10116_v10 }
 0x6f7   :  { %8540 = vmatprep.subr.mxu1 %v9410_v2 }
 0x6f8   :  { %8541 = vmatpush3.msra.mxu1 %v10126_v11 }
 0x6f9   :  { %8545 = vmatprep.subr.mxu1 %v9410_v2 }
 0x7a1   :  { %v2362_v14 = vpop.f32.mrf.mxu0  ;;  %v2439_v15 = vpop.f32.mrf.mxu1 }
 0x7a2   :  { %v2366_v16 = vadd.f32 %v7612_v12, %v2362_v14  ;;  %v2443_v25 = vadd.f32 %v7613_v13, %v2439_v15  ;;  %v10293_v12 = vld [vmem:[%s11137_s6 + $0x8] sm:$0xff]  ;;  %v10300_v13 = vld [vmem:[%s11137_s6] sm:$0xff] }
 0x7a3   :  { %v8482_v26 = vpop.f32.mrf.mxu0  ;;  %v8493_v27 = vpop.f32.mrf.mxu1 }
 0x7a4   :  { %v7617_v28 = vmul.f32 -1.442695, %v2366_v16  ;;  %v7619_v29 = vmul.f32 -1.442695, %v2443_v25 }
 0x7a6   :  { %9222 = vpow2.f32 %v7617_v28 }
 0x7a7   :  { %9224 = vpow2.f32 %v7619_v29 }
 0x7aa   :  { %v2516_v31 = vpop.f32.mrf.mxu0  ;;  %v2588_v32 = vpop.f32.mrf.mxu1 }
 0x7ab   :  { %v2592_v33 = vadd.f32 %v7615_v30, %v2588_v32  ;;  %v2520_v38 = vadd.f32 %v7614_v36, %v2516_v31 }
 0x7ac   :  { %v8504_v34 = vpop.f32.mrf.mxu0  ;;  %v8515_v35 = vpop.f32.mrf.mxu1 }
 0x7ad   :  { %v7622_v37 = vmul.f32 -1.442695, %v2592_v33 }
 0x7af   :  { %9226 = vpow2.f32 %v7622_v37 }
 0x7b0   :  { %9228 = vtanh.f32 %v2520_v38 }
 0x7b1   :  { %v2776_v60 = vpop.f32.mrf.mxu1 }
 0x7b3   :  { %v9223_v39 = vpop.eup %9222  ;;  %v8533_v61 = vpop.f32.mrf.mxu1 }
 0x7b4   :  { %v9225_v40 = vpop.eup %9224  ;;  %v2370_v41 = vadd.f32 1.0, %v9223_v39 }
 0x7b5   :  { %v2447_v42 = vadd.f32 1.0, %v9225_v40 }
 0x7b6   :  { %9230 = vrcp.f32 %v2370_v41 }
 0x7b7   :  { %9232 = vrcp.f32 %v2447_v42 }
 0x7bc   :  { %v9227_v43 = vpop.eup %9226 }
 0x7bd   :  { %v9229_v44 = vpop.eup %9228  ;;  %v2596_v3 = vadd.f32 1.0, %v9227_v43 }
 0x7bf   :  { %9234 = vrcp.f32 %v2596_v3 }
 0x7c3   :  { %v9231_v45 = vpop.eup %9230 }
 0x7c4   :  { %v9233_v0 = vpop.eup %9232  ;;  %v2600_v1 = vmul.f32 %v9231_v45, %v9229_v44 }
 0x7c5   :  { %v2599_v4 = vmul.f32 %v9233_v0, %v10005_v49  ;;  %v10168_v49 = vld [vmem:[%s11136_s5 + $0x50] sm:$0xff] }
 0x7c7   :  { %v10145_v5 = vadd.f32 %v2600_v1, %v2599_v4 }
 0x7c9   :  { %9236 = vtanh.f32 %v10145_v5 }
 0x7cc   :  { %v9235_v6 = vpop.eup %9234 }
 0x7d6   :  { %v9237_v7 = vpop.eup %9236 }
 0x7d7   :  { %v2603_v8 = vmul.f32 %v9237_v7, %v9235_v6 }
 0x7d9   :  { %8525 = vmatmul.mubr.msk.f32.vlgmr.msra.gmra.mxu0 %vm44_vm1, %v2603_v8  ;;  %8543 = vmatmul.mubr.msk.f32.vlgmr.msra.gmra.mxu1 %vm44_vm1, %v2603_v8 }
 0x7da   :  { %8546 = vmatpush3.msra.mxu1 %v10151_v46  ;;  %8553 = vmatpush3.msra.mxu0 %v10156_v47 }
 0x7db   :  { %8547 = vmatprep.subr.mxu1 %v9410_v2  ;;  %8554 = vmatprep.subr.mxu0 %v9410_v2 }
 0x7dc   :  { %8548 = vmatpush3.msra.mxu1 %v10163_v48  ;;  %8555 = vmatpush3.msra.mxu0 %v10168_v49 }
 0x7dd   :  { %8549 = vmatprep.mubr.msk.f32.mxu1 %vm9411_vm0, %v9410_v2  ;;  %8556 = vmatprep.subr.mxu0 %v9410_v2 }
 0x7de   :  { %8563 = vmatprep.subr.mxu1 %v9410_v2  ;;  %8550 = vmatmul.mubr.msk.f32.vlgmr.msra.gmra.mxu1 %vm2706_vm2, %v10099_v24 }
 0x7df   :  { %8557 = vmatpush3.msra.mxu0 %v10179_v50  ;;  %8564 = vmatpush3.msra.mxu1 %v10184_v51 }
 0x7e0   :  { %8558 = vmatprep.subr.mxu0 %v9410_v2  ;;  %8565 = vmatprep.subr.mxu1 %v9410_v2 }
 0x7e1   :  { %8559 = vmatpush3.msra.mxu0 %v10195_v52  ;;  %8560 = vmatprep.mubr.msk.f32.mxu0 %vm9411_vm0, %v9410_v2 }
 0x7e2   :  { %8566 = vmatpush3.msra.mxu1 %v10202_v53  ;;  %8561 = vmatmul.mubr.msk.f32.vlgmr.msra.gmra.mxu0 %vm44_vm1, %v2603_v8 }
 0x7e3   :  { %8567 = vmatprep.mubr.msk.f32.mxu1 %vm9411_vm0, %v9410_v2  ;;  %8570 = vmatprep.subr.mxu1 %v9410_v2 }
 0x7e4   :  { %8581 = vmatprep.subr.mxu0 %v9410_v2  ;;  %8568 = vmatmul.mubr.msk.f32.vlgmr.msra.gmra.mxu1 %vm2706_vm2, %v10099_v24 }
 0x7e5   :  { %8571 = vmatpush3.msra.mxu1 %v10214_v54  ;;  %8582 = vmatpush3.msra.mxu0 %v10219_v55 }
 0x7e6   :  { %8572 = vmatprep.subr.mxu1 %v9410_v2  ;;  %8583 = vmatprep.subr.mxu0 %v9410_v2 }
 0x7e7   :  { %8573 = vmatpush3.msra.mxu1 %v10230_v56  ;;  %8584 = vmatpush3.msra.mxu0 %v10235_v57 }
 0x7e8   :  { %8585 = vmatprep.mubr.msk.f32.mxu0 %vm9411_vm0, %v9410_v2  ;;  %8574 = vmatprep.subr.mxu1 %v9410_v2 }
 0x7e9   :  { %8586 = vmatmul.mubr.msk.f32.vlgmr.msra.gmra.mxu0 %vm2706_vm2, %v10099_v24  ;;  %8575 = vmatpush3.msra.mxu1 %v10244_v58  ;;  %v10286_v24 = vld [vmem:[%s11137_s6 + $0x10] sm:$0xff] }
 0x7ea   :  { %8576 = vmatprep.subr.mxu1 %v9410_v2  ;;  %8578 = vmatprep.mubr.msk.f32.mxu1 %vm9411_vm0, %v9410_v2 }
 0x7eb   :  { %8577 = vmatpush3.msra.mxu1 %v10254_v59  ;;  %8588 = vmatprep.subr.mxu0 %v9410_v2 }
 0x7ec   :  { %8579 = vmatmul.mubr.msk.f32.vlgmr.msra.gmra.mxu1 %vm44_vm1, %v2603_v8  ;;  %8599 = vmatprep.subr.mxu1 %v9410_v2 }
 0x7ed   :  { %8600 = vmatpush3.msra.mxu1 %v10065_v17  ;;  %8596 = vmatprep.mubr.msk.f32.mxu0 %vm9411_vm0, %v9410_v2 }
 0x7ee   :  { %8601 = vmatprep.subr.mxu1 %v9410_v2  ;;  %8607 = vmatprep.mubr.msk.f32.mxu1 %vm9411_vm0, %v9410_v2 }
 0x7ef   :  { %8602 = vmatpush3.msra.mxu1 %v10072_v19  ;;  %8589 = vmatpush3.msra.mxu0 %v10281_v18 }
 0x7f0   :  { %8603 = vmatprep.subr.mxu1 %v9410_v2  ;;  %8590 = vmatprep.subr.mxu0 %v9410_v2 }
 0x7f1   :  { %8604 = vmatpush3.msra.mxu1 %v10081_v21  ;;  %8591 = vmatpush3.msra.mxu0 %v10286_v24 }
 0x7f2   :  { %8605 = vmatprep.subr.mxu1 %v9410_v2  ;;  %8592 = vmatprep.subr.mxu0 %v9410_v2 }
 0x7f3   :  { %8606 = vmatpush3.msra.mxu1 %v10096_v23  ;;  %8593 = vmatpush3.msra.mxu0 %v10293_v12 }
 0x7f4   :  { %8617 = vmatprep.subr.mxu1 %v9410_v2  ;;  %8594 = vmatprep.subr.mxu0 %v9410_v2 }
 0x7f5   :  { %8595 = vmatpush3.msra.mxu0 %v10300_v13 }
 0x7f6   :  { %8610 = vmatprep.subr.mxu0 %v9410_v2 }
 0x899   :  { %v2702_v14 = vpop.f32.mrf.mxu0  ;;  %v2857_v15 = vpop.f32.mrf.mxu1 }
 0x89a   :  { %v2777_v16 = vadd.f32 %v2776_v60, %v2702_v14 }
 0x89b   :  { %v8526_v25 = vpop.f32.mrf.mxu0  ;;  %v8544_v26 = vpop.f32.mrf.mxu1 }
 0x89c   :  { %v7632_v27 = vmul.f32 -1.442695, %v2777_v16 }
 0x89e   :  { %9238 = vpow2.f32 %v7632_v27  ;;  %v2927_v28 = vpop.f32.mrf.mxu1 }
 0x89f   :  { %v2928_v29 = vadd.f32 %v2927_v28, %v2857_v15 }
 0x8a0   :  { %v8551_v30 = vpop.f32.mrf.mxu1 }
 0x8a1   :  { %v7639_v31 = vmul.f32 -1.442695, %v2928_v29 }
 0x8a2   :  { %v3008_v32 = vpop.f32.mrf.mxu0 }
 0x8a3   :  { %9240 = vpow2.f32 %v7639_v31 }
 0x8a4   :  { %v3078_v33 = vpop.f32.mrf.mxu1  ;;  %v8562_v34 = vpop.f32.mrf.mxu0 }
 0x8a5   :  { %v3079_v42 = vadd.f32 %v3078_v33, %v3008_v32 }
 0x8a6   :  { %v8569_v35 = vpop.f32.mrf.mxu1 }
 0x8a9   :  { %v3224_v36 = vpop.f32.mrf.mxu0 }
 0x8ab   :  { %v9239_v37 = vpop.eup %9238  ;;  %v8587_v38 = vpop.f32.mrf.mxu0 }
 0x8ac   :  { %v2783_v39 = vadd.f32 1.0, %v9239_v37  ;;  %v3154_v40 = vpop.f32.mrf.mxu1 }
 0x8ad   :  { %v3225_v41 = vadd.f32 %v3224_v36, %v3154_v40 }
 0x8ae   :  { %v8580_v43 = vpop.f32.mrf.mxu1  ;;  %9242 = vrcp.f32 %v2783_v39 }
 0x8af   :  { %v7652_v44 = vmul.f32 -1.442695, %v3225_v41  ;;  %v3344_v43 = vstv %s3343_s10  ;;  %s7730_s10 = sld [smem:[#allocation3 + $0x6]] }
 0x8b0   :  { %v9241_v45 = vpop.eup %9240  ;;  %vm3345_vm7 = vcmp.eq.s32.totalorder %v3344_v43, 1 }
 0x8b1   :  { %v2934_v0 = vadd.f32 1.0, %v9241_v45  ;;  %9244 = vpow2.f32 %v7652_v44 }
 0x8b2   :  { %9246 = vtanh.f32 %v3079_v42 }
 0x8b3   :  { %9248 = vrcp.f32 %v2934_v0 }
 0x8b5   :  { %p6810_p10 = scmp.eq.s32.totalorder %s7730_s10, 1 }
 0x8b7   :  { %s6813_s11 = scalar_select %p6810_p10, 1, 0 }
 0x8bb   :  { %v9243_v1 = vpop.eup %9242 }
 0x8be   :  { %v9245_v3 = vpop.eup %9244 }
 0x8bf   :  { %v9247_v4 = vpop.eup %9246  ;;  %v3231_v7 = vadd.f32 1.0, %v9245_v3 }
 0x8c0   :  { %v9249_v6 = vpop.eup %9248  ;;  %v3235_v60 = vmul.f32 %v9247_v4, %v9243_v1  ;;  %v7656_v1 = vld [vmem:[%s11132_s1 + $0x2] sm:$0x3] }
 0x8c1   :  { %v3234_v8 = vmul.f32 %v9249_v6, %v10145_v5  ;;  %9250 = vrcp.f32 %v3231_v7  ;;  %v10343_v5 = vld [vmem:[%s11138_s7] ss:$0 sm:$0xff] }
 0x8c3   :  { %v10307_v61 = vadd.f32 %v3235_v60, %v3234_v8 }
 0x8c5   :  { %9252 = vtanh.f32 %v10307_v61 }
 0x8ce   :  { %v9251_v14 = vpop.eup %9250 }
 0x8d2   :  { %v9253_v15 = vpop.eup %9252 }
 0x8d3   :  { %v10310_v16 = vmul.f32 %v9253_v15, %v9251_v14 }
 0x8d5   :  { %8597 = vmatmul.mubr.msk.f32.vlgmr.msra.gmra.mxu0 %vm44_vm1, %v10310_v16  ;;  %8608 = vmatmul.mubr.msk.f32.vlgmr.msra.gmra.mxu1 %vm44_vm1, %v10310_v16 }
 0x8d6   :  { %8618 = vmatpush3.msra.mxu1 %v10090_v22  ;;  %8625 = vmatprep.mubr.msk.f32.mxu1 %vm9411_vm0, %v9410_v2 }
 0x8d7   :  { %8619 = vmatprep.subr.mxu1 %v9410_v2  ;;  %8611 = vmatpush3.msra.mxu0 %v10055_v62 }
 0x8d8   :  { %8620 = vmatpush3.msra.mxu1 %v10107_v9  ;;  %8612 = vmatprep.subr.mxu0 %v9410_v2 }
 0x8d9   :  { %8621 = vmatprep.subr.mxu1 %v9410_v2  ;;  %8613 = vmatpush3.msra.mxu0 %v10060_v63 }
 0x8da   :  { %8622 = vmatpush3.msra.mxu1 %v10116_v10  ;;  %8614 = vmatprep.mubr.msk.f32.mxu0 %vm9411_vm0, %v9410_v2 }
 0x8db   :  { %8623 = vmatprep.subr.mxu1 %v9410_v2  ;;  %8628 = vmatprep.subr.mxu0 %v9410_v2 }
 0x8dc   :  { %8624 = vmatpush3.msra.mxu1 %v10126_v11 }
 0x8dd   :  { %8626 = vmatmul.mubr.msk.f32.vlgmr.msra.gmra.mxu1 %vm44_vm1, %v10310_v16  ;;  %8646 = vmatprep.subr.mxu1 %v9410_v2 }
 0x8de   :  { %8647 = vmatpush3.msra.mxu1 %v10184_v51  ;;  %8650 = vmatprep.mubr.msk.f32.mxu1 %vm9411_vm0, %v9410_v2 }
 0x8df   :  { %8648 = vmatprep.subr.mxu1 %v9410_v2 }
 0x8e0   :  { %8649 = vmatpush3.msra.mxu1 %v10202_v53 }
 0x8e1   :  { %8653 = vmatprep.subr.mxu1 %v9410_v2 }
 0x995   :  { %v3314_v25 = vpop.f32.mrf.mxu0  ;;  %v10345_v26 = vpop.f32.mrf.mxu1 }
 0x996   :  { %v10348_v27 = vadd.f32 %v10343_v5, %v3314_v25 }
 0x997   :  { %v8598_v28 = vpop.f32.mrf.mxu0  ;;  %v8609_v29 = vpop.f32.mrf.mxu1 }
 0x998   :  { %v3319_v30 = vsel %vm3318_vm4, %v10348_v27, -inf }
 0x999   :  { %3320 = vmax.xlane.f32.xlu0 %v3319_v30 }
 0x99d   :  { %v10352_v31 = vpop.f32.mrf.mxu1 }
 0x99f   :  { %v8627_v32 = vpop.f32.mrf.mxu1 }
 0xa22   :  { %v3321_v33 = vpop.xlane.xlu0 %3320 }
 0xa23   :  { %vm3322_vm5 = vcmp.eq.f32.partialorder %v10348_v27, %v3321_v33 }
 0xa24   :  { %v3323_v34 = vsel %vm3322_vm5, %v10074_v20, 16 }
 0xa25   :  { %v3324_v35 = vsel %vm3318_vm4, %v3323_v34, 2147483647 }
 0xa26   :  { %v3326_v36 = vshra.s32 %v3324_v35, 16  ;;  %v3325_v38 = vand.u32 65535, %v3324_v35 }
 0xa28   :  { %v3328_v37 = vcvt.s32.f32 %v3326_v36  ;;  %v3327_v40 = vcvt.s32.f32 %v3325_v38 }
 0xa2a   :  { %3329 = vmin.xlane.f32.xlu1 %v3328_v37 }
 0xab3   :  { %v3330_v39 = vpop.xlane.xlu1 %3329 }
 0xab4   :  { %vm3331_vm6 = vcmp.eq.f32.partialorder %v3328_v37, %v3330_v39  ;;  %v3336_v42 = vcvt.f32.s32 %v3330_v39 }
 0xab5   :  { %v3332_v41 = vsel %vm3331_vm6, %v3327_v40, inf }
 0xab6   :  { %3333 = vmin.xlane.f32.xlu1 %v3332_v41  ;;  %v3337_v45 = vshll.u32 %v3336_v42, 16 }
 0xb3f   :  { %v3334_v44 = vpop.xlane.xlu1 %3333 }
 0xb40   :  { %v3335_v0 = vcvt.f32.s32 %v3334_v44 }
 0xb42   :  { %v3338_v3 = vadd.s32 %v3337_v45, %v3335_v0 }
 0xb44   :  { %v3346_v4 = vsel %vm3345_vm7, %v7656_v1, %v3338_v3 }
 0xb45   :  { %3348 = vperm.xlu1 %9109, %v3346_v4  }
 0xbc0   :  { %v3349_v6 = vpop.permute.xlu1 %3348 }
 0xbc1   :  { %vm3350_vm8 = vcmp.eq.s32.totalorder %v10074_v20, %v3349_v6 }
 0xbc2   :  { %v7657_v7 = vsel %vm3350_vm8, 1.0, %v9410_v2 }
 0xbc3   :  { %8615 = vmatmul.mubr.msk.f32.vlgmr.msra.gmra.mxu0 %vm2706_vm2, %v7657_v7  ;;  %8651 = vmatmul.mubr.msk.f32.vlgmr.msra.gmra.mxu1 %vm2706_vm2, %v7657_v7 }
 0xbc4   :  { %8629 = vmatpush3.msra.mxu0 %v10151_v46  ;;  %8654 = vmatpush3.msra.mxu1 %v10214_v54 }
 0xbc5   :  { %8630 = vmatprep.subr.mxu0 %v9410_v2  ;;  %8655 = vmatprep.subr.mxu1 %v9410_v2 }
 0xbc6   :  { %8631 = vmatpush3.msra.mxu0 %v10163_v48  ;;  %8656 = vmatpush3.msra.mxu1 %v10230_v56 }
 0xbc7   :  { %8632 = vmatprep.mubr.msk.f32.mxu0 %vm9411_vm0, %v9410_v2  ;;  %8635 = vmatprep.subr.mxu0 %v9410_v2 }
 0xbc8   :  { %8657 = vmatprep.subr.mxu1 %v9410_v2  ;;  %8633 = vmatmul.mubr.msk.f32.vlgmr.msra.gmra.mxu0 %vm2706_vm2, %v7657_v7 }
 0xbc9   :  { %8636 = vmatpush3.msra.mxu0 %v10156_v47  ;;  %8658 = vmatpush3.msra.mxu1 %v10244_v58 }
 0xbca   :  { %8637 = vmatprep.subr.mxu0 %v9410_v2  ;;  %8659 = vmatprep.subr.mxu1 %v9410_v2 }
 0xbcb   :  { %8638 = vmatpush3.msra.mxu0 %v10168_v49  ;;  %8660 = vmatpush3.msra.mxu1 %v10254_v59 }
 0xbcc   :  { %8661 = vmatprep.mubr.msk.f32.mxu1 %vm9411_vm0, %v9410_v2  ;;  %8639 = vmatprep.subr.mxu0 %v9410_v2 }
 0xbcd   :  { %8662 = vmatmul.mubr.msk.f32.vlgmr.msra.gmra.mxu1 %vm44_vm1, %v10310_v16  ;;  %8640 = vmatpush3.msra.mxu0 %v10179_v50 }
 0xbce   :  { %8641 = vmatprep.subr.mxu0 %v9410_v2  ;;  %8643 = vmatprep.mubr.msk.f32.mxu0 %vm9411_vm0, %v9410_v2 }
 0xbcf   :  { %8642 = vmatpush3.msra.mxu0 %v10195_v52  ;;  %8682 = vmatprep.subr.mxu1 %v9410_v2 }
 0xbd0   :  { %8644 = vmatmul.mubr.msk.f32.vlgmr.msra.gmra.mxu0 %vm44_vm1, %v10310_v16  ;;  %8664 = vmatprep.subr.mxu0 %v9410_v2 }
 0xbd1   :  { %8665 = vmatpush3.msra.mxu0 %v10219_v55  ;;  %8668 = vmatprep.mubr.msk.f32.mxu0 %vm9411_vm0, %v9410_v2 }
 0xbd2   :  { %8666 = vmatprep.subr.mxu0 %v9410_v2  ;;  %8683 = vmatpush3.msra.mxu1 %v10065_v17 }
 0xbd3   :  { %8667 = vmatpush3.msra.mxu0 %v10235_v57  ;;  %8684 = vmatprep.subr.mxu1 %v9410_v2 }
 0xbd4   :  { %8669 = vmatmul.mubr.msk.f32.vlgmr.msra.gmra.mxu0 %vm2706_vm2, %v7657_v7  ;;  %8671 = vmatprep.subr.mxu0 %v9410_v2 }
 0xbd5   :  { %8672 = vmatpush3.msra.mxu0 %v10281_v18  ;;  %8685 = vmatpush3.msra.mxu1 %v10072_v19 }
 0xbd6   :  { %8673 = vmatprep.subr.mxu0 %v9410_v2  ;;  %8686 = vmatprep.subr.mxu1 %v9410_v2 }
 0xbd7   :  { %8674 = vmatpush3.msra.mxu0 %v10286_v24  ;;  %8687 = vmatpush3.msra.mxu1 %v10081_v21 }
 0xbd8   :  { %8675 = vmatprep.subr.mxu0 %v9410_v2  ;;  %8688 = vmatprep.subr.mxu1 %v9410_v2 }
 0xbd9   :  { %8676 = vmatpush3.msra.mxu0 %v10293_v12  ;;  %8689 = vmatpush3.msra.mxu1 %v10096_v23 }
 0xbda   :  { %8677 = vmatprep.subr.mxu0 %v9410_v2  ;;  %8679 = vmatprep.mubr.msk.f32.mxu0 %vm9411_vm0, %v9410_v2 }
 0xbdb   :  { %8678 = vmatpush3.msra.mxu0 %v10300_v13  ;;  %8690 = vmatprep.mubr.msk.f32.mxu1 %vm9411_vm0, %v9410_v2 }
 0xbdc   :  { %8700 = vmatprep.subr.mxu1 %v9410_v2  ;;  %8693 = vmatprep.subr.mxu0 %v9410_v2 }
 0xc83   :  { %v3492_v8 = vpop.f32.mrf.mxu0  ;;  %v3784_v60 = vpop.f32.mrf.mxu1 }
 0xc84   :  { %v3493_v14 = vadd.f32 %v3492_v8, %v10345_v26 }
 0xc85   :  { %v8616_v15 = vpop.f32.mrf.mxu0  ;;  %v8652_v16 = vpop.f32.mrf.mxu1 }
 0xc86   :  { %v7660_v25 = vmul.f32 -1.442695, %v3493_v14 }
 0xc88   :  { %9254 = vpow2.f32 %v7660_v25  ;;  %v3638_v28 = vpop.f32.mrf.mxu0 }
 0xc89   :  { %v3639_v29 = vadd.f32 %v3638_v28, %v10352_v31 }
 0xc8a   :  { %v8634_v30 = vpop.f32.mrf.mxu0 }
 0xc8b   :  { %v7663_v32 = vmul.f32 -1.442695, %v3639_v29 }
 0xc8d   :  { %9256 = vpow2.f32 %v7663_v32  ;;  %v3855_v33 = vpop.f32.mrf.mxu1 }
 0xc8f   :  { %v8663_v34 = vpop.f32.mrf.mxu1 }
 0xc90   :  { %v3714_v35 = vpop.f32.mrf.mxu0 }
 0xc91   :  { %v3785_v42 = vadd.f32 %v3784_v60, %v3714_v35 }
 0xc92   :  { %v8645_v36 = vpop.f32.mrf.mxu0 }
 0xc94   :  { %v3925_v37 = vpop.f32.mrf.mxu0 }
 0xc95   :  { %v9255_v38 = vpop.eup %9254  ;;  %v3926_v39 = vadd.f32 %v3925_v37, %v3855_v33 }
 0xc96   :  { %v8670_v40 = vpop.f32.mrf.mxu0  ;;  %v3499_v41 = vadd.f32 1.0, %v9255_v38 }
 0xc97   :  { %v7668_v26 = vmul.f32 -1.442695, %v3926_v39 }
 0xc99   :  { %9258 = vpow2.f32 %v7668_v26 }
 0xc9a   :  { %v9257_v43 = vpop.eup %9256  ;;  %9260 = vrcp.f32 %v3499_v41  ;;  %v4038_v41 = vstv %s4037_s13  ;;  %s9415_s13 = smov 32  }
 0xc9b   :  { %v3645_v44 = vadd.f32 1.0, %v9257_v43  ;;  %9262 = vtanh.f32 %v3785_v42  ;;  %vm4039_vm11 = vcmp.eq.s32.totalorder %v4038_v41, 1 }
 0xc9d   :  { %9264 = vrcp.f32 %v3645_v44  ;;  %v7671_v44 = vld [vmem:[%s11132_s1 + $0x4] sm:$0x3] }
 0xca6   :  { %v9259_v31 = vpop.eup %9258 }
 0xca7   :  { %v9261_v45 = vpop.eup %9260  ;;  %v3932_v3 = vadd.f32 1.0, %v9259_v31 }
 0xca8   :  { %v9263_v0 = vpop.eup %9262 }
 0xca9   :  { %v3936_v6 = vmul.f32 %v9263_v0, %v9261_v45  ;;  %9266 = vrcp.f32 %v3932_v3 }
 0xcaa   :  { %v9265_v1 = vpop.eup %9264 }
 0xcab   :  { %v3935_v4 = vmul.f32 %v9265_v1, %v10307_v61 }
 0xcad   :  { %v10425_v7 = vadd.f32 %v3936_v6, %v3935_v4 }
 0xcaf   :  { %9268 = vtanh.f32 %v10425_v7 }
 0xcb6   :  { %v9267_v8 = vpop.eup %9266 }
 0xcbc   :  { %v9269_v60 = vpop.eup %9268 }
 0xcbd   :  { %v10428_v14 = vmul.f32 %v9269_v60, %v9267_v8 }
 0xcbf   :  { %8680 = vmatmul.mubr.msk.f32.vlgmr.msra.gmra.mxu0 %vm44_vm1, %v10428_v14  ;;  %8691 = vmatmul.mubr.msk.f32.vlgmr.msra.gmra.mxu1 %vm44_vm1, %v10428_v14 }
 0xcc0   :  { %8701 = vmatpush3.msra.mxu1 %v10090_v22  ;;  %8708 = vmatprep.mubr.msk.f32.mxu1 %vm9411_vm0, %v9410_v2 }
 0xcc1   :  { %8702 = vmatprep.subr.mxu1 %v9410_v2  ;;  %8694 = vmatpush3.msra.mxu0 %v10055_v62 }
 0xcc2   :  { %8703 = vmatpush3.msra.mxu1 %v10107_v9  ;;  %8695 = vmatprep.subr.mxu0 %v9410_v2 }
 0xcc3   :  { %8704 = vmatprep.subr.mxu1 %v9410_v2  ;;  %8696 = vmatpush3.msra.mxu0 %v10060_v63 }
 0xcc4   :  { %8705 = vmatpush3.msra.mxu1 %v10116_v10  ;;  %8697 = vmatprep.mubr.msk.f32.mxu0 %vm9411_vm0, %v9410_v2 }
 0xcc5   :  { %8706 = vmatprep.subr.mxu1 %v9410_v2  ;;  %8711 = vmatprep.subr.mxu0 %v9410_v2 }
 0xcc6   :  { %8707 = vmatpush3.msra.mxu1 %v10126_v11 }
 0xcc7   :  { %8709 = vmatmul.mubr.msk.f32.vlgmr.msra.gmra.mxu1 %vm44_vm1, %v10428_v14  ;;  %8729 = vmatprep.subr.mxu1 %v9410_v2 }
 0xcc8   :  { %8730 = vmatpush3.msra.mxu1 %v10184_v51  ;;  %8733 = vmatprep.mubr.msk.f32.mxu1 %vm9411_vm0, %v9410_v2 }
 0xcc9   :  { %8731 = vmatprep.subr.mxu1 %v9410_v2 }
 0xcca   :  { %8732 = vmatpush3.msra.mxu1 %v10202_v53 }
 0xccb   :  { %8736 = vmatprep.subr.mxu1 %v9410_v2 }
 0xd7f   :  { %v4009_v62 = vpop.f32.mrf.mxu0  ;;  %v10458_v63 = vpop.f32.mrf.mxu1 }
 0xd80   :  { %v10461_v61 = vadd.f32 %v10343_v5, %v4009_v62 }
 0xd81   :  { %v8681_v15 = vpop.f32.mrf.mxu0  ;;  %v8692_v16 = vpop.f32.mrf.mxu1 }
 0xd82   :  { %v4013_v25 = vsel %vm3318_vm4, %v10461_v61, -inf }
 0xd83   :  { %4014 = vmax.xlane.f32.xlu1 %v4013_v25 }
 0xd87   :  { %v10465_v28 = vpop.f32.mrf.mxu1 }
 0xd89   :  { %v8710_v29 = vpop.f32.mrf.mxu1 }
 0xe0c   :  { %v4015_v30 = vpop.xlane.xlu1 %4014 }
 0xe0d   :  { %vm4016_vm9 = vcmp.eq.f32.partialorder %v10461_v61, %v4015_v30 }
 0xe0e   :  { %v4017_v32 = vsel %vm4016_vm9, %v10074_v20, 16 }
 0xe0f   :  { %v4018_v33 = vsel %vm3318_vm4, %v4017_v32, 2147483647 }
 0xe10   :  { %v4020_v34 = vshra.s32 %v4018_v33, 16  ;;  %v4019_v36 = vand.u32 65535, %v4018_v33 }
 0xe12   :  { %v4022_v35 = vcvt.s32.f32 %v4020_v34  ;;  %v4021_v38 = vcvt.s32.f32 %v4019_v36 }
 0xe14   :  { %4023 = vmin.xlane.f32.xlu0 %v4022_v35 }
 0xe9d   :  { %v4024_v37 = vpop.xlane.xlu0 %4023 }
 0xe9e   :  { %vm4025_vm10 = vcmp.eq.f32.partialorder %v4022_v35, %v4024_v37  ;;  %v4030_v40 = vcvt.f32.s32 %v4024_v37 }
 0xe9f   :  { %v4026_v39 = vsel %vm4025_vm10, %v4021_v38, inf }
 0xea0   :  { %4027 = vmin.xlane.f32.xlu0 %v4026_v39  ;;  %v4031_v42 = vshll.u32 %v4030_v40, 16 }
 0xf29   :  { %v4028_v26 = vpop.xlane.xlu0 %4027 }
 0xf2a   :  { %v4029_v43 = vcvt.f32.s32 %v4028_v26 }
 0xf2c   :  { %v4032_v31 = vadd.s32 %v4031_v42, %v4029_v43 }
 0xf2e   :  { %v4040_v45 = vsel %vm4039_vm11, %v7671_v44, %v4032_v31 }
 0xf2f   :  { %4042 = vperm.xlu0 %9108, %v4040_v45  }
 0xfaa   :  { %v4043_v0 = vpop.permute.xlu0 %4042 }
 0xfab   :  { %vm4044_vm12 = vcmp.eq.s32.totalorder %v10074_v20, %v4043_v0 }
 0xfac   :  { %v7672_v1 = vsel %vm4044_vm12, 1.0, %v9410_v2 }
 0xfad   :  { %8698 = vmatmul.mubr.msk.f32.vlgmr.msra.gmra.mxu0 %vm2706_vm2, %v7672_v1  ;;  %8734 = vmatmul.mubr.msk.f32.vlgmr.msra.gmra.mxu1 %vm2706_vm2, %v7672_v1 }
 0xfae   :  { %8712 = vmatpush3.msra.mxu0 %v10151_v46  ;;  %8737 = vmatpush3.msra.mxu1 %v10214_v54 }
 0xfaf   :  { %8713 = vmatprep.subr.mxu0 %v9410_v2  ;;  %8738 = vmatprep.subr.mxu1 %v9410_v2 }
 0xfb0   :  { %8714 = vmatpush3.msra.mxu0 %v10163_v48  ;;  %8739 = vmatpush3.msra.mxu1 %v10230_v56 }
 0xfb1   :  { %8715 = vmatprep.mubr.msk.f32.mxu0 %vm9411_vm0, %v9410_v2  ;;  %8718 = vmatprep.subr.mxu0 %v9410_v2 }
 0xfb2   :  { %8740 = vmatprep.subr.mxu1 %v9410_v2  ;;  %8716 = vmatmul.mubr.msk.f32.vlgmr.msra.gmra.mxu0 %vm2706_vm2, %v7672_v1 }
 0xfb3   :  { %8719 = vmatpush3.msra.mxu0 %v10156_v47  ;;  %8741 = vmatpush3.msra.mxu1 %v10244_v58 }
 0xfb4   :  { %8720 = vmatprep.subr.mxu0 %v9410_v2  ;;  %8742 = vmatprep.subr.mxu1 %v9410_v2 }
 0xfb5   :  { %8721 = vmatpush3.msra.mxu0 %v10168_v49  ;;  %8743 = vmatpush3.msra.mxu1 %v10254_v59 }
 0xfb6   :  { %8744 = vmatprep.mubr.msk.f32.mxu1 %vm9411_vm0, %v9410_v2  ;;  %8722 = vmatprep.subr.mxu0 %v9410_v2 }
 0xfb7   :  { %8745 = vmatmul.mubr.msk.f32.vlgmr.msra.gmra.mxu1 %vm44_vm1, %v10428_v14  ;;  %8723 = vmatpush3.msra.mxu0 %v10179_v50 }
 0xfb8   :  { %8724 = vmatprep.subr.mxu0 %v9410_v2  ;;  %8726 = vmatprep.mubr.msk.f32.mxu0 %vm9411_vm0, %v9410_v2 }
 0xfb9   :  { %8725 = vmatpush3.msra.mxu0 %v10195_v52  ;;  %8765 = vmatprep.subr.mxu1 %v9410_v2 }
 0xfba   :  { %8727 = vmatmul.mubr.msk.f32.vlgmr.msra.gmra.mxu0 %vm44_vm1, %v10428_v14  ;;  %8747 = vmatprep.subr.mxu0 %v9410_v2 }
 0xfbb   :  { %8748 = vmatpush3.msra.mxu0 %v10219_v55  ;;  %8751 = vmatprep.mubr.msk.f32.mxu0 %vm9411_vm0, %v9410_v2 }
 0xfbc   :  { %8749 = vmatprep.subr.mxu0 %v9410_v2  ;;  %8766 = vmatpush3.msra.mxu1 %v10065_v17 }
 0xfbd   :  { %8750 = vmatpush3.msra.mxu0 %v10235_v57  ;;  %8767 = vmatprep.subr.mxu1 %v9410_v2 }
 0xfbe   :  { %8752 = vmatmul.mubr.msk.f32.vlgmr.msra.gmra.mxu0 %vm2706_vm2, %v7672_v1  ;;  %8754 = vmatprep.subr.mxu0 %v9410_v2 }
 0xfbf   :  { %8755 = vmatpush3.msra.mxu0 %v10281_v18  ;;  %8768 = vmatpush3.msra.mxu1 %v10072_v19 }
 0xfc0   :  { %8756 = vmatprep.subr.mxu0 %v9410_v2  ;;  %8769 = vmatprep.subr.mxu1 %v9410_v2 }
 0xfc1   :  { %8757 = vmatpush3.msra.mxu0 %v10286_v24  ;;  %8770 = vmatpush3.msra.mxu1 %v10081_v21 }
 0xfc2   :  { %8758 = vmatprep.subr.mxu0 %v9410_v2  ;;  %8771 = vmatprep.subr.mxu1 %v9410_v2 }
 0xfc3   :  { %8759 = vmatpush3.msra.mxu0 %v10293_v12  ;;  %8772 = vmatpush3.msra.mxu1 %v10096_v23 }
 0xfc4   :  { %8760 = vmatprep.subr.mxu0 %v9410_v2  ;;  %8762 = vmatprep.mubr.msk.f32.mxu0 %vm9411_vm0, %v9410_v2 }
 0xfc5   :  { %8761 = vmatpush3.msra.mxu0 %v10300_v13  ;;  %8773 = vmatprep.mubr.msk.f32.mxu1 %vm9411_vm0, %v9410_v2 }
 0xfc6   :  { %8783 = vmatprep.subr.mxu1 %v9410_v2  ;;  %8776 = vmatprep.subr.mxu0 %v9410_v2 }
0x106d   :  { %v4186_v17 = vpop.f32.mrf.mxu0  ;;  %v4478_v19 = vpop.f32.mrf.mxu1 }
0x106e   :  { %v4187_v21 = vadd.f32 %v4186_v17, %v10458_v63 }
0x106f   :  { %v8699_v3 = vpop.f32.mrf.mxu0  ;;  %v8735_v23 = vpop.f32.mrf.mxu1 }
0x1070   :  { %v7675_v4 = vmul.f32 -1.442695, %v4187_v21 }
0x1072   :  { %9270 = vpow2.f32 %v7675_v4  ;;  %v4332_v6 = vpop.f32.mrf.mxu0 }
0x1073   :  { %v4333_v8 = vadd.f32 %v4332_v6, %v10465_v28 }
0x1074   :  { %v8717_v60 = vpop.f32.mrf.mxu0 }
0x1075   :  { %v7678_v14 = vmul.f32 -1.442695, %v4333_v8 }
0x1077   :  { %9272 = vpow2.f32 %v7678_v14  ;;  %v4549_v62 = vpop.f32.mrf.mxu1 }
0x1079   :  { %v8746_v15 = vpop.f32.mrf.mxu1 }
0x107a   :  { %v4408_v16 = vpop.f32.mrf.mxu0  ;;  %v4732_v15 = vstv %s4731_s19 }
0x107b   :  { %v4479_v35 = vadd.f32 %v4478_v19, %v4408_v16  ;;  %vm4733_vm15 = vcmp.eq.s32.totalorder %v4732_v15, 1 }
0x107c   :  { %v8728_v25 = vpop.f32.mrf.mxu0 }
0x107e   :  { %v4619_v29 = vpop.f32.mrf.mxu0 }
0x107f   :  { %v9271_v30 = vpop.eup %9270  ;;  %v4620_v32 = vadd.f32 %v4619_v29, %v4549_v62 }
0x1080   :  { %v8753_v33 = vpop.f32.mrf.mxu0  ;;  %v4193_v34 = vadd.f32 1.0, %v9271_v30  ;;  %v7686_v30 = vld [vmem:[%s11132_s1 + $0x6] sm:$0x3] }
0x1081   :  { %v7683_v63 = vmul.f32 -1.442695, %v4620_v32 }
0x1083   :  { %9274 = vpow2.f32 %v7683_v63 }
0x1084   :  { %v9273_v36 = vpop.eup %9272  ;;  %9276 = vrcp.f32 %v4193_v34 }
0x1085   :  { %v4339_v37 = vadd.f32 1.0, %v9273_v36  ;;  %9278 = vtanh.f32 %v4479_v35 }
0x1087   :  { %9280 = vrcp.f32 %v4339_v37 }
0x1090   :  { %v9275_v28 = vpop.eup %9274 }
0x1091   :  { %v9277_v38 = vpop.eup %9276  ;;  %v4626_v41 = vadd.f32 1.0, %v9275_v28 }
0x1092   :  { %v9279_v39 = vpop.eup %9278 }
0x1093   :  { %v4630_v42 = vmul.f32 %v9279_v39, %v9277_v38  ;;  %9282 = vrcp.f32 %v4626_v41 }
0x1094   :  { %v9281_v40 = vpop.eup %9280 }
0x1095   :  { %v4629_v26 = vmul.f32 %v9281_v40, %v10425_v7  ;;  %v10554_v7 = vld [vmem:[%s11135_s4 + $0x8] sm:$0xff] }
0x1097   :  { %v10538_v43 = vadd.f32 %v4630_v42, %v4629_v26 }
0x1099   :  { %9284 = vtanh.f32 %v10538_v43 }
0x10a0   :  { %v9283_v44 = vpop.eup %9282 }
0x10a6   :  { %v9285_v31 = vpop.eup %9284 }
0x10a7   :  { %v10541_v45 = vmul.f32 %v9285_v31, %v9283_v44 }
0x10a9   :  { %8763 = vmatmul.mubr.msk.f32.vlgmr.msra.gmra.mxu0 %vm44_vm1, %v10541_v45  ;;  %8774 = vmatmul.mubr.msk.f32.vlgmr.msra.gmra.mxu1 %vm44_vm1, %v10541_v45 }
0x10aa   :  { %8784 = vmatpush3.msra.mxu1 %v10090_v22  ;;  %8791 = vmatprep.mubr.msk.f32.mxu1 %vm9411_vm0, %v9410_v2  ;;  %v10563_v22 = vld [vmem:[%s11135_s4] sm:$0xff] }
0x10ab   :  { %8785 = vmatprep.subr.mxu1 %v9410_v2  ;;  %8777 = vmatpush3.msra.mxu0 %v10554_v7 }
0x10ac   :  { %8786 = vmatpush3.msra.mxu1 %v10107_v9  ;;  %8778 = vmatprep.subr.mxu0 %v9410_v2 }
0x10ad   :  { %8787 = vmatprep.subr.mxu1 %v9410_v2  ;;  %8779 = vmatpush3.msra.mxu0 %v10563_v22 }
0x10ae   :  { %8788 = vmatpush3.msra.mxu1 %v10116_v10  ;;  %8780 = vmatprep.mubr.msk.f32.mxu0 %vm9411_vm0, %v9410_v2 }
0x10af   :  { %8789 = vmatprep.subr.mxu1 %v9410_v2  ;;  %8794 = vmatprep.subr.mxu0 %v9410_v2 }
0x10b0   :  { %8790 = vmatpush3.msra.mxu1 %v10126_v11 }
0x10b1   :  { %8792 = vmatmul.mubr.msk.f32.vlgmr.msra.gmra.mxu1 %vm44_vm1, %v10541_v45  ;;  %8812 = vmatprep.subr.mxu1 %v9410_v2 }
0x10b2   :  { %8813 = vmatpush3.msra.mxu1 %v10184_v51  ;;  %8816 = vmatprep.mubr.msk.f32.mxu1 %vm9411_vm0, %v9410_v2 }
0x10b3   :  { %8814 = vmatprep.subr.mxu1 %v9410_v2 }
0x10b4   :  { %8815 = vmatpush3.msra.mxu1 %v10202_v53 }
0x10b5   :  { %8819 = vmatprep.subr.mxu1 %v9410_v2 }
0x1169   :  { %v4703_v9 = vpop.f32.mrf.mxu0  ;;  %v10581_v10 = vpop.f32.mrf.mxu1 }
0x116a   :  { %v10584_v11 = vadd.f32 %v10343_v5, %v4703_v9 }
0x116b   :  { %v8764_v0 = vpop.f32.mrf.mxu0  ;;  %v8775_v1 = vpop.f32.mrf.mxu1 }
0x116c   :  { %v4707_v51 = vsel %vm3318_vm4, %v10584_v11, -inf }
0x116d   :  { %4708 = vmax.xlane.f32.xlu1 %v4707_v51 }
0x1171   :  { %v10588_v17 = vpop.f32.mrf.mxu1 }
0x1173   :  { %v8793_v19 = vpop.f32.mrf.mxu1 }
0x11f6   :  { %v4709_v21 = vpop.xlane.xlu1 %4708 }
0x11f7   :  { %vm4710_vm13 = vcmp.eq.f32.partialorder %v10584_v11, %v4709_v21 }
0x11f8   :  { %v4711_v53 = vsel %vm4710_vm13, %v10074_v20, 16 }
0x11f9   :  { %v4712_v3 = vsel %vm3318_vm4, %v4711_v53, 2147483647 }
0x11fa   :  { %v4714_v23 = vshra.s32 %v4712_v3, 16  ;;  %v4713_v6 = vand.u32 65535, %v4712_v3  ;;  %v10703_v3 = vld [vmem:[%s11136_s5 + $0x30] sm:$0xff] }
0x11fc   :  { %v4716_v4 = vcvt.s32.f32 %v4714_v23  ;;  %v4715_v60 = vcvt.s32.f32 %v4713_v6  ;;  %v10712_v23 = vld [vmem:[%s11136_s5 + $0x28] sm:$0xff] }
0x11fd   :  { %v10731_v6 = vld [vmem:[%s11135_s4 + $0x28] sm:$0xff] }
0x11fe   :  { %4717 = vmin.xlane.f32.xlu0 %v4716_v4 }
0x1287   :  { %v4718_v8 = vpop.xlane.xlu0 %4717 }
0x1288   :  { %vm4719_vm14 = vcmp.eq.f32.partialorder %v4716_v4, %v4718_v8  ;;  %v4724_v62 = vcvt.f32.s32 %v4718_v8  ;;  %v10722_v4 = vld [vmem:[%s11136_s5 + $0x20] sm:$0xff] }
0x1289   :  { %v4720_v14 = vsel %vm4719_vm14, %v4715_v60, inf  ;;  %v10740_v8 = vld [vmem:[%s11135_s4 + $0x20] sm:$0xff] }
0x128a   :  { %4721 = vmin.xlane.f32.xlu1 %v4720_v14  ;;  %v4725_v25 = vshll.u32 %v4724_v62, 16 }
0x1313   :  { %v4722_v16 = vpop.xlane.xlu1 %4721 }
0x1314   :  { %v4723_v29 = vcvt.f32.s32 %v4722_v16 }
0x1316   :  { %v4726_v32 = vadd.s32 %v4725_v25, %v4723_v29 }
0x1318   :  { %v4734_v33 = vsel %vm4733_vm15, %v7686_v30, %v4726_v32 }
0x1319   :  { %4736 = vperm.xlu1 %9109, %v4734_v33  }
0x1394   :  { %v4737_v34 = vpop.permute.xlu1 %4736 }
0x1395   :  { %vm4738_vm3 = vcmp.eq.s32.totalorder %v10074_v20, %v4737_v34 }
0x1396   :  { %v7687_v63 = vsel %vm4738_vm3, 1.0, %v9410_v2  ;;  %vm7515_vm3 = vcmask 523264  }
0x1397   :  { %8781 = vmatmul.mubr.msk.f32.vlgmr.msra.gmra.mxu0 %vm2706_vm2, %v7687_v63  ;;  %8817 = vmatmul.mubr.msk.f32.vlgmr.msra.gmra.mxu1 %vm2706_vm2, %v7687_v63 }
0x1398   :  { %8795 = vmatpush3.msra.mxu0 %v10151_v46  ;;  %8820 = vmatpush3.msra.mxu1 %v10214_v54  ;;  %v10638_v46 = vld [vmem:[%s11136_s5 + $0x18] sm:$0xff] }
0x1399   :  { %8796 = vmatprep.subr.mxu0 %v9410_v2  ;;  %8821 = vmatprep.subr.mxu1 %v9410_v2 }
0x139a   :  { %8797 = vmatpush3.msra.mxu0 %v10163_v48  ;;  %8822 = vmatpush3.msra.mxu1 %v10230_v56  ;;  %v10658_v48 = vld [vmem:[%s11136_s5 + $0x8] sm:$0xff] }
0x139b   :  { %8798 = vmatprep.mubr.msk.f32.mxu0 %vm9411_vm0, %v9410_v2  ;;  %8801 = vmatprep.subr.mxu0 %v9410_v2 }
0x139c   :  { %8823 = vmatprep.subr.mxu1 %v9410_v2  ;;  %8799 = vmatmul.mubr.msk.f32.vlgmr.msra.gmra.mxu0 %vm2706_vm2, %v7687_v63 }
0x139d   :  { %8802 = vmatpush3.msra.mxu0 %v10156_v47  ;;  %8824 = vmatpush3.msra.mxu1 %v10244_v58  ;;  %v10649_v47 = vld [vmem:[%s11136_s5 + $0x10] sm:$0xff] }
0x139e   :  { %8803 = vmatprep.subr.mxu0 %v9410_v2  ;;  %8825 = vmatprep.subr.mxu1 %v9410_v2 }
0x139f   :  { %8804 = vmatpush3.msra.mxu0 %v10168_v49  ;;  %8826 = vmatpush3.msra.mxu1 %v10254_v59  ;;  %v10667_v49 = vld [vmem:[%s11136_s5] sm:$0xff] }
0x13a0   :  { %8827 = vmatprep.mubr.msk.f32.mxu1 %vm9411_vm0, %v9410_v2  ;;  %8805 = vmatprep.subr.mxu0 %v9410_v2 }
0x13a1   :  { %8828 = vmatmul.mubr.msk.f32.vlgmr.msra.gmra.mxu1 %vm44_vm1, %v10541_v45  ;;  %8806 = vmatpush3.msra.mxu0 %v10179_v50 }
0x13a2   :  { %8807 = vmatprep.subr.mxu0 %v9410_v2  ;;  %8809 = vmatprep.mubr.msk.f32.mxu0 %vm9411_vm0, %v9410_v2 }
0x13a3   :  { %8808 = vmatpush3.msra.mxu0 %v10195_v52  ;;  %8848 = vmatprep.subr.mxu1 %v9410_v2 }
0x13a4   :  { %8810 = vmatmul.mubr.msk.f32.vlgmr.msra.gmra.mxu0 %vm44_vm1, %v10541_v45  ;;  %8830 = vmatprep.subr.mxu0 %v9410_v2 }
0x13a5   :  { %8831 = vmatpush3.msra.mxu0 %v10219_v55  ;;  %8834 = vmatprep.mubr.msk.f32.mxu0 %vm9411_vm0, %v9410_v2 }
0x13a6   :  { %8832 = vmatprep.subr.mxu0 %v9410_v2  ;;  %8849 = vmatpush3.msra.mxu1 %v10638_v46 }
0x13a7   :  { %8833 = vmatpush3.msra.mxu0 %v10235_v57  ;;  %8850 = vmatprep.subr.mxu1 %v9410_v2 }
0x13a8   :  { %8835 = vmatmul.mubr.msk.f32.vlgmr.msra.gmra.mxu0 %vm2706_vm2, %v7687_v63  ;;  %8837 = vmatprep.subr.mxu0 %v9410_v2 }
0x13a9   :  { %8838 = vmatpush3.msra.mxu0 %v10281_v18  ;;  %8851 = vmatpush3.msra.mxu1 %v10649_v47 }
0x13aa   :  { %8839 = vmatprep.subr.mxu0 %v9410_v2  ;;  %8852 = vmatprep.subr.mxu1 %v9410_v2 }
0x13ab   :  { %8840 = vmatpush3.msra.mxu0 %v10286_v24  ;;  %8853 = vmatpush3.msra.mxu1 %v10658_v48 }
0x13ac   :  { %8841 = vmatprep.subr.mxu0 %v9410_v2  ;;  %8854 = vmatprep.subr.mxu1 %v9410_v2 }
0x13ad   :  { %8842 = vmatpush3.msra.mxu0 %v10293_v12  ;;  %8855 = vmatpush3.msra.mxu1 %v10667_v49 }
0x13ae   :  { %8843 = vmatprep.subr.mxu0 %v9410_v2  ;;  %8845 = vmatprep.mubr.msk.f32.mxu0 %vm9411_vm0, %v9410_v2 }
0x13af   :  { %8844 = vmatpush3.msra.mxu0 %v10300_v13  ;;  %8856 = vmatprep.mubr.msk.f32.mxu1 %vm9411_vm0, %v9410_v2 }
0x13b0   :  { %8866 = vmatprep.subr.mxu1 %v9410_v2  ;;  %8859 = vmatprep.subr.mxu0 %v9410_v2 }
0x1457   :  { %v4880_v50 = vpop.f32.mrf.mxu0  ;;  %v5172_v52 = vpop.f32.mrf.mxu1 }
0x1458   :  { %v4881_v54 = vadd.f32 %v4880_v50, %v10581_v10 }
0x1459   :  { %v8782_v55 = vpop.f32.mrf.mxu0  ;;  %v8818_v56 = vpop.f32.mrf.mxu1 }
0x145a   :  { %v7690_v57 = vmul.f32 -1.442695, %v4881_v54 }
0x145c   :  { %9286 = vpow2.f32 %v7690_v57  ;;  %v5026_v58 = vpop.f32.mrf.mxu0  ;;  %v5426_v57 = vstv %s5425_s2 }
0x145d   :  { %v5027_v59 = vadd.f32 %v5026_v58, %v10588_v17  ;;  %vm5427_vm7 = vcmp.eq.s32.totalorder %v5426_v57, 1 }
0x145e   :  { %v8800_v18 = vpop.f32.mrf.mxu0 }
0x145f   :  { %v7693_v24 = vmul.f32 -1.442695, %v5027_v59 }
0x1461   :  { %9288 = vpow2.f32 %v7693_v24  ;;  %v5243_v12 = vpop.f32.mrf.mxu1  ;;  %v7701_v24 = vld [vmem:[%s11132_s1 + $0x8] sm:$0x3] }
0x1463   :  { %v8829_v13 = vpop.f32.mrf.mxu1 }
0x1464   :  { %v5102_v35 = vpop.f32.mrf.mxu0 }
0x1465   :  { %v5173_v26 = vadd.f32 %v5172_v52, %v5102_v35 }
0x1466   :  { %v8811_v36 = vpop.f32.mrf.mxu0 }
0x1468   :  { %v5313_v37 = vpop.f32.mrf.mxu0 }
0x1469   :  { %v9287_v28 = vpop.eup %9286  ;;  %v5314_v38 = vadd.f32 %v5313_v37, %v5243_v12  ;;  %v10766_v37 = vld [vmem:[%s11135_s4 + $0x18] sm:$0xff] }
0x146a   :  { %v8836_v39 = vpop.f32.mrf.mxu0  ;;  %v4887_v40 = vadd.f32 1.0, %v9287_v28  ;;  %v10772_v28 = vld [vmem:[%s11136_s5 + $0x78] sm:$0xff] }
0x146b   :  { %v7698_v41 = vmul.f32 -1.442695, %v5314_v38  ;;  %v10780_v38 = vld [vmem:[%s11135_s4 + $0x10] sm:$0xff] }
0x146c   :  { %v10786_v39 = vld [vmem:[%s11136_s5 + $0x70] sm:$0xff] }
0x146d   :  { %9290 = vpow2.f32 %v7698_v41  ;;  %v10803_v41 = vld [vmem:[%s11136_s5 + $0x68] sm:$0xff] }
0x146e   :  { %v9289_v42 = vpop.eup %9288  ;;  %9292 = vrcp.f32 %v4887_v40  ;;  %v10797_v40 = vld [vmem:[%s11136_s5 + $0x58] sm:$0xff] }
0x146f   :  { %v5033_v44 = vadd.f32 1.0, %v9289_v42  ;;  %9294 = vtanh.f32 %v5173_v26  ;;  %v10811_v26 = vld [vmem:[%s11136_s5 + $0x50] sm:$0xff]  ;;  %v10817_v42 = vld [vmem:[%s11136_s5 + $0x60] sm:$0xff] }
0x1471   :  { %9296 = vrcp.f32 %v5033_v44  ;;  %v10828_v44 = vld [vmem:[%s11136_s5 + $0x48] sm:$0xff] }
0x147a   :  { %v9291_v31 = vpop.eup %9290 }
0x147b   :  { %v9293_v45 = vpop.eup %9292  ;;  %v5320_v0 = vadd.f32 1.0, %v9291_v31  ;;  %v10837_v31 = vld [vmem:[%s11136_s5 + $0x40] sm:$0xff] }
0x147c   :  { %v9295_v9 = vpop.eup %9294 }
0x147d   :  { %v5324_v51 = vmul.f32 %v9295_v9, %v9293_v45  ;;  %9298 = vrcp.f32 %v5320_v0  ;;  %v10847_v45 = vld [vmem:[%s11135_s4 + $0x38] sm:$0xff]  ;;  %v10857_v9 = vld [vmem:[%s11135_s4 + $0x30] sm:$0xff] }
0x147e   :  { %v9297_v10 = vpop.eup %9296  ;;  %v10875_v0 = vld [vmem:[%s11137_s6 + $0x10] sm:$0xff] }
0x147f   :  { %v5323_v1 = vmul.f32 %v9297_v10, %v10538_v43  ;;  %v10693_v43 = vld [vmem:[%s11136_s5 + $0x38] sm:$0xff] }
0x1480   :  { %v10866_v10 = vld [vmem:[%s11137_s6 + $0x18] sm:$0xff] }
0x1481   :  { %v10681_v17 = vadd.f32 %v5324_v51, %v5323_v1  ;;  %v10884_v1 = vld [vmem:[%s11137_s6 + $0x8] sm:$0xff]  ;;  %v10894_v51 = vld [vmem:[%s11137_s6] sm:$0xff] }
0x1483   :  { %9300 = vtanh.f32 %v10681_v17 }
0x148a   :  { %v9299_v19 = vpop.eup %9298 }
0x1490   :  { %v9301_v21 = vpop.eup %9300 }
0x1491   :  { %v10684_v53 = vmul.f32 %v9301_v21, %v9299_v19 }
0x1493   :  { %8846 = vmatmul.mubr.msk.f32.vlgmr.msra.gmra.mxu0 %vm44_vm1, %v10684_v53  ;;  %8857 = vmatmul.mubr.msk.f32.vlgmr.msra.gmra.mxu1 %vm44_vm1, %v10684_v53 }
0x1494   :  { %8867 = vmatpush3.msra.mxu1 %v10693_v43  ;;  %8874 = vmatprep.mubr.msk.f32.mxu1 %vm9411_vm0, %v9410_v2 }
0x1495   :  { %8868 = vmatprep.subr.mxu1 %v9410_v2  ;;  %8860 = vmatpush3.msra.mxu0 %v10554_v7 }
0x1496   :  { %8869 = vmatpush3.msra.mxu1 %v10703_v3  ;;  %8861 = vmatprep.subr.mxu0 %v9410_v2 }
0x1497   :  { %8870 = vmatprep.subr.mxu1 %v9410_v2  ;;  %8862 = vmatpush3.msra.mxu0 %v10563_v22 }
0x1498   :  { %8871 = vmatpush3.msra.mxu1 %v10712_v23  ;;  %8863 = vmatprep.mubr.msk.f32.mxu0 %vm9411_vm0, %v9410_v2 }
0x1499   :  { %8872 = vmatprep.subr.mxu1 %v9410_v2  ;;  %8877 = vmatprep.subr.mxu0 %v9410_v2 }
0x149a   :  { %8873 = vmatpush3.msra.mxu1 %v10722_v4 }
0x149b   :  { %8875 = vmatmul.mubr.msk.f32.vlgmr.msra.gmra.mxu1 %vm44_vm1, %v10684_v53  ;;  %8895 = vmatprep.subr.mxu1 %v9410_v2 }
0x149c   :  { %8896 = vmatpush3.msra.mxu1 %v10731_v6  ;;  %8899 = vmatprep.mubr.msk.f32.mxu1 %vm9411_vm0, %v9410_v2 }
0x149d   :  { %8897 = vmatprep.subr.mxu1 %v9410_v2 }
0x149e   :  { %8898 = vmatpush3.msra.mxu1 %v10740_v8 }
0x149f   :  { %8902 = vmatprep.subr.mxu1 %v9410_v2 }
0x1553   :  { %v5397_v60 = vpop.f32.mrf.mxu0  ;;  %v10744_v14 = vpop.f32.mrf.mxu1 }
0x1554   :  { %v10747_v62 = vadd.f32 %v10343_v5, %v5397_v60 }
0x1555   :  { %v8847_v15 = vpop.f32.mrf.mxu0  ;;  %v8858_v16 = vpop.f32.mrf.mxu1 }
0x1556   :  { %v5401_v25 = vsel %vm3318_vm4, %v10747_v62, -inf }
0x1557   :  { %5402 = vmax.xlane.f32.xlu1 %v5401_v25 }
0x155b   :  { %v10751_v29 = vpop.f32.mrf.mxu1 }
0x155d   :  { %v8876_v30 = vpop.f32.mrf.mxu1 }
0x15e0   :  { %v5403_v32 = vpop.xlane.xlu1 %5402 }
0x15e1   :  { %vm5404_vm5 = vcmp.eq.f32.partialorder %v10747_v62, %v5403_v32 }
0x15e2   :  { %v5405_v33 = vsel %vm5404_vm5, %v10074_v20, 16  ;;  %vm7517_vm5 = vcmask 654336  }
0x15e3   :  { %v5406_v34 = vsel %vm3318_vm4, %v5405_v33, 2147483647 }
0x15e4   :  { %v5408_v63 = vshra.s32 %v5406_v34, 16  ;;  %v5407_v5 = vand.u32 65535, %v5406_v34 }
0x15e6   :  { %v5410_v50 = vcvt.s32.f32 %v5408_v63  ;;  %v5409_v54 = vcvt.s32.f32 %v5407_v5 }
0x15e8   :  { %5411 = vmin.xlane.f32.xlu0 %v5410_v50 }
0x1671   :  { %v5412_v52 = vpop.xlane.xlu0 %5411 }
0x1672   :  { %vm5413_vm6 = vcmp.eq.f32.partialorder %v5410_v50, %v5412_v52  ;;  %v5418_v56 = vcvt.f32.s32 %v5412_v52 }
0x1673   :  { %v5414_v55 = vsel %vm5413_vm6, %v5409_v54, inf  ;;  %vm7519_vm6 = vcmask 785408  }
0x1674   :  { %5415 = vmin.xlane.f32.xlu0 %v5414_v55  ;;  %v5419_v59 = vshll.u32 %v5418_v56, 16 }
0x16fd   :  { %v5416_v58 = vpop.xlane.xlu0 %5415 }
0x16fe   :  { %v5417_v18 = vcvt.f32.s32 %v5416_v58 }
0x1700   :  { %v5420_v12 = vadd.s32 %v5419_v59, %v5417_v18 }
0x1702   :  { %v5428_v13 = vsel %vm5427_vm7, %v7701_v24, %v5420_v12  ;;  %vm7521_vm7 = vcmask 916480  }
0x1703   :  { %5430 = vperm.xlu0 %9108, %v5428_v13  }
0x177e   :  { %v5431_v35 = vpop.permute.xlu0 %5430 }
0x177f   :  { %vm5432_vm8 = vcmp.eq.s32.totalorder %v10074_v20, %v5431_v35 }
0x1780   :  { %v7702_v36 = vsel %vm5432_vm8, 1.0, %v9410_v2 }
0x1781   :  { %8864 = vmatmul.mubr.msk.f32.vlgmr.msra.gmra.mxu0 %vm2706_vm2, %v7702_v36  ;;  %8900 = vmatmul.mubr.msk.f32.vlgmr.msra.gmra.mxu1 %vm2706_vm2, %v7702_v36 }
0x1782   :  { %8878 = vmatpush3.msra.mxu0 %v10766_v37  ;;  %8903 = vmatpush3.msra.mxu1 %v10772_v28 }
0x1783   :  { %8879 = vmatprep.subr.mxu0 %v9410_v2  ;;  %8904 = vmatprep.subr.mxu1 %v9410_v2 }
0x1784   :  { %8880 = vmatpush3.msra.mxu0 %v10780_v38  ;;  %8905 = vmatpush3.msra.mxu1 %v10786_v39 }
0x1785   :  { %8881 = vmatprep.mubr.msk.f32.mxu0 %vm9411_vm0, %v9410_v2  ;;  %8884 = vmatprep.subr.mxu0 %v9410_v2 }
0x1786   :  { %8906 = vmatprep.subr.mxu1 %v9410_v2  ;;  %8882 = vmatmul.mubr.msk.f32.vlgmr.msra.gmra.mxu0 %vm2706_vm2, %v7702_v36 }
0x1787   :  { %8885 = vmatpush3.msra.mxu0 %v10797_v40  ;;  %8907 = vmatpush3.msra.mxu1 %v10803_v41 }
0x1788   :  { %8886 = vmatprep.subr.mxu0 %v9410_v2  ;;  %8908 = vmatprep.subr.mxu1 %v9410_v2 }
0x1789   :  { %8887 = vmatpush3.msra.mxu0 %v10811_v26  ;;  %8909 = vmatpush3.msra.mxu1 %v10817_v42 }
0x178a   :  { %8910 = vmatprep.mubr.msk.f32.mxu1 %vm9411_vm0, %v9410_v2  ;;  %8888 = vmatprep.subr.mxu0 %v9410_v2 }
0x178b   :  { %8911 = vmatmul.mubr.msk.f32.vlgmr.msra.gmra.mxu1 %vm44_vm1, %v10684_v53  ;;  %8889 = vmatpush3.msra.mxu0 %v10828_v44 }
0x178c   :  { %8890 = vmatprep.subr.mxu0 %v9410_v2  ;;  %8892 = vmatprep.mubr.msk.f32.mxu0 %vm9411_vm0, %v9410_v2 }
0x178d   :  { %8891 = vmatpush3.msra.mxu0 %v10837_v31  ;;  %8931 = vmatprep.subr.mxu1 %v9410_v2 }
0x178e   :  { %8893 = vmatmul.mubr.msk.f32.vlgmr.msra.gmra.mxu0 %vm44_vm1, %v10684_v53  ;;  %8913 = vmatprep.subr.mxu0 %v9410_v2 }
0x178f   :  { %8914 = vmatpush3.msra.mxu0 %v10847_v45  ;;  %8917 = vmatprep.mubr.msk.f32.mxu0 %vm9411_vm0, %v9410_v2 }
0x1790   :  { %8915 = vmatprep.subr.mxu0 %v9410_v2  ;;  %8932 = vmatpush3.msra.mxu1 %v10638_v46 }
0x1791   :  { %8916 = vmatpush3.msra.mxu0 %v10857_v9  ;;  %8933 = vmatprep.subr.mxu1 %v9410_v2 }
0x1792   :  { %8918 = vmatmul.mubr.msk.f32.vlgmr.msra.gmra.mxu0 %vm2706_vm2, %v7702_v36  ;;  %8920 = vmatprep.subr.mxu0 %v9410_v2 }
0x1793   :  { %8921 = vmatpush3.msra.mxu0 %v10866_v10  ;;  %8934 = vmatpush3.msra.mxu1 %v10649_v47 }
0x1794   :  { %8922 = vmatprep.subr.mxu0 %v9410_v2  ;;  %8935 = vmatprep.subr.mxu1 %v9410_v2 }
0x1795   :  { %8923 = vmatpush3.msra.mxu0 %v10875_v0  ;;  %8936 = vmatpush3.msra.mxu1 %v10658_v48 }
0x1796   :  { %8924 = vmatprep.subr.mxu0 %v9410_v2  ;;  %8937 = vmatprep.subr.mxu1 %v9410_v2 }
0x1797   :  { %8925 = vmatpush3.msra.mxu0 %v10884_v1  ;;  %8938 = vmatpush3.msra.mxu1 %v10667_v49 }
0x1798   :  { %8926 = vmatprep.subr.mxu0 %v9410_v2  ;;  %8928 = vmatprep.mubr.msk.f32.mxu0 %vm9411_vm0, %v9410_v2 }
0x1799   :  { %8927 = vmatpush3.msra.mxu0 %v10894_v51  ;;  %8939 = vmatprep.mubr.msk.f32.mxu1 %vm9411_vm0, %v9410_v2 }
0x179a   :  { %8949 = vmatprep.subr.mxu1 %v9410_v2  ;;  %8942 = vmatprep.subr.mxu0 %v9410_v2 }
0x1841   :  { %v5574_v19 = vpop.f32.mrf.mxu0  ;;  %v5866_v21 = vpop.f32.mrf.mxu1 }
0x1842   :  { %v5575_v53 = vadd.f32 %v5574_v19, %v10744_v14 }
0x1843   :  { %v8865_v60 = vpop.f32.mrf.mxu0  ;;  %v8901_v15 = vpop.f32.mrf.mxu1 }
0x1844   :  { %v7705_v16 = vmul.f32 -1.442695, %v5575_v53 }
0x1846   :  { %9302 = vpow2.f32 %v7705_v16  ;;  %v5720_v25 = vpop.f32.mrf.mxu0 }
0x1847   :  { %v5721_v30 = vadd.f32 %v5720_v25, %v10751_v29  ;;  %v10942_v25 = vld [vmem:[%s11138_s7] ss:$0 sm:$0xff]  ;;  %s7715_s7 = sld [smem:[#allocation3 + $0x5]] }
0x1848   :  { %v8883_v32 = vpop.f32.mrf.mxu0 }
0x1849   :  { %v7708_v33 = vmul.f32 -1.442695, %v5721_v30 }
0x184b   :  { %9304 = vpow2.f32 %v7708_v33  ;;  %v5937_v34 = vpop.f32.mrf.mxu1 }
0x184d   :  { %v8912_v63 = vpop.f32.mrf.mxu1  ;;  %p6116_p9 = scmp.eq.s32.totalorder %s7715_s7, 1 }
0x184e   :  { %v5796_v50 = vpop.f32.mrf.mxu0 }
0x184f   :  { %v5867_v58 = vadd.f32 %v5866_v21, %v5796_v50  ;;  %s6119_s27 = scalar_select %p6116_p9, 1, 0 }
0x1850   :  { %v8894_v5 = vpop.f32.mrf.mxu0 }
0x1852   :  { %v6007_v52 = vpop.f32.mrf.mxu0 }
0x1853   :  { %v9303_v54 = vpop.eup %9302  ;;  %v6008_v55 = vadd.f32 %v6007_v52, %v5937_v34 }
0x1854   :  { %v8919_v56 = vpop.f32.mrf.mxu0  ;;  %v5581_v57 = vadd.f32 1.0, %v9303_v54 }
0x1855   :  { %v7713_v14 = vmul.f32 -1.442695, %v6008_v55 }
0x1857   :  { %9306 = vpow2.f32 %v7713_v14 }
0x1858   :  { %v9305_v59 = vpop.eup %9304  ;;  %9308 = vrcp.f32 %v5581_v57 }
0x1859   :  { %v5727_v18 = vadd.f32 1.0, %v9305_v59  ;;  %9310 = vtanh.f32 %v5867_v58 }
0x185b   :  { %9312 = vrcp.f32 %v5727_v18 }
0x1864   :  { %v9307_v29 = vpop.eup %9306 }
0x1865   :  { %v9309_v24 = vpop.eup %9308  ;;  %v6014_v35 = vadd.f32 1.0, %v9307_v29  ;;  %v6120_v29 = vstv %s6119_s27 }
0x1866   :  { %v9311_v12 = vpop.eup %9310  ;;  %vm6121_vm11 = vcmp.eq.s32.totalorder %v6120_v29, 1 }
0x1867   :  { %v6018_v19 = vmul.f32 %v9311_v12, %v9309_v24  ;;  %9314 = vrcp.f32 %v6014_v35  ;;  %v7716_v35 = vld [vmem:[%s11132_s1 + $0xa] sm:$0x3] }
0x1868   :  { %v9313_v13 = vpop.eup %9312 }
0x1869   :  { %v6017_v36 = vmul.f32 %v9313_v13, %v10681_v17 }
0x186b   :  { %v10904_v53 = vadd.f32 %v6018_v19, %v6017_v36 }
0x186d   :  { %9316 = vtanh.f32 %v10904_v53 }
0x1874   :  { %v9315_v21 = vpop.eup %9314 }
0x187a   :  { %v9317_v60 = vpop.eup %9316 }
0x187b   :  { %v10907_v15 = vmul.f32 %v9317_v60, %v9315_v21 }
0x187d   :  { %8929 = vmatmul.mubr.msk.f32.vlgmr.msra.gmra.mxu0 %vm44_vm1, %v10907_v15  ;;  %8940 = vmatmul.mubr.msk.f32.vlgmr.msra.gmra.mxu1 %vm44_vm1, %v10907_v15 }
0x187e   :  { %8950 = vmatpush3.msra.mxu1 %v10693_v43  ;;  %8957 = vmatprep.mubr.msk.f32.mxu1 %vm9411_vm0, %v9410_v2 }
0x187f   :  { %8951 = vmatprep.subr.mxu1 %v9410_v2  ;;  %8943 = vmatpush3.msra.mxu0 %v10554_v7 }
0x1880   :  { %8952 = vmatpush3.msra.mxu1 %v10703_v3  ;;  %8944 = vmatprep.subr.mxu0 %v9410_v2 }
0x1881   :  { %8953 = vmatprep.subr.mxu1 %v9410_v2  ;;  %8945 = vmatpush3.msra.mxu0 %v10563_v22 }
0x1882   :  { %8954 = vmatpush3.msra.mxu1 %v10712_v23  ;;  %8946 = vmatprep.mubr.msk.f32.mxu0 %vm9411_vm0, %v9410_v2 }
0x1883   :  { %8955 = vmatprep.subr.mxu1 %v9410_v2  ;;  %8960 = vmatprep.subr.mxu0 %v9410_v2 }
0x1884   :  { %8956 = vmatpush3.msra.mxu1 %v10722_v4 }
0x1885   :  { %8958 = vmatmul.mubr.msk.f32.vlgmr.msra.gmra.mxu1 %vm44_vm1, %v10907_v15  ;;  %8978 = vmatprep.subr.mxu1 %v9410_v2 }
0x1886   :  { %8979 = vmatpush3.msra.mxu1 %v10731_v6  ;;  %8982 = vmatprep.mubr.msk.f32.mxu1 %vm9411_vm0, %v9410_v2 }
0x1887   :  { %8980 = vmatprep.subr.mxu1 %v9410_v2 }
0x1888   :  { %8981 = vmatpush3.msra.mxu1 %v10740_v8 }
0x1889   :  { %8985 = vmatprep.subr.mxu1 %v9410_v2 }
0x193d   :  { %v6091_v17 = vpop.f32.mrf.mxu0  ;;  %v10937_v16 = vpop.f32.mrf.mxu1 }
0x193e   :  { %v10945_v30 = vadd.f32 %v10942_v25, %v6091_v17 }
0x193f   :  { %v8930_v32 = vpop.f32.mrf.mxu0  ;;  %v8941_v33 = vpop.f32.mrf.mxu1 }
0x1940   :  { %v6095_v34 = vsel %vm3318_vm4, %v10945_v30, -inf }
0x1941   :  { %6096 = vmax.xlane.f32.xlu1 %v6095_v34 }
0x1945   :  { %v10949_v63 = vpop.f32.mrf.mxu1 }
0x1947   :  { %v8959_v50 = vpop.f32.mrf.mxu1 }
0x19ca   :  { %v6097_v5 = vpop.xlane.xlu1 %6096 }
0x19cb   :  { %vm6098_vm9 = vcmp.eq.f32.partialorder %v10945_v30, %v6097_v5 }
0x19cc   :  { %v6099_v52 = vsel %vm6098_vm9, %v10074_v20, 16 }
0x19cd   :  { %v6100_v54 = vsel %vm3318_vm4, %v6099_v52, 2147483647 }
0x19ce   :  { %v6102_v55 = vshra.s32 %v6100_v54, 16  ;;  %v6101_v57 = vand.u32 65535, %v6100_v54 }
0x19d0   :  { %v6104_v56 = vcvt.s32.f32 %v6102_v55  ;;  %v6103_v58 = vcvt.s32.f32 %v6101_v57 }
0x19d2   :  { %6105 = vmin.xlane.f32.xlu0 %v6104_v56 }
0x1a5b   :  { %v6106_v14 = vpop.xlane.xlu0 %6105 }
0x1a5c   :  { %vm6107_vm10 = vcmp.eq.f32.partialorder %v6104_v56, %v6106_v14  ;;  %v6112_v18 = vcvt.f32.s32 %v6106_v14 }
0x1a5d   :  { %v6108_v59 = vsel %vm6107_vm10, %v6103_v58, inf }
0x1a5e   :  { %6109 = vmin.xlane.f32.xlu1 %v6108_v59  ;;  %v6113_v12 = vshll.u32 %v6112_v18, 16 }
0x1ae7   :  { %v6110_v24 = vpop.xlane.xlu1 %6109 }
0x1ae8   :  { %v6111_v13 = vcvt.f32.s32 %v6110_v24 }
0x1aea   :  { %v6114_v36 = vadd.s32 %v6113_v12, %v6111_v13 }
0x1aec   :  { %v6122_v19 = vsel %vm6121_vm11, %v7716_v35, %v6114_v36 }
0x1aed   :  { %6124 = vperm.xlu1 %9109, %v6122_v19  }
0x1b68   :  { %v6125_v21 = vpop.permute.xlu1 %6124 }
0x1b69   :  { %vm6126_vm12 = vcmp.eq.s32.totalorder %v10074_v20, %v6125_v21 }
0x1b6a   :  { %v7717_v60 = vsel %vm6126_vm12, 1.0, %v9410_v2 }
0x1b6b   :  { %8947 = vmatmul.mubr.msk.f32.vlgmr.msra.gmra.mxu0 %vm2706_vm2, %v7717_v60  ;;  %8983 = vmatmul.mubr.msk.f32.vlgmr.msra.gmra.mxu1 %vm2706_vm2, %v7717_v60 }
0x1b6c   :  { %8961 = vmatpush3.msra.mxu0 %v10766_v37  ;;  %8986 = vmatpush3.msra.mxu1 %v10772_v28 }
0x1b6d   :  { %8962 = vmatprep.subr.mxu0 %v9410_v2  ;;  %8987 = vmatprep.subr.mxu1 %v9410_v2 }
0x1b6e   :  { %8963 = vmatpush3.msra.mxu0 %v10780_v38  ;;  %8988 = vmatpush3.msra.mxu1 %v10786_v39 }
0x1b6f   :  { %8964 = vmatprep.mubr.msk.f32.mxu0 %vm9411_vm0, %v9410_v2  ;;  %8967 = vmatprep.subr.mxu0 %v9410_v2 }
0x1b70   :  { %8989 = vmatprep.subr.mxu1 %v9410_v2  ;;  %8965 = vmatmul.mubr.msk.f32.vlgmr.msra.gmra.mxu0 %vm2706_vm2, %v7717_v60 }
0x1b71   :  { %8968 = vmatpush3.msra.mxu0 %v10797_v40  ;;  %8990 = vmatpush3.msra.mxu1 %v10803_v41 }
0x1b72   :  { %8969 = vmatprep.subr.mxu0 %v9410_v2  ;;  %8991 = vmatprep.subr.mxu1 %v9410_v2 }
0x1b73   :  { %8970 = vmatpush3.msra.mxu0 %v10811_v26  ;;  %8992 = vmatpush3.msra.mxu1 %v10817_v42 }
0x1b74   :  { %8993 = vmatprep.mubr.msk.f32.mxu1 %vm9411_vm0, %v9410_v2  ;;  %8971 = vmatprep.subr.mxu0 %v9410_v2 }
0x1b75   :  { %8994 = vmatmul.mubr.msk.f32.vlgmr.msra.gmra.mxu1 %vm44_vm1, %v10907_v15  ;;  %8972 = vmatpush3.msra.mxu0 %v10828_v44 }
0x1b76   :  { %8973 = vmatprep.subr.mxu0 %v9410_v2  ;;  %8975 = vmatprep.mubr.msk.f32.mxu0 %vm9411_vm0, %v9410_v2 }
0x1b77   :  { %8974 = vmatpush3.msra.mxu0 %v10837_v31  ;;  %9014 = vmatprep.subr.mxu1 %v9410_v2 }
0x1b78   :  { %8976 = vmatmul.mubr.msk.f32.vlgmr.msra.gmra.mxu0 %vm44_vm1, %v10907_v15  ;;  %8996 = vmatprep.subr.mxu0 %v9410_v2 }
0x1b79   :  { %8997 = vmatpush3.msra.mxu0 %v10847_v45  ;;  %9000 = vmatprep.mubr.msk.f32.mxu0 %vm9411_vm0, %v9410_v2 }
0x1b7a   :  { %8998 = vmatprep.subr.mxu0 %v9410_v2  ;;  %9015 = vmatpush3.msra.mxu1 %v10638_v46 }
0x1b7b   :  { %8999 = vmatpush3.msra.mxu0 %v10857_v9  ;;  %9016 = vmatprep.subr.mxu1 %v9410_v2 }
0x1b7c   :  { %9001 = vmatmul.mubr.msk.f32.vlgmr.msra.gmra.mxu0 %vm2706_vm2, %v7717_v60  ;;  %9003 = vmatprep.subr.mxu0 %v9410_v2 }
0x1b7d   :  { %9004 = vmatpush3.msra.mxu0 %v10866_v10  ;;  %9017 = vmatpush3.msra.mxu1 %v10649_v47 }
0x1b7e   :  { %9005 = vmatprep.subr.mxu0 %v9410_v2  ;;  %9018 = vmatprep.subr.mxu1 %v9410_v2 }
0x1b7f   :  { %9006 = vmatpush3.msra.mxu0 %v10875_v0  ;;  %9019 = vmatpush3.msra.mxu1 %v10658_v48 }
0x1b80   :  { %9007 = vmatprep.subr.mxu0 %v9410_v2  ;;  %9020 = vmatprep.subr.mxu1 %v9410_v2 }
0x1b81   :  { %9008 = vmatpush3.msra.mxu0 %v10884_v1  ;;  %9021 = vmatpush3.msra.mxu1 %v10667_v49 }
0x1b82   :  { %9009 = vmatprep.subr.mxu0 %v9410_v2  ;;  %9011 = vmatprep.mubr.msk.f32.mxu0 %vm9411_vm0, %v9410_v2 }
0x1b83   :  { %9010 = vmatpush3.msra.mxu0 %v10894_v51  ;;  %9022 = vmatprep.mubr.msk.f32.mxu1 %vm9411_vm0, %v9410_v2 }
0x1b84   :  { %9032 = vmatprep.subr.mxu1 %v9410_v2  ;;  %9025 = vmatprep.subr.mxu0 %v9410_v2 }
0x1c2b   :  { %v6268_v46 = vpop.f32.mrf.mxu0  ;;  %v6560_v47 = vpop.f32.mrf.mxu1 }
0x1c2c   :  { %v6269_v48 = vadd.f32 %v6268_v46, %v10937_v16 }
0x1c2d   :  { %v8948_v15 = vpop.f32.mrf.mxu0  ;;  %v8984_v49 = vpop.f32.mrf.mxu1 }
0x1c2e   :  { %v7720_v17 = vmul.f32 -1.442695, %v6269_v48 }
0x1c30   :  { %9318 = vpow2.f32 %v7720_v17  ;;  %v6414_v32 = vpop.f32.mrf.mxu0 }
0x1c31   :  { %v6415_v33 = vadd.f32 %v6414_v32, %v10949_v63 }
0x1c32   :  { %v8966_v34 = vpop.f32.mrf.mxu0 }
0x1c33   :  { %v7723_v50 = vmul.f32 -1.442695, %v6415_v33 }
0x1c35   :  { %9320 = vpow2.f32 %v7723_v50  ;;  %v6631_v5 = vpop.f32.mrf.mxu1 }
0x1c37   :  { %v8995_v52 = vpop.f32.mrf.mxu1 }
0x1c38   :  { %v6490_v54 = vpop.f32.mrf.mxu0  ;;  %v6814_v52 = vstv %s6813_s11 }
0x1c39   :  { %v6561_v18 = vadd.f32 %v6560_v47, %v6490_v54 }
0x1c3a   :  { %v8977_v55 = vpop.f32.mrf.mxu0 }
0x1c3c   :  { %v6701_v56 = vpop.f32.mrf.mxu0 }
0x1c3d   :  { %v9319_v57 = vpop.eup %9318  ;;  %v6702_v14 = vadd.f32 %v6701_v56, %v6631_v5 }
0x1c3e   :  { %v9002_v58 = vpop.f32.mrf.mxu0  ;;  %v6275_v59 = vadd.f32 1.0, %v9319_v57  ;;  %v7731_v57 = vld [vmem:[%s11132_s1 + $0xc] sm:$0x3]  ;;  %s9419_s1 = smov 112  }
0x1c3f   :  { %v7728_v16 = vmul.f32 -1.442695, %v6702_v14 }
0x1c41   :  { %9322 = vpow2.f32 %v7728_v16 }
0x1c42   :  { %v9321_v29 = vpop.eup %9320  ;;  %9324 = vrcp.f32 %v6275_v59 }
0x1c43   :  { %v6421_v24 = vadd.f32 1.0, %v9321_v29  ;;  %9326 = vtanh.f32 %v6561_v18 }
0x1c45   :  { %9328 = vrcp.f32 %v6421_v24 }
0x1c4e   :  { %v9323_v63 = vpop.eup %9322 }
0x1c4f   :  { %v9325_v12 = vpop.eup %9324  ;;  %v6708_v36 = vadd.f32 1.0, %v9323_v63 }
0x1c50   :  { %v9327_v13 = vpop.eup %9326 }
0x1c51   :  { %v6712_v21 = vmul.f32 %v9327_v13, %v9325_v12  ;;  %9330 = vrcp.f32 %v6708_v36 }
0x1c52   :  { %v9329_v35 = vpop.eup %9328 }
0x1c53   :  { %v6711_v19 = vmul.f32 %v9329_v35, %v10904_v53 }
0x1c55   :  { %v11022_v60 = vadd.f32 %v6712_v21, %v6711_v19 }
0x1c57   :  { %9332 = vtanh.f32 %v11022_v60 }
0x1c5e   :  { %v9331_v46 = vpop.eup %9330 }
0x1c64   :  { %v9333_v47 = vpop.eup %9332 }
0x1c65   :  { %v11025_v48 = vmul.f32 %v9333_v47, %v9331_v46 }
0x1c67   :  { %9012 = vmatmul.mubr.msk.f32.vlgmr.msra.gmra.mxu0 %vm44_vm1, %v11025_v48  ;;  %9023 = vmatmul.mubr.msk.f32.vlgmr.msra.gmra.mxu1 %vm44_vm1, %v11025_v48 }
0x1c68   :  { %9033 = vmatpush3.msra.mxu1 %v10693_v43  ;;  %9040 = vmatprep.mubr.msk.f32.mxu1 %vm9411_vm0, %v9410_v2 }
0x1c69   :  { %9034 = vmatprep.subr.mxu1 %v9410_v2  ;;  %9026 = vmatpush3.msra.mxu0 %v10554_v7 }
0x1c6a   :  { %9035 = vmatpush3.msra.mxu1 %v10703_v3  ;;  %9027 = vmatprep.subr.mxu0 %v9410_v2 }
0x1c6b   :  { %9036 = vmatprep.subr.mxu1 %v9410_v2  ;;  %9028 = vmatpush3.msra.mxu0 %v10563_v22 }
0x1c6c   :  { %9037 = vmatpush3.msra.mxu1 %v10712_v23  ;;  %9029 = vmatprep.mubr.msk.f32.mxu0 %vm9411_vm0, %v9410_v2 }
0x1c6d   :  { %9038 = vmatprep.subr.mxu1 %v9410_v2  ;;  %9043 = vmatprep.subr.mxu0 %v9410_v2 }
0x1c6e   :  { %9039 = vmatpush3.msra.mxu1 %v10722_v4 }
0x1c6f   :  { %9041 = vmatmul.mubr.msk.f32.vlgmr.msra.gmra.mxu1 %vm44_vm1, %v11025_v48  ;;  %9061 = vmatprep.subr.mxu1 %v9410_v2 }
0x1c70   :  { %9062 = vmatpush3.msra.mxu1 %v10731_v6  ;;  %9065 = vmatprep.mubr.msk.f32.mxu1 %vm9411_vm0, %v9410_v2 }
0x1c71   :  { %9063 = vmatprep.subr.mxu1 %v9410_v2 }
0x1c72   :  { %9064 = vmatpush3.msra.mxu1 %v10740_v8 }
0x1c73   :  { %9068 = vmatprep.subr.mxu1 %v9410_v2 }
0x1d27   :  { %v6785_v7 = vpop.f32.mrf.mxu0  ;;  %v11055_v22 = vpop.f32.mrf.mxu1 }
0x1d28   :  { %v6786_v43 = vadd.f32 %v10942_v25, %v6785_v7 }
0x1d29   :  { %v9013_v3 = vpop.f32.mrf.mxu0  ;;  %v9024_v23 = vpop.f32.mrf.mxu1 }
0x1d2a   :  { %v6789_v4 = vsel %vm3318_vm4, %v6786_v43, -inf }
0x1d2b   :  { %6790 = vmax.xlane.f32.xlu1 %v6789_v4 }
0x1d2f   :  { %v11059_v6 = vpop.f32.mrf.mxu1 }
0x1d31   :  { %v9042_v53 = vpop.f32.mrf.mxu1 }
0x1d3c   :  { %7484 = vrot.lane.b32.xlu1 %v10348_v27, %s9413_s30 }
0x1d40   :  { %7504 = vrot.lane.b32.xlu1 %v6786_v43, %s9414_s9 }
0x1db4   :  { %v6791_v8 = vpop.xlane.xlu1 %6790 }
0x1db5   :  { %vm6792_vm13 = vcmp.eq.f32.partialorder %v6786_v43, %v6791_v8 }
0x1db6   :  { %v6793_v15 = vsel %vm6792_vm13, %v10074_v20, 16 }
0x1db7   :  { %v6794_v49 = vsel %vm3318_vm4, %v6793_v15, 2147483647  ;;  %vm6815_vm4 = vcmp.eq.s32.totalorder %v6814_v52, 1 }
0x1db8   :  { %v6796_v17 = vshra.s32 %v6794_v49, 16  ;;  %v6795_v33 = vand.u32 65535, %v6794_v49  ;;  %v7485_v4 = vpop.permute.xlu1 %7484 }
0x1dba   :  { %v6798_v32 = vcvt.s32.f32 %v6796_v17  ;;  %v6797_v50 = vcvt.s32.f32 %v6795_v33 }
0x1dbc   :  { %6799 = vmin.xlane.f32.xlu0 %v6798_v32 }
0x1e45   :  { %v6800_v34 = vpop.xlane.xlu0 %6799 }
0x1e46   :  { %vm6801_vm14 = vcmp.eq.f32.partialorder %v6798_v32, %v6800_v34  ;;  %v6806_v27 = vcvt.f32.s32 %v6800_v34 }
0x1e47   :  { %v6802_v5 = vsel %vm6801_vm14, %v6797_v50, inf }
0x1e48   :  { %6803 = vmin.xlane.f32.xlu0 %v6802_v5  ;;  %v6807_v55 = vshll.u32 %v6806_v27, 16 }
0x1ed1   :  { %v6804_v54 = vpop.xlane.xlu0 %6803 }
0x1ed2   :  { %v6805_v56 = vcvt.f32.s32 %v6804_v54 }
0x1ed4   :  { %v6808_v14 = vadd.s32 %v6807_v55, %v6805_v56 }
0x1ed6   :  { %v6816_v58 = vsel %vm6815_vm4, %v7731_v57, %v6808_v14 }
0x1ed7   :  { %6818 = vperm.xlu0 %9108, %v6816_v58  }
0x1edb   :  { %7488 = vrot.lane.b32.xlu0 %v10461_v61, %s9415_s13 }
0x1edf   :  { %7492 = vrot.lane.b32.xlu0 %v10584_v11, %s9416_s14 }
0x1ee3   :  { %7496 = vrot.lane.b32.xlu0 %v10747_v62, %s9417_s15 }
0x1ee7   :  { %7500 = vrot.lane.b32.xlu0 %v10945_v30, %s9418_s3 }
0x1f52   :  { %v6819_v59 = vpop.permute.xlu0 %6818 }
0x1f53   :  { %vm6820_vm15 = vcmp.eq.s32.totalorder %v10074_v20, %v6819_v59 }
0x1f54   :  { %v7732_v16 = vsel %vm6820_vm15, 1.0, %v9410_v2 }
0x1f55   :  { %9030 = vmatmul.mubr.msk.f32.vlgmr.msra.gmra.mxu0 %vm2706_vm2, %v7732_v16  ;;  %9066 = vmatmul.mubr.msk.f32.vlgmr.msra.gmra.mxu1 %vm2706_vm2, %v7732_v16 }
0x1f56   :  { %9044 = vmatpush3.msra.mxu0 %v10766_v37  ;;  %9069 = vmatpush3.msra.mxu1 %v10772_v28  ;;  %v7489_v43 = vpop.permute.xlu0 %7488 }
0x1f57   :  { %9045 = vmatprep.subr.mxu0 %v9410_v2  ;;  %9070 = vmatprep.subr.mxu1 %v9410_v2 }
0x1f58   :  { %9046 = vmatpush3.msra.mxu0 %v10780_v38  ;;  %9071 = vmatpush3.msra.mxu1 %v10786_v39 }
0x1f59   :  { %9047 = vmatprep.mubr.msk.f32.mxu0 %vm9411_vm0, %v9410_v2  ;;  %9050 = vmatprep.subr.mxu0 %v9410_v2 }
0x1f5a   :  { %9072 = vmatprep.subr.mxu1 %v9410_v2  ;;  %9048 = vmatmul.mubr.msk.f32.vlgmr.msra.gmra.mxu0 %vm2706_vm2, %v7732_v16  ;;  %v7493_v3 = vpop.permute.xlu0 %7492 }
0x1f5b   :  { %9051 = vmatpush3.msra.mxu0 %v10797_v40  ;;  %9073 = vmatpush3.msra.mxu1 %v10803_v41 }
0x1f5c   :  { %9052 = vmatprep.subr.mxu0 %v9410_v2  ;;  %9074 = vmatprep.subr.mxu1 %v9410_v2 }
0x1f5d   :  { %9053 = vmatpush3.msra.mxu0 %v10811_v26  ;;  %9075 = vmatpush3.msra.mxu1 %v10817_v42 }
0x1f5e   :  { %9076 = vmatprep.mubr.msk.f32.mxu1 %vm9411_vm0, %v9410_v2  ;;  %9054 = vmatprep.subr.mxu0 %v9410_v2  ;;  %v7497_v23 = vpop.permute.xlu0 %7496 }
0x1f5f   :  { %9077 = vmatmul.mubr.msk.f32.vlgmr.msra.gmra.mxu1 %vm44_vm1, %v11025_v48  ;;  %9055 = vmatpush3.msra.mxu0 %v10828_v44 }
0x1f60   :  { %9056 = vmatprep.subr.mxu0 %v9410_v2  ;;  %9058 = vmatprep.mubr.msk.f32.mxu0 %vm9411_vm0, %v9410_v2 }
0x1f61   :  { %9057 = vmatpush3.msra.mxu0 %v10837_v31 }
0x1f62   :  { %9059 = vmatmul.mubr.msk.f32.vlgmr.msra.gmra.mxu0 %vm44_vm1, %v11025_v48  ;;  %9079 = vmatprep.subr.mxu0 %v9410_v2  ;;  %v7501_v53 = vpop.permute.xlu0 %7500 }
0x1f63   :  { %9080 = vmatpush3.msra.mxu0 %v10847_v45  ;;  %9083 = vmatprep.mubr.msk.f32.mxu0 %vm9411_vm0, %v9410_v2 }
0x1f64   :  { %9081 = vmatprep.subr.mxu0 %v9410_v2 }
0x1f65   :  { %9082 = vmatpush3.msra.mxu0 %v10857_v9 }
0x1f66   :  { %9084 = vmatmul.mubr.msk.f32.vlgmr.msra.gmra.mxu0 %vm2706_vm2, %v7732_v16  ;;  %9086 = vmatprep.subr.mxu0 %v9410_v2 }
0x1f67   :  { %9087 = vmatpush3.msra.mxu0 %v10866_v10  ;;  %9094 = vmatprep.mubr.msk.f32.mxu0 %vm9411_vm0, %v9410_v2  ;;  %vm7513_vm0 = vcmask 392192  }
0x1f68   :  { %9088 = vmatprep.subr.mxu0 %v9410_v2 }
0x1f69   :  { %9089 = vmatpush3.msra.mxu0 %v10875_v0 }
0x1f6a   :  { %9090 = vmatprep.subr.mxu0 %v9410_v2 }
0x1f6b   :  { %9091 = vmatpush3.msra.mxu0 %v10884_v1 }
0x1f6c   :  { %9092 = vmatprep.subr.mxu0 %v9410_v2 }
0x1f6d   :  { %9093 = vmatpush3.msra.mxu0 %v10894_v51 }
0x2015   :  { %v6962_v20 = vpop.f32.mrf.mxu0  ;;  %v7254_v61 = vpop.f32.mrf.mxu1 }
0x2016   :  { %v6963_v11 = vadd.f32 %v6962_v20, %v11055_v22 }
0x2017   :  { %v9031_v62 = vpop.f32.mrf.mxu0  ;;  %v9067_v37 = vpop.f32.mrf.mxu1 }
0x2018   :  { %v7735_v28 = vmul.f32 -1.442695, %v6963_v11 }
0x201a   :  { %9334 = vpow2.f32 %v7735_v28  ;;  %v7108_v38 = vpop.f32.mrf.mxu0 }
0x201b   :  { %v7109_v39 = vadd.f32 %v7108_v38, %v11059_v6 }
0x201c   :  { %v9049_v40 = vpop.f32.mrf.mxu0 }
0x201d   :  { %v7738_v41 = vmul.f32 -1.442695, %v7109_v39 }
0x201f   :  { %9336 = vpow2.f32 %v7738_v41  ;;  %v7325_v26 = vpop.f32.mrf.mxu1 }
0x2021   :  { %v9078_v42 = vpop.f32.mrf.mxu1 }
0x2022   :  { %v7184_v44 = vpop.f32.mrf.mxu0 }
0x2023   :  { %v7255_v51 = vadd.f32 %v7254_v61, %v7184_v44 }
0x2024   :  { %v9060_v2 = vpop.f32.mrf.mxu0 }
0x2026   :  { %v7395_v31 = vpop.f32.mrf.mxu0 }
0x2027   :  { %v9335_v45 = vpop.eup %9334  ;;  %v7396_v9 = vadd.f32 %v7395_v31, %v7325_v26 }
0x2028   :  { %v9085_v10 = vpop.f32.mrf.mxu0  ;;  %v6969_v0 = vadd.f32 1.0, %v9335_v45 }
0x2029   :  { %v7743_v1 = vmul.f32 -1.442695, %v7396_v9 }
0x202b   :  { %9338 = vpow2.f32 %v7743_v1 }
0x202c   :  { %v9337_v30 = vpop.eup %9336  ;;  %9340 = vrcp.f32 %v6969_v0 }
0x202d   :  { %v7115_v18 = vadd.f32 1.0, %v9337_v30  ;;  %9342 = vtanh.f32 %v7255_v51 }
0x202f   :  { %9344 = vrcp.f32 %v7115_v18 }
0x2038   :  { %v9339_v29 = vpop.eup %9338 }
0x2039   :  { %v9341_v24 = vpop.eup %9340  ;;  %v7402_v13 = vadd.f32 1.0, %v9339_v29 }
0x203a   :  { %v9343_v63 = vpop.eup %9342 }
0x203b   :  { %v7406_v36 = vmul.f32 %v9343_v63, %v9341_v24  ;;  %9346 = vrcp.f32 %v7402_v13 }
0x203c   :  { %v9345_v12 = vpop.eup %9344 }
0x203d   :  { %v7405_v35 = vmul.f32 %v9345_v12, %v11022_v60  ;;  %v7511_v60 = vsel %vm2706_vm2, 0.0, %v7485_v4 }
0x203e   :  { %v7512_v6 = vsel %vm44_vm1, %v7511_v60, %v7489_v43 }
0x203f   :  { %v7407_v19 = vadd.f32 %v7406_v36, %v7405_v35  ;;  %v7514_v8 = vsel %vm7513_vm0, %v7512_v6, %v7493_v3 }
0x2040   :  { %v7516_v15 = vsel %vm7515_vm3, %v7514_v8, %v7497_v23 }
0x2041   :  { %9348 = vtanh.f32 %v7407_v19  ;;  %v7518_v49 = vsel %vm7517_vm5, %v7516_v15, %v7501_v53 }
0x2048   :  { %v9347_v21 = vpop.eup %9346 }
0x204e   :  { %v9349_v46 = vpop.eup %9348 }
0x204f   :  { %v7409_v47 = vmul.f32 %v9349_v46, %v9347_v21 }
0x2051   :  { %9095 = vmatmul.mubr.msk.f32.vlgmr.msra.gmra.mxu0 %vm44_vm1, %v7409_v47 }
0x2111   :  { %v7479_v48 = vpop.f32.mrf.mxu0 }
0x2112   :  { %v7480_v7 = vadd.f32 %v10942_v25, %v7479_v48  ;;  %v7505_v25 = vpop.permute.xlu1 %7504 }
0x2113   :  { %v9096_v22 = vpop.f32.mrf.mxu0  ;;  %v7520_v17 = vsel %vm7519_vm6, %v7518_v49, %v7505_v25 }
0x2114   :  { %7508 = vrot.lane.b32.xlu0 %v7480_v7, %s9419_s1 }
0x2186   :  { %v7509_v32 = vpop.permute.xlu0 %7508 }
0x2187   :  { %v7522_v33 = vsel %vm7521_vm7, %v7520_v17, %v7509_v32 }
0x2188   :  { %7523 = vst [vmem:[%s11139_s8] sm:$0x3] %v7522_v33 }

</bundles_post_ra>
